<compile_context>
chip_gen: v7x
topology: tpu7x:2x2x1
jax: 0.10.0
libtpu: 0.0.40
codegen_flags: <defaults>
</compile_context>

<pallas_src>
import functools

import jax
import jax.numpy as jnp
from jax import lax
from jax.experimental import pallas as pl
from jax.experimental.pallas import tpu as pltpu


# ----------------------------- Pallas kernels ------------------------------

def _matmul_bias_act_kernel(a_ref, b_ref, bias_ref, o_ref, acc_ref, *, act):
    """grid=(M/TM, N/TN, K/TK); bf16 A,B -> f32 accumulator; bias + optional
    activation only in the k==last finalize so the inner loop is MXU-only."""
    k = pl.program_id(2)

    @pl.when(k == 0)
    def _init():
        acc_ref[...] = jnp.zeros_like(acc_ref)

    acc_ref[...] += jnp.dot(a_ref[...], b_ref[...],
                            preferred_element_type=jnp.float32)

    @pl.when(k == pl.num_programs(2) - 1)
    def _finalize():
        y = acc_ref[...] + bias_ref[...]
        if act == "tanh":
            y = jnp.tanh(y)
        elif act == "relu":
            y = jnp.maximum(y, 0.0)
        o_ref[...] = y.astype(o_ref.dtype)


def _bn_stats_kernel(x_ref, sum_ref, ssq_ref, *, m_total, tm):
    """Pass 1 of batchnorm: per-channel sum / sum-of-squares accumulated over an
    M-tiled ("arbitrary") grid into resident (1, C) output blocks (f32)."""
    i = pl.program_id(0)

    @pl.when(i == 0)
    def _init():
        sum_ref[...] = jnp.zeros_like(sum_ref)
        ssq_ref[...] = jnp.zeros_like(ssq_ref)

    x = x_ref[...]
    rows = lax.broadcasted_iota(jnp.int32, (x.shape[0], 1), 0) + i * tm
    x = jnp.where(rows < m_total, x, 0.0)         # mask the partial last tile
    sum_ref[...] += jnp.sum(x, axis=0, keepdims=True)
    ssq_ref[...] += jnp.sum(x * x, axis=0, keepdims=True)


def _scale_shift_act_kernel(x_ref, scale_ref, shift_ref, o_ref, *, act):
    y = x_ref[...] * scale_ref[...] + shift_ref[...]
    if act == "relu":
        y = jnp.maximum(y, 0.0)
    o_ref[...] = y


def _scale_shift_res_act_kernel(x_ref, scale_ref, shift_ref, res_ref, o_ref,
                                *, act):
    y = x_ref[...] * scale_ref[...] + shift_ref[...] + res_ref[...]
    if act == "relu":
        y = jnp.maximum(y, 0.0)
    o_ref[...] = y


# ----------------------------- Pallas wrappers ------------------------------

def _round_up(x, m):
    return (x + m - 1) // m * m


def _pad_cols(x, width):
    if x.shape[-1] == width:
        return x
    cfg = [(0, 0)] * (x.ndim - 1) + [(0, width - x.shape[-1])]
    return jnp.pad(x, cfg)


def pallas_matmul_bias_act(a, b, bias, act=None):
    """a: [M, K], b: [K, N], bias: [N] -> [M, Np] f32, Np = round_up(N, 128).

    A/B go to the MXU in bf16 (f32 accumulation).  K/N are zero-padded to
    multiples of 128 (aligned loads, lane-dense stores; numerically free); the
    padded output columns are sliced off by the caller.  M is not padded: the
    grid uses cdiv and the partial last tile is masked on store.
    """
    M, K = a.shape
    N = b.shape[1]
    Kp = _round_up(K, 128)
    Np = _round_up(N, 128)

    a = _pad_cols(a.astype(jnp.bfloat16), Kp)
    b = b.astype(jnp.bfloat16)
    if Kp != K or Np != N:
        b = jnp.pad(b, ((0, Kp - K), (0, Np - N)))
    bias2 = _pad_cols(bias.astype(jnp.float32), Np).reshape(1, Np)

    TM = 256 if M >= 256 else _round_up(M, 16)    # bf16 sublane packing = 16
    TN = 256 if Np % 256 == 0 else 128            # 128 also matches v5e MXU
    TK = 512 if Kp % 512 == 0 else (256 if Kp % 256 == 0 else 128)

    grid = (pl.cdiv(M, TM), Np // TN, Kp // TK)   # K last (reduction axis)
    return pl.pallas_call(
        functools.partial(_matmul_bias_act_kernel, act=act),
        out_shape=jax.ShapeDtypeStruct((M, Np), jnp.float32),
        grid=grid,
        in_specs=[
            pl.BlockSpec((TM, TK), lambda i, j, k: (i, k)),
            pl.BlockSpec((TK, TN), lambda i, j, k: (k, j)),
            pl.BlockSpec((1, TN), lambda i, j, k: (0, j)),
        ],
        out_specs=pl.BlockSpec((TM, TN), lambda i, j, k: (i, j)),
        scratch_shapes=[pltpu.VMEM((TM, TN), jnp.float32)],
        compiler_params=pltpu.CompilerParams(
            dimension_semantics=("parallel", "parallel", "arbitrary")),
    )(a, b, bias2)


def pallas_batchnorm_act(x, gamma, beta, act=None, residual=None, eps=1e-5):
    """Training-mode batchnorm (biased variance) + affine + optional ReLU and
    optional fused residual add.  x: [M, Cp] f32 with Cp a multiple of 128;
    gamma/beta (and residual) already padded to Cp.
    Pass 1: M-tiled sum/sumsq accumulation.  Pass 2: streamed normalize."""
    M, Cp = x.shape
    TM = min(512, _round_up(M, 8))
    grid = (pl.cdiv(M, TM),)

    s, ssq = pl.pallas_call(
        functools.partial(_bn_stats_kernel, m_total=M, tm=TM),
        out_shape=(jax.ShapeDtypeStruct((1, Cp), jnp.float32),
                   jax.ShapeDtypeStruct((1, Cp), jnp.float32)),
        grid=grid,
        in_specs=[pl.BlockSpec((TM, Cp), lambda i: (i, 0))],
        out_specs=(pl.BlockSpec((1, Cp), lambda i: (0, 0)),
                   pl.BlockSpec((1, Cp), lambda i: (0, 0))),
        compiler_params=pltpu.CompilerParams(
            dimension_semantics=("arbitrary",)),
    )(x)

    # tiny [1, Cp] math: fold mean/var/gamma/beta into a scale & shift
    mean = s / M
    var = jnp.maximum(ssq / M - mean * mean, 0.0)
    scale = gamma.reshape(1, Cp) * lax.rsqrt(var + eps)
    shift = beta.reshape(1, Cp) - mean * scale

    if residual is None:
        kernel = functools.partial(_scale_shift_act_kernel, act=act)
        operands = (x, scale, shift)
        in_specs = [pl.BlockSpec((TM, Cp), lambda i: (i, 0)),
                    pl.BlockSpec((1, Cp), lambda i: (0, 0)),
                    pl.BlockSpec((1, Cp), lambda i: (0, 0))]
    else:
        kernel = functools.partial(_scale_shift_res_act_kernel, act=act)
        operands = (x, scale, shift, residual)
        in_specs = [pl.BlockSpec((TM, Cp), lambda i: (i, 0)),
                    pl.BlockSpec((1, Cp), lambda i: (0, 0)),
                    pl.BlockSpec((1, Cp), lambda i: (0, 0)),
                    pl.BlockSpec((TM, Cp), lambda i: (i, 0))]

    return pl.pallas_call(
        kernel,
        out_shape=jax.ShapeDtypeStruct((M, Cp), jnp.float32),
        grid=grid,
        in_specs=in_specs,
        out_specs=pl.BlockSpec((TM, Cp), lambda i: (i, 0)),
        compiler_params=pltpu.CompilerParams(
            dimension_semantics=("parallel",)),
    )(*operands)


# ------------------------------- conv glue ----------------------------------

def extract_patches(x, k, stride):
    """x: [N, H, W, C] (already padded) -> ([N*oh*ow, k*k*C], (N, oh, ow))."""
    N, H, W, C = x.shape
    oh = (H - k) // stride + 1
    ow = (W - k) // stride + 1
    cols = []
    for di in range(k):
        for dj in range(k):
            cols.append(
                x[:, di:di + stride * (oh - 1) + 1:stride,
                     dj:dj + stride * (ow - 1) + 1:stride, :])
    p = jnp.stack(cols, axis=3)                       # [N, oh, ow, k*k, C]
    return p.reshape(N * oh * ow, k * k * C), (N, oh, ow)


def conv_w_to_mat(w):
    """PyTorch conv weight [OC, IC, k, k] -> [k*k*IC, OC] (matches patch order)."""
    oc = w.shape[0]
    return jnp.transpose(w, (2, 3, 1, 0)).reshape(-1, oc)


def tconv_w_to_conv(wt):
    """ConvTranspose2d weight [IC, OC, k, k] -> equivalent conv weight [OC, IC, k, k]."""
    return jnp.flip(jnp.transpose(wt, (1, 0, 2, 3)), axis=(2, 3))


def dilate_pad(x, stride, k, pad, out_pad):
    """Input dilation + padding that turns ConvTranspose2d into a stride-1 conv."""
    N, H, W, C = x.shape
    xd = jnp.zeros((N, (H - 1) * stride + 1, (W - 1) * stride + 1, C), x.dtype)
    xd = xd.at[:, ::stride, ::stride, :].set(x)
    lo = k - 1 - pad
    hi = k - 1 - pad + out_pad
    return jnp.pad(xd, ((0, 0), (lo, hi), (lo, hi), (0, 0)))


def complex_conv(xr, xi, wr, wi, br, bi, k, stride, pad, pad_mode):
    """ComplexConv2d: returns ([M, Cp] = [out_r | out_i | zero-pad], (N, oh, ow))."""
    xr = xr.astype(jnp.bfloat16)          # halve im2col HBM traffic + MXU-native
    xi = xi.astype(jnp.bfloat16)
    if pad > 0:
        cfg = ((0, 0), (pad, pad), (pad, pad), (0, 0))
        xr = jnp.pad(xr, cfg, mode=pad_mode)
        xi = jnp.pad(xi, cfg, mode=pad_mode)
    pr, shp = extract_patches(xr, k, stride)
    pi, _ = extract_patches(xi, k, stride)
    A = jnp.concatenate([pr, pi], axis=1)             # [M, 2K]
    mr = conv_w_to_mat(wr)                            # [K, OC]
    mi = conv_w_to_mat(wi)
    B = jnp.concatenate(
        [jnp.concatenate([mr, mi], axis=1),
         jnp.concatenate([-mi, mr], axis=1)], axis=0)  # [2K, 2OC]
    # (Wr*r + br) - (Wi*i + bi) ; (Wr*i + br) + (Wi*r + bi)   (cf. reference)
    bias = jnp.concatenate([br - bi, br + bi])         # [2OC]
    out = pallas_matmul_bias_act(A, B, bias)
    return out, shp


def split_complex(flat, shp, oc):
    """flat: [M, Cp] with layout [r(oc) | i(oc) | pad] -> two NHWC maps."""
    N, oh, ow = shp
    x = flat[:, :2 * oc].reshape(N, oh, ow, 2 * oc)
    return x[..., :oc], x[..., oc:]


def tile2(v):
    return jnp.concatenate([v, v])


# --------------------------- params / forward -------------------------------

def init_params(key, input_nc, output_nc, ngf, n_downsampling, n_blocks):
    keys = iter(jax.random.split(key, 512))

    def conv_p(ic, oc, k, transpose=False):
        k1, k2 = jax.random.split(next(keys))
        shape = (ic, oc, k, k) if transpose else (oc, ic, k, k)
        w = 0.02 * jax.random.normal(k1, shape, jnp.float32)
        b = 0.02 * jax.random.normal(k2, (oc,), jnp.float32)
        return w, b

    def cconv(ic, oc, k, transpose=False):
        wr, br = conv_p(ic, oc, k, transpose)
        wi, bi = conv_p(ic, oc, k, transpose)
        return dict(wr=wr, wi=wi, br=br, bi=bi,
                    gamma=jnp.ones((oc,), jnp.float32),
                    beta=jnp.zeros((oc,), jnp.float32))

    P = {}
    P["head"] = cconv(input_nc // 2, ngf, 7)
    P["down"] = [cconv(ngf * 2 ** i, ngf * 2 ** i * 2, 3)
                 for i in range(n_downsampling)]
    dim = ngf * 2 ** n_downsampling
    P["blocks"] = [dict(c1=cconv(dim, dim, 3), c2=cconv(dim, dim, 3))
                   for _ in range(n_blocks)]
    P["up"] = [cconv(ngf * 2 ** (n_downsampling - i),
                     ngf * 2 ** (n_downsampling - i) // 2, 3, transpose=True)
               for i in range(n_downsampling)]
    wf, bf = conv_p(ngf * 2, output_nc, 7)
    P["tail"] = dict(w=wf, b=bf)
    return P


def global_generator_forward(params, x_nchw):
    # split complex channels (PyTorch: input[:, :1], input[:, 1:]) and go NHWC
    xr = jnp.transpose(x_nchw[:, :1], (0, 2, 3, 1))
    xi = jnp.transpose(x_nchw[:, 1:], (0, 2, 3, 1))

    # TODO(synk): norm/activation are applied per real/imag part with shared
    # affine params and per-call (training-mode, biased-variance) statistics —
    # the standard complex-network convention for this code family.
    def cblock(xr, xi, p, k, stride, pad, pad_mode, act, residual_flat=None):
        out, shp = complex_conv(xr, xi, p["wr"], p["wi"], p["br"], p["bi"],
                                k, stride, pad, pad_mode)
        cp = out.shape[1]
        oc = p["gamma"].shape[0]
        gamma = _pad_cols(tile2(p["gamma"]), cp)   # pad channels: scale=shift=0
        beta = _pad_cols(tile2(p["beta"]), cp)
        flat = pallas_batchnorm_act(out, gamma, beta, act=act,
                                    residual=residual_flat)
        xr2, xi2 = split_complex(flat, shp, oc)
        return xr2, xi2, flat

    # head: ReflectionPad2d(3) + ComplexConv2d(k=7) + norm + complex_relu
    xr, xi, flat = cblock(xr, xi, params["head"], 7, 1, 3, "reflect", "relu")

    # downsampling: ComplexConv2d(k=3, s=2, p=1) + norm + complex_relu
    for p in params["down"]:
        xr, xi, flat = cblock(xr, xi, p, 3, 2, 1, "constant", "relu")

    # resnet blocks (reflect padding); the residual add is fused into the
    # second conv's BN epilogue — `flat` is the block input, already in the
    # padded [r | i | pad] layout the conv output uses (pad columns are zero).
    for blk in params["blocks"]:
        res_flat = flat
        rr, ri, _ = cblock(xr, xi, blk["c1"], 3, 1, 1, "reflect", "relu")
        xr, xi, flat = cblock(rr, ri, blk["c2"], 3, 1, 1, "reflect", None,
                              residual_flat=res_flat)

    # upsampling: ComplexTransposeConv2d(k=3, s=2, p=1, output_padding=1)
    for p in params["up"]:
        xr_d = dilate_pad(xr, 2, 3, 1, 1)
        xi_d = dilate_pad(xi, 2, 3, 1, 1)
        wr = tconv_w_to_conv(p["wr"])
        wi = tconv_w_to_conv(p["wi"])
        out, shp = complex_conv(xr_d, xi_d, wr, wi, p["br"], p["bi"],
                                3, 1, 0, "constant")
        cp = out.shape[1]
        oc = p["gamma"].shape[0]
        flat = pallas_batchnorm_act(out, _pad_cols(tile2(p["gamma"]), cp),
                                    _pad_cols(tile2(p["beta"]), cp), act="relu")
        xr, xi = split_complex(flat, shp, oc)

    # tail: concat(r, i), ReflectionPad2d(3), Conv2d(k=7), Tanh (fused in matmul)
    x = jnp.concatenate([xr, xi], axis=-1).astype(jnp.bfloat16)
    x = jnp.pad(x, ((0, 0), (3, 3), (3, 3), (0, 0)), mode="reflect")
    patches, (n, oh, ow) = extract_patches(x, 7, 1)
    out = pallas_matmul_bias_act(patches, conv_w_to_mat(params["tail"]["w"]),
                                 params["tail"]["b"], act="tanh")
    out_nc = params["tail"]["b"].shape[0]
    out = out[:, :out_nc].reshape(n, oh, ow, out_nc)
    return jnp.transpose(out, (0, 3, 1, 2))   # back to NCHW


# --------------------------------- main --------------------------------------

if __name__ == "__main__":
    key = jax.random.PRNGKey(0)
    kx, kp = jax.random.split(key)

    # small config consistent with the module: input_nc=2 (1 real + 1 imag ch)
    N, C, H, W = 2, 2, 16, 16
    input_nc, output_nc, ngf, n_down, n_blocks = 2, 2, 8, 2, 2

    x = jax.random.normal(kx, (N, C, H, W), jnp.float32)
    params = init_params(kp, input_nc, output_nc, ngf, n_down, n_blocks)

    fwd = jax.jit(global_generator_forward)
    out = fwd(params, x)
    out = jax.block_until_ready(out)

    assert out.shape == (N, output_nc, H, W), out.shape
    assert bool(jnp.all(jnp.isfinite(out)))
    assert bool(jnp.all(jnp.abs(out) <= 1.0))   # tanh range
    print("KERNEL_OK")
</pallas_src>

<mosaic_0001>
module attributes {stable_mosaic.version = 11 : i64} {
  func.func @_matmul_bias_act_kernel(%arg0: i32, %arg1: i32, %arg2: i32, %arg3: memref<256x128xbf16, #tpu.memory_space<vmem>>, %arg4: memref<128x128xbf16, #tpu.memory_space<vmem>>, %arg5: memref<1x128xf32, #tpu.memory_space<vmem>>, %arg6: memref<256x128xf32, #tpu.memory_space<vmem>>, %arg7: memref<256x128xf32, #tpu.memory_space<vmem>>) attributes {dimension_semantics = [#tpu.dimension_semantics<parallel>, #tpu.dimension_semantics<parallel>, #tpu.dimension_semantics<arbitrary>], iteration_bounds = array<i64: 2, 1, 1>, scalar_prefetch = 0 : i64, scratch_operands = 1 : i64, tpu.core_type = #tpu.core_type<tc>, window_params = [{transform_indices = @transform_0, window_bounds = array<i64: 256, 128>}, {transform_indices = @transform_1, window_bounds = array<i64: 128, 128>}, {transform_indices = @transform_2, window_bounds = array<i64: 1, 128>}, {transform_indices = @transform_3, window_bounds = array<i64: 256, 128>}]} {
    %c0_i32 = arith.constant 0 : i32
    %0 = arith.cmpi eq, %arg2, %c0_i32 : i32
    %1 = arith.extui %0 : i1 to i32
    %c0_i32_0 = arith.constant 0 : i32
    %2 = arith.cmpi ne, %1, %c0_i32_0 : i32
    scf.if %2 {
      %cst_10 = arith.constant 0.000000e+00 : f32
      %12 = vector.broadcast %cst_10 : f32 to vector<256x128xf32>
      %c0_11 = arith.constant 0 : index
      %c0_12 = arith.constant 0 : index
      %13 = vector.load %arg7[%c0_11, %c0_12] : memref<256x128xf32, #tpu.memory_space<vmem>>, vector<256x128xf32>
      tpu.vector_store %arg7[%c0_11, %c0_12], %12 {strides = array<i32>} : memref<256x128xf32, #tpu.memory_space<vmem>>, vector<256x128xf32>,
    } else {
    }
    %c0 = arith.constant 0 : index
    %c0_1 = arith.constant 0 : index
    %3 = vector.load %arg7[%c0, %c0_1] : memref<256x128xf32, #tpu.memory_space<vmem>>, vector<256x128xf32>
    %c0_2 = arith.constant 0 : index
    %c0_3 = arith.constant 0 : index
    %4 = vector.load %arg3[%c0_2, %c0_3] : memref<256x128xbf16, #tpu.memory_space<vmem>>, vector<256x128xbf16>
    %c0_4 = arith.constant 0 : index
    %c0_5 = arith.constant 0 : index
    %5 = vector.load %arg4[%c0_4, %c0_5] : memref<128x128xbf16, #tpu.memory_space<vmem>>, vector<128x128xbf16>
    %cst = arith.constant dense<0.000000e+00> : vector<256x128xf32>
    %6 = tpu.matmul %4, %5, %cst {dimension_numbers = #tpu.dot_dimension_numbers<[1], [0], [0], [1], [0, 0, 1, 1], [], []>} : vector<256x128xbf16>, vector<128x128xbf16>, vector<256x128xf32> -> vector<256x128xf32>
    %7 = arith.addf %3, %6 : vector<256x128xf32>
    %c0_6 = arith.constant 0 : index
    %c0_7 = arith.constant 0 : index
    %8 = vector.load %arg7[%c0_6, %c0_7] : memref<256x128xf32, #tpu.memory_space<vmem>>, vector<256x128xf32>
    tpu.vector_store %arg7[%c0_6, %c0_7], %7 {strides = array<i32>} : memref<256x128xf32, #tpu.memory_space<vmem>>, vector<256x128xf32>,
    %c0_i32_8 = arith.constant 0 : i32
    %9 = arith.cmpi eq, %arg2, %c0_i32_8 : i32
    %10 = arith.extui %9 : i1 to i32
    %c0_i32_9 = arith.constant 0 : i32
    %11 = arith.cmpi ne, %10, %c0_i32_9 : i32
    scf.if %11 {
      %c0_10 = arith.constant 0 : index
      %c0_11 = arith.constant 0 : index
      %12 = vector.load %arg7[%c0_10, %c0_11] : memref<256x128xf32, #tpu.memory_space<vmem>>, vector<256x128xf32>
      %c0_12 = arith.constant 0 : index
      %c0_13 = arith.constant 0 : index
      %13 = vector.load %arg5[%c0_12, %c0_13] : memref<1x128xf32, #tpu.memory_space<vmem>>, vector<1x128xf32>
      %14 = vector.broadcast %13 : vector<1x128xf32> to vector<256x128xf32>
      %15 = arith.addf %12, %14 : vector<256x128xf32>
      %c0_14 = arith.constant 0 : index
      %c0_15 = arith.constant 0 : index
      %16 = vector.load %arg6[%c0_14, %c0_15] : memref<256x128xf32, #tpu.memory_space<vmem>>, vector<256x128xf32>
      tpu.vector_store %arg6[%c0_14, %c0_15], %15 {strides = array<i32>} : memref<256x128xf32, #tpu.memory_space<vmem>>, vector<256x128xf32>,
    } else {
    }
    return
  }
  func.func @transform_0(%arg0: i32, %arg1: i32, %arg2: i32) -> (i32, i32) {
    %c0_i32 = arith.constant 0 : i32
    return %arg0, %arg2 : i32, i32
  }
  func.func @transform_1(%arg0: i32, %arg1: i32, %arg2: i32) -> (i32, i32) {
    %c0_i32 = arith.constant 0 : i32
    return %arg2, %arg1 : i32, i32
  }
  func.func @transform_2(%arg0: i32, %arg1: i32, %arg2: i32) -> (i32, i32) {
    %c0_i32 = arith.constant 0 : i32
    %c0_i32_0 = arith.constant 0 : i32
    return %c0_i32, %arg1 : i32, i32
  }
  func.func @transform_3(%arg0: i32, %arg1: i32, %arg2: i32) -> (i32, i32) {
    %c0_i32 = arith.constant 0 : i32
    return %arg0, %arg1 : i32, i32
  }
}

module attributes {stable_mosaic.version = 11 : i64} {
  func.func @_bn_stats_kernel(%arg0: i32, %arg1: memref<512x128xf32, #tpu.memory_space<vmem>>, %arg2: memref<1x128xf32, #tpu.memory_space<vmem>>, %arg3: memref<1x128xf32, #tpu.memory_space<vmem>>) attributes {dimension_semantics = [#tpu.dimension_semantics<arbitrary>], iteration_bounds = array<i64: 1>, scalar_prefetch = 0 : i64, scratch_operands = 0 : i64, tpu.core_type = #tpu.core_type<tc>, window_params = [{transform_indices = @transform_0, window_bounds = array<i64: 512, 128>}, {pipeline_mode = #tpu.pipeline_mode<synchronous>, transform_indices = @transform_1, window_bounds = array<i64: 1, 128>}, {pipeline_mode = #tpu.pipeline_mode<synchronous>, transform_indices = @transform_2, window_bounds = array<i64: 1, 128>}]} {
    %c0_i32 = arith.constant 0 : i32
    %0 = arith.cmpi eq, %arg0, %c0_i32 : i32
    %1 = arith.extui %0 : i1 to i32
    %c0_i32_0 = arith.constant 0 : i32
    %2 = arith.cmpi ne, %1, %c0_i32_0 : i32
    scf.if %2 {
      %cst_13 = arith.constant 0.000000e+00 : f32
      %25 = vector.broadcast %cst_13 : f32 to vector<1x128xf32>
      %c0_14 = arith.constant 0 : index
      %c0_15 = arith.constant 0 : index
      %26 = vector.load %arg2[%c0_14, %c0_15] : memref<1x128xf32, #tpu.memory_space<vmem>>, vector<1x128xf32>
      tpu.vector_store %arg2[%c0_14, %c0_15], %25 {strides = array<i32>} : memref<1x128xf32, #tpu.memory_space<vmem>>, vector<1x128xf32>,
      %cst_16 = arith.constant 0.000000e+00 : f32
      %27 = vector.broadcast %cst_16 : f32 to vector<1x128xf32>
      %c0_17 = arith.constant 0 : index
      %c0_18 = arith.constant 0 : index
      %28 = vector.load %arg3[%c0_17, %c0_18] : memref<1x128xf32, #tpu.memory_space<vmem>>, vector<1x128xf32>
      tpu.vector_store %arg3[%c0_17, %c0_18], %27 {strides = array<i32>} : memref<1x128xf32, #tpu.memory_space<vmem>>, vector<1x128xf32>,
    } else {
    }
    %c0 = arith.constant 0 : index
    %c0_1 = arith.constant 0 : index
    %3 = vector.load %arg1[%c0, %c0_1] : memref<512x128xf32, #tpu.memory_space<vmem>>, vector<512x128xf32>
    %4 = tpu.iota {dimensions = array<i32: 0>} : vector<512x1xi32>
    %c512_i32 = arith.constant 512 : i32
    %5 = arith.muli %arg0, %c512_i32 : i32
    %6 = vector.broadcast %5 : i32 to vector<512x1xi32>
    %7 = arith.addi %4, %6 : vector<512x1xi32>
    %c512_i32_2 = arith.constant 512 : i32
    %8 = vector.broadcast %c512_i32_2 : i32 to vector<512x1xi32>
    %9 = arith.cmpi slt, %7, %8 : vector<512x1xi32>
    %cst = arith.constant 0.000000e+00 : f32
    %10 = vector.shape_cast %9 : vector<512x1xi1> to vector<512x1xi1>
    %11 = vector.broadcast %10 : vector<512x1xi1> to vector<512x128xi1>
    %12 = vector.broadcast %cst : f32 to vector<512x128xf32>
    %13 = arith.select %11, %3, %12 : vector<512x128xi1>, vector<512x128xf32>
    %c0_3 = arith.constant 0 : index
    %c0_4 = arith.constant 0 : index
    %14 = vector.load %arg2[%c0_3, %c0_4] : memref<1x128xf32, #tpu.memory_space<vmem>>, vector<1x128xf32>
    %cst_5 = arith.constant dense<0.000000e+00> : vector<128xf32>
    %15 = vector.multi_reduction <add>, %13, %cst_5 [0] : vector<512x128xf32> to vector<128xf32>
    %16 = vector.shape_cast %15 : vector<128xf32> to vector<1x128xf32>
    %17 = arith.addf %14, %16 : vector<1x128xf32>
    %c0_6 = arith.constant 0 : index
    %c0_7 = arith.constant 0 : index
    %18 = vector.load %arg2[%c0_6, %c0_7] : memref<1x128xf32, #tpu.memory_space<vmem>>, vector<1x128xf32>
    tpu.vector_store %arg2[%c0_6, %c0_7], %17 {strides = array<i32>} : memref<1x128xf32, #tpu.memory_space<vmem>>, vector<1x128xf32>,
    %c0_8 = arith.constant 0 : index
    %c0_9 = arith.constant 0 : index
    %19 = vector.load %arg3[%c0_8, %c0_9] : memref<1x128xf32, #tpu.memory_space<vmem>>, vector<1x128xf32>
    %20 = arith.mulf %13, %13 : vector<512x128xf32>
    %cst_10 = arith.constant dense<0.000000e+00> : vector<128xf32>
    %21 = vector.multi_reduction <add>, %20, %cst_10 [0] : vector<512x128xf32> to vector<128xf32>
    %22 = vector.shape_cast %21 : vector<128xf32> to vector<1x128xf32>
    %23 = arith.addf %19, %22 : vector<1x128xf32>
    %c0_11 = arith.constant 0 : index
    %c0_12 = arith.constant 0 : index
    %24 = vector.load %arg3[%c0_11, %c0_12] : memref<1x128xf32, #tpu.memory_space<vmem>>, vector<1x128xf32>
    tpu.vector_store %arg3[%c0_11, %c0_12], %23 {strides = array<i32>} : memref<1x128xf32, #tpu.memory_space<vmem>>, vector<1x128xf32>,
    return
  }
  func.func @transform_0(%arg0: i32) -> (i32, i32) {
    %c0_i32 = arith.constant 0 : i32
    %c0_i32_0 = arith.constant 0 : i32
    return %arg0, %c0_i32 : i32, i32
  }
  func.func @transform_1(%arg0: i32) -> (i32, i32) {
    %c0_i32 = arith.constant 0 : i32
    %c0_i32_0 = arith.constant 0 : i32
    %c0_i32_1 = arith.constant 0 : i32
    return %c0_i32, %c0_i32_0 : i32, i32
  }
  func.func @transform_2(%arg0: i32) -> (i32, i32) {
    %c0_i32 = arith.constant 0 : i32
    %c0_i32_0 = arith.constant 0 : i32
    %c0_i32_1 = arith.constant 0 : i32
    return %c0_i32, %c0_i32_0 : i32, i32
  }
}

module attributes {stable_mosaic.version = 11 : i64} {
  func.func @_scale_shift_act_kernel(%arg0: i32, %arg1: memref<512x128xf32, #tpu.memory_space<vmem>>, %arg2: memref<1x128xf32, #tpu.memory_space<vmem>>, %arg3: memref<1x128xf32, #tpu.memory_space<vmem>>, %arg4: memref<512x128xf32, #tpu.memory_space<vmem>>) attributes {dimension_semantics = [#tpu.dimension_semantics<parallel>], iteration_bounds = array<i64: 1>, scalar_prefetch = 0 : i64, scratch_operands = 0 : i64, tpu.core_type = #tpu.core_type<tc>, window_params = [{transform_indices = @transform_0, window_bounds = array<i64: 512, 128>}, {pipeline_mode = #tpu.pipeline_mode<synchronous>, transform_indices = @transform_1, window_bounds = array<i64: 1, 128>}, {pipeline_mode = #tpu.pipeline_mode<synchronous>, transform_indices = @transform_2, window_bounds = array<i64: 1, 128>}, {transform_indices = @transform_3, window_bounds = array<i64: 512, 128>}]} {
    %c0 = arith.constant 0 : index
    %c0_0 = arith.constant 0 : index
    %0 = vector.load %arg1[%c0, %c0_0] : memref<512x128xf32, #tpu.memory_space<vmem>>, vector<512x128xf32>
    %c0_1 = arith.constant 0 : index
    %c0_2 = arith.constant 0 : index
    %1 = vector.load %arg2[%c0_1, %c0_2] : memref<1x128xf32, #tpu.memory_space<vmem>>, vector<1x128xf32>
    %2 = vector.broadcast %1 : vector<1x128xf32> to vector<512x128xf32>
    %3 = arith.mulf %0, %2 : vector<512x128xf32>
    %c0_3 = arith.constant 0 : index
    %c0_4 = arith.constant 0 : index
    %4 = vector.load %arg3[%c0_3, %c0_4] : memref<1x128xf32, #tpu.memory_space<vmem>>, vector<1x128xf32>
    %5 = vector.broadcast %4 : vector<1x128xf32> to vector<512x128xf32>
    %6 = arith.addf %3, %5 : vector<512x128xf32>
    %cst = arith.constant 0.000000e+00 : f32
    %7 = vector.broadcast %cst : f32 to vector<512x128xf32>
    %8 = arith.maximumf %6, %7 : vector<512x128xf32>
    %c0_5 = arith.constant 0 : index
    %c0_6 = arith.constant 0 : index
    %9 = vector.load %arg4[%c0_5, %c0_6] : memref<512x128xf32, #tpu.memory_space<vmem>>, vector<512x128xf32>
    tpu.vector_store %arg4[%c0_5, %c0_6], %8 {strides = array<i32>} : memref<512x128xf32, #tpu.memory_space<vmem>>, vector<512x128xf32>,
    return
  }
  func.func @transform_0(%arg0: i32) -> (i32, i32) {
    %c0_i32 = arith.constant 0 : i32
    %c0_i32_0 = arith.constant 0 : i32
    return %arg0, %c0_i32 : i32, i32
  }
  func.func @transform_1(%arg0: i32) -> (i32, i32) {
    %c0_i32 = arith.constant 0 : i32
    %c0_i32_0 = arith.constant 0 : i32
    %c0_i32_1 = arith.constant 0 : i32
    return %c0_i32, %c0_i32_0 : i32, i32
  }
  func.func @transform_2(%arg0: i32) -> (i32, i32) {
    %c0_i32 = arith.constant 0 : i32
    %c0_i32_0 = arith.constant 0 : i32
    %c0_i32_1 = arith.constant 0 : i32
    return %c0_i32, %c0_i32_0 : i32, i32
  }
  func.func @transform_3(%arg0: i32) -> (i32, i32) {
    %c0_i32 = arith.constant 0 : i32
    %c0_i32_0 = arith.constant 0 : i32
    return %arg0, %c0_i32 : i32, i32
  }
}

module attributes {stable_mosaic.version = 11 : i64} {
  func.func @_matmul_bias_act_kernel(%arg0: i32, %arg1: i32, %arg2: i32, %arg3: memref<128x256xbf16, #tpu.memory_space<vmem>>, %arg4: memref<256x128xbf16, #tpu.memory_space<vmem>>, %arg5: memref<1x128xf32, #tpu.memory_space<vmem>>, %arg6: memref<128x128xf32, #tpu.memory_space<vmem>>, %arg7: memref<128x128xf32, #tpu.memory_space<vmem>>) attributes {dimension_semantics = [#tpu.dimension_semantics<parallel>, #tpu.dimension_semantics<parallel>, #tpu.dimension_semantics<arbitrary>], iteration_bounds = array<i64: 1, 1, 1>, scalar_prefetch = 0 : i64, scratch_operands = 1 : i64, tpu.core_type = #tpu.core_type<tc>, window_params = [{transform_indices = @transform_0, window_bounds = array<i64: 128, 256>}, {transform_indices = @transform_1, window_bounds = array<i64: 256, 128>}, {transform_indices = @transform_2, window_bounds = array<i64: 1, 128>}, {transform_indices = @transform_3, window_bounds = array<i64: 128, 128>}]} {
    %c0_i32 = arith.constant 0 : i32
    %0 = arith.cmpi eq, %arg2, %c0_i32 : i32
    %1 = arith.extui %0 : i1 to i32
    %c0_i32_0 = arith.constant 0 : i32
    %2 = arith.cmpi ne, %1, %c0_i32_0 : i32
    scf.if %2 {
      %cst_10 = arith.constant 0.000000e+00 : f32
      %12 = vector.broadcast %cst_10 : f32 to vector<128x128xf32>
      %c0_11 = arith.constant 0 : index
      %c0_12 = arith.constant 0 : index
      %13 = vector.load %arg7[%c0_11, %c0_12] : memref<128x128xf32, #tpu.memory_space<vmem>>, vector<128x128xf32>
      tpu.vector_store %arg7[%c0_11, %c0_12], %12 {strides = array<i32>} : memref<128x128xf32, #tpu.memory_space<vmem>>, vector<128x128xf32>,
    } else {
    }
    %c0 = arith.constant 0 : index
    %c0_1 = arith.constant 0 : index
    %3 = vector.load %arg7[%c0, %c0_1] : memref<128x128xf32, #tpu.memory_space<vmem>>, vector<128x128xf32>
    %c0_2 = arith.constant 0 : index
    %c0_3 = arith.constant 0 : index
    %4 = vector.load %arg3[%c0_2, %c0_3] : memref<128x256xbf16, #tpu.memory_space<vmem>>, vector<128x256xbf16>
    %c0_4 = arith.constant 0 : index
    %c0_5 = arith.constant 0 : index
    %5 = vector.load %arg4[%c0_4, %c0_5] : memref<256x128xbf16, #tpu.memory_space<vmem>>, vector<256x128xbf16>
    %cst = arith.constant dense<0.000000e+00> : vector<128x128xf32>
    %6 = tpu.matmul %4, %5, %cst {dimension_numbers = #tpu.dot_dimension_numbers<[1], [0], [0], [1], [0, 0, 1, 1], [], []>} : vector<128x256xbf16>, vector<256x128xbf16>, vector<128x128xf32> -> vector<128x128xf32>
    %7 = arith.addf %3, %6 : vector<128x128xf32>
    %c0_6 = arith.constant 0 : index
    %c0_7 = arith.constant 0 : index
    %8 = vector.load %arg7[%c0_6, %c0_7] : memref<128x128xf32, #tpu.memory_space<vmem>>, vector<128x128xf32>
    tpu.vector_store %arg7[%c0_6, %c0_7], %7 {strides = array<i32>} : memref<128x128xf32, #tpu.memory_space<vmem>>, vector<128x128xf32>,
    %c0_i32_8 = arith.constant 0 : i32
    %9 = arith.cmpi eq, %arg2, %c0_i32_8 : i32
    %10 = arith.extui %9 : i1 to i32
    %c0_i32_9 = arith.constant 0 : i32
    %11 = arith.cmpi ne, %10, %c0_i32_9 : i32
    scf.if %11 {
      %c0_10 = arith.constant 0 : index
      %c0_11 = arith.constant 0 : index
      %12 = vector.load %arg7[%c0_10, %c0_11] : memref<128x128xf32, #tpu.memory_space<vmem>>, vector<128x128xf32>
      %c0_12 = arith.constant 0 : index
      %c0_13 = arith.constant 0 : index
      %13 = vector.load %arg5[%c0_12, %c0_13] : memref<1x128xf32, #tpu.memory_space<vmem>>, vector<1x128xf32>
      %14 = vector.broadcast %13 : vector<1x128xf32> to vector<128x128xf32>
      %15 = arith.addf %12, %14 : vector<128x128xf32>
      %c0_14 = arith.constant 0 : index
      %c0_15 = arith.constant 0 : index
      %16 = vector.load %arg6[%c0_14, %c0_15] : memref<128x128xf32, #tpu.memory_space<vmem>>, vector<128x128xf32>
      tpu.vector_store %arg6[%c0_14, %c0_15], %15 {strides = array<i32>} : memref<128x128xf32, #tpu.memory_space<vmem>>, vector<128x128xf32>,
    } else {
    }
    return
  }
  func.func @transform_0(%arg0: i32, %arg1: i32, %arg2: i32) -> (i32, i32) {
    %c0_i32 = arith.constant 0 : i32
    return %arg0, %arg2 : i32, i32
  }
  func.func @transform_1(%arg0: i32, %arg1: i32, %arg2: i32) -> (i32, i32) {
    %c0_i32 = arith.constant 0 : i32
    return %arg2, %arg1 : i32, i32
  }
  func.func @transform_2(%arg0: i32, %arg1: i32, %arg2: i32) -> (i32, i32) {
    %c0_i32 = arith.constant 0 : i32
    %c0_i32_0 = arith.constant 0 : i32
    return %c0_i32, %arg1 : i32, i32
  }
  func.func @transform_3(%arg0: i32, %arg1: i32, %arg2: i32) -> (i32, i32) {
    %c0_i32 = arith.constant 0 : i32
    return %arg0, %arg1 : i32, i32
  }
}

module attributes {stable_mosaic.version = 11 : i64} {
  func.func @_bn_stats_kernel(%arg0: i32, %arg1: memref<128x128xf32, #tpu.memory_space<vmem>>, %arg2: memref<1x128xf32, #tpu.memory_space<vmem>>, %arg3: memref<1x128xf32, #tpu.memory_space<vmem>>) attributes {dimension_semantics = [#tpu.dimension_semantics<arbitrary>], iteration_bounds = array<i64: 1>, scalar_prefetch = 0 : i64, scratch_operands = 0 : i64, tpu.core_type = #tpu.core_type<tc>, window_params = [{transform_indices = @transform_0, window_bounds = array<i64: 128, 128>}, {pipeline_mode = #tpu.pipeline_mode<synchronous>, transform_indices = @transform_1, window_bounds = array<i64: 1, 128>}, {pipeline_mode = #tpu.pipeline_mode<synchronous>, transform_indices = @transform_2, window_bounds = array<i64: 1, 128>}]} {
    %c0_i32 = arith.constant 0 : i32
    %0 = arith.cmpi eq, %arg0, %c0_i32 : i32
    %1 = arith.extui %0 : i1 to i32
    %c0_i32_0 = arith.constant 0 : i32
    %2 = arith.cmpi ne, %1, %c0_i32_0 : i32
    scf.if %2 {
      %cst_13 = arith.constant 0.000000e+00 : f32
      %25 = vector.broadcast %cst_13 : f32 to vector<1x128xf32>
      %c0_14 = arith.constant 0 : index
      %c0_15 = arith.constant 0 : index
      %26 = vector.load %arg2[%c0_14, %c0_15] : memref<1x128xf32, #tpu.memory_space<vmem>>, vector<1x128xf32>
      tpu.vector_store %arg2[%c0_14, %c0_15], %25 {strides = array<i32>} : memref<1x128xf32, #tpu.memory_space<vmem>>, vector<1x128xf32>,
      %cst_16 = arith.constant 0.000000e+00 : f32
      %27 = vector.broadcast %cst_16 : f32 to vector<1x128xf32>
      %c0_17 = arith.constant 0 : index
      %c0_18 = arith.constant 0 : index
      %28 = vector.load %arg3[%c0_17, %c0_18] : memref<1x128xf32, #tpu.memory_space<vmem>>, vector<1x128xf32>
      tpu.vector_store %arg3[%c0_17, %c0_18], %27 {strides = array<i32>} : memref<1x128xf32, #tpu.memory_space<vmem>>, vector<1x128xf32>,
    } else {
    }
    %c0 = arith.constant 0 : index
    %c0_1 = arith.constant 0 : index
    %3 = vector.load %arg1[%c0, %c0_1] : memref<128x128xf32, #tpu.memory_space<vmem>>, vector<128x128xf32>
    %4 = tpu.iota {dimensions = array<i32: 0>} : vector<128x1xi32>
    %c128_i32 = arith.constant 128 : i32
    %5 = arith.muli %arg0, %c128_i32 : i32
    %6 = vector.broadcast %5 : i32 to vector<128x1xi32>
    %7 = arith.addi %4, %6 : vector<128x1xi32>
    %c128_i32_2 = arith.constant 128 : i32
    %8 = vector.broadcast %c128_i32_2 : i32 to vector<128x1xi32>
    %9 = arith.cmpi slt, %7, %8 : vector<128x1xi32>
    %cst = arith.constant 0.000000e+00 : f32
    %10 = vector.shape_cast %9 : vector<128x1xi1> to vector<128x1xi1>
    %11 = vector.broadcast %10 : vector<128x1xi1> to vector<128x128xi1>
    %12 = vector.broadcast %cst : f32 to vector<128x128xf32>
    %13 = arith.select %11, %3, %12 : vector<128x128xi1>, vector<128x128xf32>
    %c0_3 = arith.constant 0 : index
    %c0_4 = arith.constant 0 : index
    %14 = vector.load %arg2[%c0_3, %c0_4] : memref<1x128xf32, #tpu.memory_space<vmem>>, vector<1x128xf32>
    %cst_5 = arith.constant dense<0.000000e+00> : vector<128xf32>
    %15 = vector.multi_reduction <add>, %13, %cst_5 [0] : vector<128x128xf32> to vector<128xf32>
    %16 = vector.shape_cast %15 : vector<128xf32> to vector<1x128xf32>
    %17 = arith.addf %14, %16 : vector<1x128xf32>
    %c0_6 = arith.constant 0 : index
    %c0_7 = arith.constant 0 : index
    %18 = vector.load %arg2[%c0_6, %c0_7] : memref<1x128xf32, #tpu.memory_space<vmem>>, vector<1x128xf32>
    tpu.vector_store %arg2[%c0_6, %c0_7], %17 {strides = array<i32>} : memref<1x128xf32, #tpu.memory_space<vmem>>, vector<1x128xf32>,
    %c0_8 = arith.constant 0 : index
    %c0_9 = arith.constant 0 : index
    %19 = vector.load %arg3[%c0_8, %c0_9] : memref<1x128xf32, #tpu.memory_space<vmem>>, vector<1x128xf32>
    %20 = arith.mulf %13, %13 : vector<128x128xf32>
    %cst_10 = arith.constant dense<0.000000e+00> : vector<128xf32>
    %21 = vector.multi_reduction <add>, %20, %cst_10 [0] : vector<128x128xf32> to vector<128xf32>
    %22 = vector.shape_cast %21 : vector<128xf32> to vector<1x128xf32>
    %23 = arith.addf %19, %22 : vector<1x128xf32>
    %c0_11 = arith.constant 0 : index
    %c0_12 = arith.constant 0 : index
    %24 = vector.load %arg3[%c0_11, %c0_12] : memref<1x128xf32, #tpu.memory_space<vmem>>, vector<1x128xf32>
    tpu.vector_store %arg3[%c0_11, %c0_12], %23 {strides = array<i32>} : memref<1x128xf32, #tpu.memory_space<vmem>>, vector<1x128xf32>,
    return
  }
  func.func @transform_0(%arg0: i32) -> (i32, i32) {
    %c0_i32 = arith.constant 0 : i32
    %c0_i32_0 = arith.constant 0 : i32
    return %arg0, %c0_i32 : i32, i32
  }
  func.func @transform_1(%arg0: i32) -> (i32, i32) {
    %c0_i32 = arith.constant 0 : i32
    %c0_i32_0 = arith.constant 0 : i32
    %c0_i32_1 = arith.constant 0 : i32
    return %c0_i32, %c0_i32_0 : i32, i32
  }
  func.func @transform_2(%arg0: i32) -> (i32, i32) {
    %c0_i32 = arith.constant 0 : i32
    %c0_i32_0 = arith.constant 0 : i32
    %c0_i32_1 = arith.constant 0 : i32
    return %c0_i32, %c0_i32_0 : i32, i32
  }
}

module attributes {stable_mosaic.version = 11 : i64} {
  func.func @_scale_shift_act_kernel(%arg0: i32, %arg1: memref<128x128xf32, #tpu.memory_space<vmem>>, %arg2: memref<1x128xf32, #tpu.memory_space<vmem>>, %arg3: memref<1x128xf32, #tpu.memory_space<vmem>>, %arg4: memref<128x128xf32, #tpu.memory_space<vmem>>) attributes {dimension_semantics = [#tpu.dimension_semantics<parallel>], iteration_bounds = array<i64: 1>, scalar_prefetch = 0 : i64, scratch_operands = 0 : i64, tpu.core_type = #tpu.core_type<tc>, window_params = [{transform_indices = @transform_0, window_bounds = array<i64: 128, 128>}, {pipeline_mode = #tpu.pipeline_mode<synchronous>, transform_indices = @transform_1, window_bounds = array<i64: 1, 128>}, {pipeline_mode = #tpu.pipeline_mode<synchronous>, transform_indices = @transform_2, window_bounds = array<i64: 1, 128>}, {transform_indices = @transform_3, window_bounds = array<i64: 128, 128>}]} {
    %c0 = arith.constant 0 : index
    %c0_0 = arith.constant 0 : index
    %0 = vector.load %arg1[%c0, %c0_0] : memref<128x128xf32, #tpu.memory_space<vmem>>, vector<128x128xf32>
    %c0_1 = arith.constant 0 : index
    %c0_2 = arith.constant 0 : index
    %1 = vector.load %arg2[%c0_1, %c0_2] : memref<1x128xf32, #tpu.memory_space<vmem>>, vector<1x128xf32>
    %2 = vector.broadcast %1 : vector<1x128xf32> to vector<128x128xf32>
    %3 = arith.mulf %0, %2 : vector<128x128xf32>
    %c0_3 = arith.constant 0 : index
    %c0_4 = arith.constant 0 : index
    %4 = vector.load %arg3[%c0_3, %c0_4] : memref<1x128xf32, #tpu.memory_space<vmem>>, vector<1x128xf32>
    %5 = vector.broadcast %4 : vector<1x128xf32> to vector<128x128xf32>
    %6 = arith.addf %3, %5 : vector<128x128xf32>
    %cst = arith.constant 0.000000e+00 : f32
    %7 = vector.broadcast %cst : f32 to vector<128x128xf32>
    %8 = arith.maximumf %6, %7 : vector<128x128xf32>
    %c0_5 = arith.constant 0 : index
    %c0_6 = arith.constant 0 : index
    %9 = vector.load %arg4[%c0_5, %c0_6] : memref<128x128xf32, #tpu.memory_space<vmem>>, vector<128x128xf32>
    tpu.vector_store %arg4[%c0_5, %c0_6], %8 {strides = array<i32>} : memref<128x128xf32, #tpu.memory_space<vmem>>, vector<128x128xf32>,
    return
  }
  func.func @transform_0(%arg0: i32) -> (i32, i32) {
    %c0_i32 = arith.constant 0 : i32
    %c0_i32_0 = arith.constant 0 : i32
    return %arg0, %c0_i32 : i32, i32
  }
  func.func @transform_1(%arg0: i32) -> (i32, i32) {
    %c0_i32 = arith.constant 0 : i32
    %c0_i32_0 = arith.constant 0 : i32
    %c0_i32_1 = arith.constant 0 : i32
    return %c0_i32, %c0_i32_0 : i32, i32
  }
  func.func @transform_2(%arg0: i32) -> (i32, i32) {
    %c0_i32 = arith.constant 0 : i32
    %c0_i32_0 = arith.constant 0 : i32
    %c0_i32_1 = arith.constant 0 : i32
    return %c0_i32, %c0_i32_0 : i32, i32
  }
  func.func @transform_3(%arg0: i32) -> (i32, i32) {
    %c0_i32 = arith.constant 0 : i32
    %c0_i32_0 = arith.constant 0 : i32
    return %arg0, %c0_i32 : i32, i32
  }
}

module attributes {stable_mosaic.version = 11 : i64} {
  func.func @_bn_stats_kernel(%arg0: i32, %arg1: memref<32x128xf32, #tpu.memory_space<vmem>>, %arg2: memref<1x128xf32, #tpu.memory_space<vmem>>, %arg3: memref<1x128xf32, #tpu.memory_space<vmem>>) attributes {dimension_semantics = [#tpu.dimension_semantics<arbitrary>], iteration_bounds = array<i64: 1>, scalar_prefetch = 0 : i64, scratch_operands = 0 : i64, tpu.core_type = #tpu.core_type<tc>, window_params = [{transform_indices = @transform_0, window_bounds = array<i64: 32, 128>}, {pipeline_mode = #tpu.pipeline_mode<synchronous>, transform_indices = @transform_1, window_bounds = array<i64: 1, 128>}, {pipeline_mode = #tpu.pipeline_mode<synchronous>, transform_indices = @transform_2, window_bounds = array<i64: 1, 128>}]} {
    %c0_i32 = arith.constant 0 : i32
    %0 = arith.cmpi eq, %arg0, %c0_i32 : i32
    %1 = arith.extui %0 : i1 to i32
    %c0_i32_0 = arith.constant 0 : i32
    %2 = arith.cmpi ne, %1, %c0_i32_0 : i32
    scf.if %2 {
      %cst_13 = arith.constant 0.000000e+00 : f32
      %25 = vector.broadcast %cst_13 : f32 to vector<1x128xf32>
      %c0_14 = arith.constant 0 : index
      %c0_15 = arith.constant 0 : index
      %26 = vector.load %arg2[%c0_14, %c0_15] : memref<1x128xf32, #tpu.memory_space<vmem>>, vector<1x128xf32>
      tpu.vector_store %arg2[%c0_14, %c0_15], %25 {strides = array<i32>} : memref<1x128xf32, #tpu.memory_space<vmem>>, vector<1x128xf32>,
      %cst_16 = arith.constant 0.000000e+00 : f32
      %27 = vector.broadcast %cst_16 : f32 to vector<1x128xf32>
      %c0_17 = arith.constant 0 : index
      %c0_18 = arith.constant 0 : index
      %28 = vector.load %arg3[%c0_17, %c0_18] : memref<1x128xf32, #tpu.memory_space<vmem>>, vector<1x128xf32>
      tpu.vector_store %arg3[%c0_17, %c0_18], %27 {strides = array<i32>} : memref<1x128xf32, #tpu.memory_space<vmem>>, vector<1x128xf32>,
    } else {
    }
    %c0 = arith.constant 0 : index
    %c0_1 = arith.constant 0 : index
    %3 = vector.load %arg1[%c0, %c0_1] : memref<32x128xf32, #tpu.memory_space<vmem>>, vector<32x128xf32>
    %4 = tpu.iota {dimensions = array<i32: 0>} : vector<32x1xi32>
    %c32_i32 = arith.constant 32 : i32
    %5 = arith.muli %arg0, %c32_i32 : i32
    %6 = vector.broadcast %5 : i32 to vector<32x1xi32>
    %7 = arith.addi %4, %6 : vector<32x1xi32>
    %c32_i32_2 = arith.constant 32 : i32
    %8 = vector.broadcast %c32_i32_2 : i32 to vector<32x1xi32>
    %9 = arith.cmpi slt, %7, %8 : vector<32x1xi32>
    %cst = arith.constant 0.000000e+00 : f32
    %10 = vector.shape_cast %9 : vector<32x1xi1> to vector<32x1xi1>
    %11 = vector.broadcast %10 : vector<32x1xi1> to vector<32x128xi1>
    %12 = vector.broadcast %cst : f32 to vector<32x128xf32>
    %13 = arith.select %11, %3, %12 : vector<32x128xi1>, vector<32x128xf32>
    %c0_3 = arith.constant 0 : index
    %c0_4 = arith.constant 0 : index
    %14 = vector.load %arg2[%c0_3, %c0_4] : memref<1x128xf32, #tpu.memory_space<vmem>>, vector<1x128xf32>
    %cst_5 = arith.constant dense<0.000000e+00> : vector<128xf32>
    %15 = vector.multi_reduction <add>, %13, %cst_5 [0] : vector<32x128xf32> to vector<128xf32>
    %16 = vector.shape_cast %15 : vector<128xf32> to vector<1x128xf32>
    %17 = arith.addf %14, %16 : vector<1x128xf32>
    %c0_6 = arith.constant 0 : index
    %c0_7 = arith.constant 0 : index
    %18 = vector.load %arg2[%c0_6, %c0_7] : memref<1x128xf32, #tpu.memory_space<vmem>>, vector<1x128xf32>
    tpu.vector_store %arg2[%c0_6, %c0_7], %17 {strides = array<i32>} : memref<1x128xf32, #tpu.memory_space<vmem>>, vector<1x128xf32>,
    %c0_8 = arith.constant 0 : index
    %c0_9 = arith.constant 0 : index
    %19 = vector.load %arg3[%c0_8, %c0_9] : memref<1x128xf32, #tpu.memory_space<vmem>>, vector<1x128xf32>
    %20 = arith.mulf %13, %13 : vector<32x128xf32>
    %cst_10 = arith.constant dense<0.000000e+00> : vector<128xf32>
    %21 = vector.multi_reduction <add>, %20, %cst_10 [0] : vector<32x128xf32> to vector<128xf32>
    %22 = vector.shape_cast %21 : vector<128xf32> to vector<1x128xf32>
    %23 = arith.addf %19, %22 : vector<1x128xf32>
    %c0_11 = arith.constant 0 : index
    %c0_12 = arith.constant 0 : index
    %24 = vector.load %arg3[%c0_11, %c0_12] : memref<1x128xf32, #tpu.memory_space<vmem>>, vector<1x128xf32>
    tpu.vector_store %arg3[%c0_11, %c0_12], %23 {strides = array<i32>} : memref<1x128xf32, #tpu.memory_space<vmem>>, vector<1x128xf32>,
    return
  }
  func.func @transform_0(%arg0: i32) -> (i32, i32) {
    %c0_i32 = arith.constant 0 : i32
    %c0_i32_0 = arith.constant 0 : i32
    return %arg0, %c0_i32 : i32, i32
  }
  func.func @transform_1(%arg0: i32) -> (i32, i32) {
    %c0_i32 = arith.constant 0 : i32
    %c0_i32_0 = arith.constant 0 : i32
    %c0_i32_1 = arith.constant 0 : i32
    return %c0_i32, %c0_i32_0 : i32, i32
  }
  func.func @transform_2(%arg0: i32) -> (i32, i32) {
    %c0_i32 = arith.constant 0 : i32
    %c0_i32_0 = arith.constant 0 : i32
    %c0_i32_1 = arith.constant 0 : i32
    return %c0_i32, %c0_i32_0 : i32, i32
  }
}

module attributes {stable_mosaic.version = 11 : i64} {
  func.func @_matmul_bias_act_kernel(%arg0: i32, %arg1: i32, %arg2: i32, %arg3: memref<32x128xbf16, #tpu.memory_space<vmem>>, %arg4: memref<128x128xbf16, #tpu.memory_space<vmem>>, %arg5: memref<1x128xf32, #tpu.memory_space<vmem>>, %arg6: memref<32x128xf32, #tpu.memory_space<vmem>>, %arg7: memref<32x128xf32, #tpu.memory_space<vmem>>) attributes {dimension_semantics = [#tpu.dimension_semantics<parallel>, #tpu.dimension_semantics<parallel>, #tpu.dimension_semantics<arbitrary>], iteration_bounds = array<i64: 1, 1, 3>, scalar_prefetch = 0 : i64, scratch_operands = 1 : i64, tpu.core_type = #tpu.core_type<tc>, window_params = [{transform_indices = @transform_0, window_bounds = array<i64: 32, 128>}, {transform_indices = @transform_1, window_bounds = array<i64: 128, 128>}, {transform_indices = @transform_2, window_bounds = array<i64: 1, 128>}, {transform_indices = @transform_3, window_bounds = array<i64: 32, 128>}]} {
    %c0_i32 = arith.constant 0 : i32
    %0 = arith.cmpi eq, %arg2, %c0_i32 : i32
    %1 = arith.extui %0 : i1 to i32
    %c0_i32_0 = arith.constant 0 : i32
    %2 = arith.cmpi ne, %1, %c0_i32_0 : i32
    scf.if %2 {
      %cst_9 = arith.constant 0.000000e+00 : f32
      %12 = vector.broadcast %cst_9 : f32 to vector<32x128xf32>
      %c0_10 = arith.constant 0 : index
      %c0_11 = arith.constant 0 : index
      %13 = vector.load %arg7[%c0_10, %c0_11] : memref<32x128xf32, #tpu.memory_space<vmem>>, vector<32x128xf32>
      tpu.vector_store %arg7[%c0_10, %c0_11], %12 {strides = array<i32>} : memref<32x128xf32, #tpu.memory_space<vmem>>, vector<32x128xf32>,
    } else {
    }
    %c0 = arith.constant 0 : index
    %c0_1 = arith.constant 0 : index
    %3 = vector.load %arg7[%c0, %c0_1] : memref<32x128xf32, #tpu.memory_space<vmem>>, vector<32x128xf32>
    %c0_2 = arith.constant 0 : index
    %c0_3 = arith.constant 0 : index
    %4 = vector.load %arg3[%c0_2, %c0_3] : memref<32x128xbf16, #tpu.memory_space<vmem>>, vector<32x128xbf16>
    %c0_4 = arith.constant 0 : index
    %c0_5 = arith.constant 0 : index
    %5 = vector.load %arg4[%c0_4, %c0_5] : memref<128x128xbf16, #tpu.memory_space<vmem>>, vector<128x128xbf16>
    %cst = arith.constant dense<0.000000e+00> : vector<32x128xf32>
    %6 = tpu.matmul %4, %5, %cst {dimension_numbers = #tpu.dot_dimension_numbers<[1], [0], [0], [1], [0, 0, 1, 1], [], []>} : vector<32x128xbf16>, vector<128x128xbf16>, vector<32x128xf32> -> vector<32x128xf32>
    %7 = arith.addf %3, %6 : vector<32x128xf32>
    %c0_6 = arith.constant 0 : index
    %c0_7 = arith.constant 0 : index
    %8 = vector.load %arg7[%c0_6, %c0_7] : memref<32x128xf32, #tpu.memory_space<vmem>>, vector<32x128xf32>
    tpu.vector_store %arg7[%c0_6, %c0_7], %7 {strides = array<i32>} : memref<32x128xf32, #tpu.memory_space<vmem>>, vector<32x128xf32>,
    %c2_i32 = arith.constant 2 : i32
    %9 = arith.cmpi eq, %arg2, %c2_i32 : i32
    %10 = arith.extui %9 : i1 to i32
    %c0_i32_8 = arith.constant 0 : i32
    %11 = arith.cmpi ne, %10, %c0_i32_8 : i32
    scf.if %11 {
      %c0_9 = arith.constant 0 : index
      %c0_10 = arith.constant 0 : index
      %12 = vector.load %arg7[%c0_9, %c0_10] : memref<32x128xf32, #tpu.memory_space<vmem>>, vector<32x128xf32>
      %c0_11 = arith.constant 0 : index
      %c0_12 = arith.constant 0 : index
      %13 = vector.load %arg5[%c0_11, %c0_12] : memref<1x128xf32, #tpu.memory_space<vmem>>, vector<1x128xf32>
      %14 = vector.broadcast %13 : vector<1x128xf32> to vector<32x128xf32>
      %15 = arith.addf %12, %14 : vector<32x128xf32>
      %c0_13 = arith.constant 0 : index
      %c0_14 = arith.constant 0 : index
      %16 = vector.load %arg6[%c0_13, %c0_14] : memref<32x128xf32, #tpu.memory_space<vmem>>, vector<32x128xf32>
      tpu.vector_store %arg6[%c0_13, %c0_14], %15 {strides = array<i32>} : memref<32x128xf32, #tpu.memory_space<vmem>>, vector<32x128xf32>,
    } else {
    }
    return
  }
  func.func @transform_0(%arg0: i32, %arg1: i32, %arg2: i32) -> (i32, i32) {
    %c0_i32 = arith.constant 0 : i32
    return %arg0, %arg2 : i32, i32
  }
  func.func @transform_1(%arg0: i32, %arg1: i32, %arg2: i32) -> (i32, i32) {
    %c0_i32 = arith.constant 0 : i32
    return %arg2, %arg1 : i32, i32
  }
  func.func @transform_2(%arg0: i32, %arg1: i32, %arg2: i32) -> (i32, i32) {
    %c0_i32 = arith.constant 0 : i32
    %c0_i32_0 = arith.constant 0 : i32
    return %c0_i32, %arg1 : i32, i32
  }
  func.func @transform_3(%arg0: i32, %arg1: i32, %arg2: i32) -> (i32, i32) {
    %c0_i32 = arith.constant 0 : i32
    return %arg0, %arg1 : i32, i32
  }
}

module attributes {stable_mosaic.version = 11 : i64} {
  func.func @_scale_shift_act_kernel(%arg0: i32, %arg1: memref<32x128xf32, #tpu.memory_space<vmem>>, %arg2: memref<1x128xf32, #tpu.memory_space<vmem>>, %arg3: memref<1x128xf32, #tpu.memory_space<vmem>>, %arg4: memref<32x128xf32, #tpu.memory_space<vmem>>) attributes {dimension_semantics = [#tpu.dimension_semantics<parallel>], iteration_bounds = array<i64: 1>, scalar_prefetch = 0 : i64, scratch_operands = 0 : i64, tpu.core_type = #tpu.core_type<tc>, window_params = [{transform_indices = @transform_0, window_bounds = array<i64: 32, 128>}, {pipeline_mode = #tpu.pipeline_mode<synchronous>, transform_indices = @transform_1, window_bounds = array<i64: 1, 128>}, {pipeline_mode = #tpu.pipeline_mode<synchronous>, transform_indices = @transform_2, window_bounds = array<i64: 1, 128>}, {transform_indices = @transform_3, window_bounds = array<i64: 32, 128>}]} {
    %c0 = arith.constant 0 : index
    %c0_0 = arith.constant 0 : index
    %0 = vector.load %arg1[%c0, %c0_0] : memref<32x128xf32, #tpu.memory_space<vmem>>, vector<32x128xf32>
    %c0_1 = arith.constant 0 : index
    %c0_2 = arith.constant 0 : index
    %1 = vector.load %arg2[%c0_1, %c0_2] : memref<1x128xf32, #tpu.memory_space<vmem>>, vector<1x128xf32>
    %2 = vector.broadcast %1 : vector<1x128xf32> to vector<32x128xf32>
    %3 = arith.mulf %0, %2 : vector<32x128xf32>
    %c0_3 = arith.constant 0 : index
    %c0_4 = arith.constant 0 : index
    %4 = vector.load %arg3[%c0_3, %c0_4] : memref<1x128xf32, #tpu.memory_space<vmem>>, vector<1x128xf32>
    %5 = vector.broadcast %4 : vector<1x128xf32> to vector<32x128xf32>
    %6 = arith.addf %3, %5 : vector<32x128xf32>
    %cst = arith.constant 0.000000e+00 : f32
    %7 = vector.broadcast %cst : f32 to vector<32x128xf32>
    %8 = arith.maximumf %6, %7 : vector<32x128xf32>
    %c0_5 = arith.constant 0 : index
    %c0_6 = arith.constant 0 : index
    %9 = vector.load %arg4[%c0_5, %c0_6] : memref<32x128xf32, #tpu.memory_space<vmem>>, vector<32x128xf32>
    tpu.vector_store %arg4[%c0_5, %c0_6], %8 {strides = array<i32>} : memref<32x128xf32, #tpu.memory_space<vmem>>, vector<32x128xf32>,
    return
  }
  func.func @transform_0(%arg0: i32) -> (i32, i32) {
    %c0_i32 = arith.constant 0 : i32
    %c0_i32_0 = arith.constant 0 : i32
    return %arg0, %c0_i32 : i32, i32
  }
  func.func @transform_1(%arg0: i32) -> (i32, i32) {
    %c0_i32 = arith.constant 0 : i32
    %c0_i32_0 = arith.constant 0 : i32
    %c0_i32_1 = arith.constant 0 : i32
    return %c0_i32, %c0_i32_0 : i32, i32
  }
  func.func @transform_2(%arg0: i32) -> (i32, i32) {
    %c0_i32 = arith.constant 0 : i32
    %c0_i32_0 = arith.constant 0 : i32
    %c0_i32_1 = arith.constant 0 : i32
    return %c0_i32, %c0_i32_0 : i32, i32
  }
  func.func @transform_3(%arg0: i32) -> (i32, i32) {
    %c0_i32 = arith.constant 0 : i32
    %c0_i32_0 = arith.constant 0 : i32
    return %arg0, %c0_i32 : i32, i32
  }
}

module attributes {stable_mosaic.version = 11 : i64} {
  func.func @_matmul_bias_act_kernel(%arg0: i32, %arg1: i32, %arg2: i32, %arg3: memref<32x128xbf16, #tpu.memory_space<vmem>>, %arg4: memref<128x128xbf16, #tpu.memory_space<vmem>>, %arg5: memref<1x128xf32, #tpu.memory_space<vmem>>, %arg6: memref<32x128xf32, #tpu.memory_space<vmem>>, %arg7: memref<32x128xf32, #tpu.memory_space<vmem>>) attributes {dimension_semantics = [#tpu.dimension_semantics<parallel>, #tpu.dimension_semantics<parallel>, #tpu.dimension_semantics<arbitrary>], iteration_bounds = array<i64: 1, 1, 5>, scalar_prefetch = 0 : i64, scratch_operands = 1 : i64, tpu.core_type = #tpu.core_type<tc>, window_params = [{transform_indices = @transform_0, window_bounds = array<i64: 32, 128>}, {transform_indices = @transform_1, window_bounds = array<i64: 128, 128>}, {transform_indices = @transform_2, window_bounds = array<i64: 1, 128>}, {transform_indices = @transform_3, window_bounds = array<i64: 32, 128>}]} {
    %c0_i32 = arith.constant 0 : i32
    %0 = arith.cmpi eq, %arg2, %c0_i32 : i32
    %1 = arith.extui %0 : i1 to i32
    %c0_i32_0 = arith.constant 0 : i32
    %2 = arith.cmpi ne, %1, %c0_i32_0 : i32
    scf.if %2 {
      %cst_9 = arith.constant 0.000000e+00 : f32
      %12 = vector.broadcast %cst_9 : f32 to vector<32x128xf32>
      %c0_10 = arith.constant 0 : index
      %c0_11 = arith.constant 0 : index
      %13 = vector.load %arg7[%c0_10, %c0_11] : memref<32x128xf32, #tpu.memory_space<vmem>>, vector<32x128xf32>
      tpu.vector_store %arg7[%c0_10, %c0_11], %12 {strides = array<i32>} : memref<32x128xf32, #tpu.memory_space<vmem>>, vector<32x128xf32>,
    } else {
    }
    %c0 = arith.constant 0 : index
    %c0_1 = arith.constant 0 : index
    %3 = vector.load %arg7[%c0, %c0_1] : memref<32x128xf32, #tpu.memory_space<vmem>>, vector<32x128xf32>
    %c0_2 = arith.constant 0 : index
    %c0_3 = arith.constant 0 : index
    %4 = vector.load %arg3[%c0_2, %c0_3] : memref<32x128xbf16, #tpu.memory_space<vmem>>, vector<32x128xbf16>
    %c0_4 = arith.constant 0 : index
    %c0_5 = arith.constant 0 : index
    %5 = vector.load %arg4[%c0_4, %c0_5] : memref<128x128xbf16, #tpu.memory_space<vmem>>, vector<128x128xbf16>
    %cst = arith.constant dense<0.000000e+00> : vector<32x128xf32>
    %6 = tpu.matmul %4, %5, %cst {dimension_numbers = #tpu.dot_dimension_numbers<[1], [0], [0], [1], [0, 0, 1, 1], [], []>} : vector<32x128xbf16>, vector<128x128xbf16>, vector<32x128xf32> -> vector<32x128xf32>
    %7 = arith.addf %3, %6 : vector<32x128xf32>
    %c0_6 = arith.constant 0 : index
    %c0_7 = arith.constant 0 : index
    %8 = vector.load %arg7[%c0_6, %c0_7] : memref<32x128xf32, #tpu.memory_space<vmem>>, vector<32x128xf32>
    tpu.vector_store %arg7[%c0_6, %c0_7], %7 {strides = array<i32>} : memref<32x128xf32, #tpu.memory_space<vmem>>, vector<32x128xf32>,
    %c4_i32 = arith.constant 4 : i32
    %9 = arith.cmpi eq, %arg2, %c4_i32 : i32
    %10 = arith.extui %9 : i1 to i32
    %c0_i32_8 = arith.constant 0 : i32
    %11 = arith.cmpi ne, %10, %c0_i32_8 : i32
    scf.if %11 {
      %c0_9 = arith.constant 0 : index
      %c0_10 = arith.constant 0 : index
      %12 = vector.load %arg7[%c0_9, %c0_10] : memref<32x128xf32, #tpu.memory_space<vmem>>, vector<32x128xf32>
      %c0_11 = arith.constant 0 : index
      %c0_12 = arith.constant 0 : index
      %13 = vector.load %arg5[%c0_11, %c0_12] : memref<1x128xf32, #tpu.memory_space<vmem>>, vector<1x128xf32>
      %14 = vector.broadcast %13 : vector<1x128xf32> to vector<32x128xf32>
      %15 = arith.addf %12, %14 : vector<32x128xf32>
      %c0_13 = arith.constant 0 : index
      %c0_14 = arith.constant 0 : index
      %16 = vector.load %arg6[%c0_13, %c0_14] : memref<32x128xf32, #tpu.memory_space<vmem>>, vector<32x128xf32>
      tpu.vector_store %arg6[%c0_13, %c0_14], %15 {strides = array<i32>} : memref<32x128xf32, #tpu.memory_space<vmem>>, vector<32x128xf32>,
    } else {
    }
    return
  }
  func.func @transform_0(%arg0: i32, %arg1: i32, %arg2: i32) -> (i32, i32) {
    %c0_i32 = arith.constant 0 : i32
    return %arg0, %arg2 : i32, i32
  }
  func.func @transform_1(%arg0: i32, %arg1: i32, %arg2: i32) -> (i32, i32) {
    %c0_i32 = arith.constant 0 : i32
    return %arg2, %arg1 : i32, i32
  }
  func.func @transform_2(%arg0: i32, %arg1: i32, %arg2: i32) -> (i32, i32) {
    %c0_i32 = arith.constant 0 : i32
    %c0_i32_0 = arith.constant 0 : i32
    return %c0_i32, %arg1 : i32, i32
  }
  func.func @transform_3(%arg0: i32, %arg1: i32, %arg2: i32) -> (i32, i32) {
    %c0_i32 = arith.constant 0 : i32
    return %arg0, %arg1 : i32, i32
  }
}

module attributes {stable_mosaic.version = 11 : i64} {
  func.func @_scale_shift_res_act_kernel(%arg0: i32, %arg1: memref<32x128xf32, #tpu.memory_space<vmem>>, %arg2: memref<1x128xf32, #tpu.memory_space<vmem>>, %arg3: memref<1x128xf32, #tpu.memory_space<vmem>>, %arg4: memref<32x128xf32, #tpu.memory_space<vmem>>, %arg5: memref<32x128xf32, #tpu.memory_space<vmem>>) attributes {dimension_semantics = [#tpu.dimension_semantics<parallel>], iteration_bounds = array<i64: 1>, scalar_prefetch = 0 : i64, scratch_operands = 0 : i64, tpu.core_type = #tpu.core_type<tc>, window_params = [{transform_indices = @transform_0, window_bounds = array<i64: 32, 128>}, {pipeline_mode = #tpu.pipeline_mode<synchronous>, transform_indices = @transform_1, window_bounds = array<i64: 1, 128>}, {pipeline_mode = #tpu.pipeline_mode<synchronous>, transform_indices = @transform_2, window_bounds = array<i64: 1, 128>}, {transform_indices = @transform_3, window_bounds = array<i64: 32, 128>}, {transform_indices = @transform_4, window_bounds = array<i64: 32, 128>}]} {
    %c0 = arith.constant 0 : index
    %c0_0 = arith.constant 0 : index
    %0 = vector.load %arg1[%c0, %c0_0] : memref<32x128xf32, #tpu.memory_space<vmem>>, vector<32x128xf32>
    %c0_1 = arith.constant 0 : index
    %c0_2 = arith.constant 0 : index
    %1 = vector.load %arg2[%c0_1, %c0_2] : memref<1x128xf32, #tpu.memory_space<vmem>>, vector<1x128xf32>
    %2 = vector.broadcast %1 : vector<1x128xf32> to vector<32x128xf32>
    %3 = arith.mulf %0, %2 : vector<32x128xf32>
    %c0_3 = arith.constant 0 : index
    %c0_4 = arith.constant 0 : index
    %4 = vector.load %arg3[%c0_3, %c0_4] : memref<1x128xf32, #tpu.memory_space<vmem>>, vector<1x128xf32>
    %5 = vector.broadcast %4 : vector<1x128xf32> to vector<32x128xf32>
    %6 = arith.addf %3, %5 : vector<32x128xf32>
    %c0_5 = arith.constant 0 : index
    %c0_6 = arith.constant 0 : index
    %7 = vector.load %arg4[%c0_5, %c0_6] : memref<32x128xf32, #tpu.memory_space<vmem>>, vector<32x128xf32>
    %8 = arith.addf %6, %7 : vector<32x128xf32>
    %c0_7 = arith.constant 0 : index
    %c0_8 = arith.constant 0 : index
    %9 = vector.load %arg5[%c0_7, %c0_8] : memref<32x128xf32, #tpu.memory_space<vmem>>, vector<32x128xf32>
    tpu.vector_store %arg5[%c0_7, %c0_8], %8 {strides = array<i32>} : memref<32x128xf32, #tpu.memory_space<vmem>>, vector<32x128xf32>,
    return
  }
  func.func @transform_0(%arg0: i32) -> (i32, i32) {
    %c0_i32 = arith.constant 0 : i32
    %c0_i32_0 = arith.constant 0 : i32
    return %arg0, %c0_i32 : i32, i32
  }
  func.func @transform_1(%arg0: i32) -> (i32, i32) {
    %c0_i32 = arith.constant 0 : i32
    %c0_i32_0 = arith.constant 0 : i32
    %c0_i32_1 = arith.constant 0 : i32
    return %c0_i32, %c0_i32_0 : i32, i32
  }
  func.func @transform_2(%arg0: i32) -> (i32, i32) {
    %c0_i32 = arith.constant 0 : i32
    %c0_i32_0 = arith.constant 0 : i32
    %c0_i32_1 = arith.constant 0 : i32
    return %c0_i32, %c0_i32_0 : i32, i32
  }
  func.func @transform_3(%arg0: i32) -> (i32, i32) {
    %c0_i32 = arith.constant 0 : i32
    %c0_i32_0 = arith.constant 0 : i32
    return %arg0, %c0_i32 : i32, i32
  }
  func.func @transform_4(%arg0: i32) -> (i32, i32) {
    %c0_i32 = arith.constant 0 : i32
    %c0_i32_0 = arith.constant 0 : i32
    return %arg0, %c0_i32 : i32, i32
  }
}

module attributes {stable_mosaic.version = 11 : i64} {
  func.func @_matmul_bias_act_kernel(%arg0: i32, %arg1: i32, %arg2: i32, %arg3: memref<128x128xbf16, #tpu.memory_space<vmem>>, %arg4: memref<128x128xbf16, #tpu.memory_space<vmem>>, %arg5: memref<1x128xf32, #tpu.memory_space<vmem>>, %arg6: memref<128x128xf32, #tpu.memory_space<vmem>>, %arg7: memref<128x128xf32, #tpu.memory_space<vmem>>) attributes {dimension_semantics = [#tpu.dimension_semantics<parallel>, #tpu.dimension_semantics<parallel>, #tpu.dimension_semantics<arbitrary>], iteration_bounds = array<i64: 1, 1, 5>, scalar_prefetch = 0 : i64, scratch_operands = 1 : i64, tpu.core_type = #tpu.core_type<tc>, window_params = [{transform_indices = @transform_0, window_bounds = array<i64: 128, 128>}, {transform_indices = @transform_1, window_bounds = array<i64: 128, 128>}, {transform_indices = @transform_2, window_bounds = array<i64: 1, 128>}, {transform_indices = @transform_3, window_bounds = array<i64: 128, 128>}]} {
    %c0_i32 = arith.constant 0 : i32
    %0 = arith.cmpi eq, %arg2, %c0_i32 : i32
    %1 = arith.extui %0 : i1 to i32
    %c0_i32_0 = arith.constant 0 : i32
    %2 = arith.cmpi ne, %1, %c0_i32_0 : i32
    scf.if %2 {
      %cst_9 = arith.constant 0.000000e+00 : f32
      %12 = vector.broadcast %cst_9 : f32 to vector<128x128xf32>
      %c0_10 = arith.constant 0 : index
      %c0_11 = arith.constant 0 : index
      %13 = vector.load %arg7[%c0_10, %c0_11] : memref<128x128xf32, #tpu.memory_space<vmem>>, vector<128x128xf32>
      tpu.vector_store %arg7[%c0_10, %c0_11], %12 {strides = array<i32>} : memref<128x128xf32, #tpu.memory_space<vmem>>, vector<128x128xf32>,
    } else {
    }
    %c0 = arith.constant 0 : index
    %c0_1 = arith.constant 0 : index
    %3 = vector.load %arg7[%c0, %c0_1] : memref<128x128xf32, #tpu.memory_space<vmem>>, vector<128x128xf32>
    %c0_2 = arith.constant 0 : index
    %c0_3 = arith.constant 0 : index
    %4 = vector.load %arg3[%c0_2, %c0_3] : memref<128x128xbf16, #tpu.memory_space<vmem>>, vector<128x128xbf16>
    %c0_4 = arith.constant 0 : index
    %c0_5 = arith.constant 0 : index
    %5 = vector.load %arg4[%c0_4, %c0_5] : memref<128x128xbf16, #tpu.memory_space<vmem>>, vector<128x128xbf16>
    %cst = arith.constant dense<0.000000e+00> : vector<128x128xf32>
    %6 = tpu.matmul %4, %5, %cst {dimension_numbers = #tpu.dot_dimension_numbers<[1], [0], [0], [1], [0, 0, 1, 1], [], []>} : vector<128x128xbf16>, vector<128x128xbf16>, vector<128x128xf32> -> vector<128x128xf32>
    %7 = arith.addf %3, %6 : vector<128x128xf32>
    %c0_6 = arith.constant 0 : index
    %c0_7 = arith.constant 0 : index
    %8 = vector.load %arg7[%c0_6, %c0_7] : memref<128x128xf32, #tpu.memory_space<vmem>>, vector<128x128xf32>
    tpu.vector_store %arg7[%c0_6, %c0_7], %7 {strides = array<i32>} : memref<128x128xf32, #tpu.memory_space<vmem>>, vector<128x128xf32>,
    %c4_i32 = arith.constant 4 : i32
    %9 = arith.cmpi eq, %arg2, %c4_i32 : i32
    %10 = arith.extui %9 : i1 to i32
    %c0_i32_8 = arith.constant 0 : i32
    %11 = arith.cmpi ne, %10, %c0_i32_8 : i32
    scf.if %11 {
      %c0_9 = arith.constant 0 : index
      %c0_10 = arith.constant 0 : index
      %12 = vector.load %arg7[%c0_9, %c0_10] : memref<128x128xf32, #tpu.memory_space<vmem>>, vector<128x128xf32>
      %c0_11 = arith.constant 0 : index
      %c0_12 = arith.constant 0 : index
      %13 = vector.load %arg5[%c0_11, %c0_12] : memref<1x128xf32, #tpu.memory_space<vmem>>, vector<1x128xf32>
      %14 = vector.broadcast %13 : vector<1x128xf32> to vector<128x128xf32>
      %15 = arith.addf %12, %14 : vector<128x128xf32>
      %c0_13 = arith.constant 0 : index
      %c0_14 = arith.constant 0 : index
      %16 = vector.load %arg6[%c0_13, %c0_14] : memref<128x128xf32, #tpu.memory_space<vmem>>, vector<128x128xf32>
      tpu.vector_store %arg6[%c0_13, %c0_14], %15 {strides = array<i32>} : memref<128x128xf32, #tpu.memory_space<vmem>>, vector<128x128xf32>,
    } else {
    }
    return
  }
  func.func @transform_0(%arg0: i32, %arg1: i32, %arg2: i32) -> (i32, i32) {
    %c0_i32 = arith.constant 0 : i32
    return %arg0, %arg2 : i32, i32
  }
  func.func @transform_1(%arg0: i32, %arg1: i32, %arg2: i32) -> (i32, i32) {
    %c0_i32 = arith.constant 0 : i32
    return %arg2, %arg1 : i32, i32
  }
  func.func @transform_2(%arg0: i32, %arg1: i32, %arg2: i32) -> (i32, i32) {
    %c0_i32 = arith.constant 0 : i32
    %c0_i32_0 = arith.constant 0 : i32
    return %c0_i32, %arg1 : i32, i32
  }
  func.func @transform_3(%arg0: i32, %arg1: i32, %arg2: i32) -> (i32, i32) {
    %c0_i32 = arith.constant 0 : i32
    return %arg0, %arg1 : i32, i32
  }
}

module attributes {stable_mosaic.version = 11 : i64} {
  func.func @_matmul_bias_act_kernel(%arg0: i32, %arg1: i32, %arg2: i32, %arg3: memref<256x128xbf16, #tpu.memory_space<vmem>>, %arg4: memref<128x128xbf16, #tpu.memory_space<vmem>>, %arg5: memref<1x128xf32, #tpu.memory_space<vmem>>, %arg6: memref<256x128xf32, #tpu.memory_space<vmem>>, %arg7: memref<256x128xf32, #tpu.memory_space<vmem>>) attributes {dimension_semantics = [#tpu.dimension_semantics<parallel>, #tpu.dimension_semantics<parallel>, #tpu.dimension_semantics<arbitrary>], iteration_bounds = array<i64: 2, 1, 3>, scalar_prefetch = 0 : i64, scratch_operands = 1 : i64, tpu.core_type = #tpu.core_type<tc>, window_params = [{transform_indices = @transform_0, window_bounds = array<i64: 256, 128>}, {transform_indices = @transform_1, window_bounds = array<i64: 128, 128>}, {transform_indices = @transform_2, window_bounds = array<i64: 1, 128>}, {transform_indices = @transform_3, window_bounds = array<i64: 256, 128>}]} {
    %c0_i32 = arith.constant 0 : i32
    %0 = arith.cmpi eq, %arg2, %c0_i32 : i32
    %1 = arith.extui %0 : i1 to i32
    %c0_i32_0 = arith.constant 0 : i32
    %2 = arith.cmpi ne, %1, %c0_i32_0 : i32
    scf.if %2 {
      %cst_9 = arith.constant 0.000000e+00 : f32
      %12 = vector.broadcast %cst_9 : f32 to vector<256x128xf32>
      %c0_10 = arith.constant 0 : index
      %c0_11 = arith.constant 0 : index
      %13 = vector.load %arg7[%c0_10, %c0_11] : memref<256x128xf32, #tpu.memory_space<vmem>>, vector<256x128xf32>
      tpu.vector_store %arg7[%c0_10, %c0_11], %12 {strides = array<i32>} : memref<256x128xf32, #tpu.memory_space<vmem>>, vector<256x128xf32>,
    } else {
    }
    %c0 = arith.constant 0 : index
    %c0_1 = arith.constant 0 : index
    %3 = vector.load %arg7[%c0, %c0_1] : memref<256x128xf32, #tpu.memory_space<vmem>>, vector<256x128xf32>
    %c0_2 = arith.constant 0 : index
    %c0_3 = arith.constant 0 : index
    %4 = vector.load %arg3[%c0_2, %c0_3] : memref<256x128xbf16, #tpu.memory_space<vmem>>, vector<256x128xbf16>
    %c0_4 = arith.constant 0 : index
    %c0_5 = arith.constant 0 : index
    %5 = vector.load %arg4[%c0_4, %c0_5] : memref<128x128xbf16, #tpu.memory_space<vmem>>, vector<128x128xbf16>
    %cst = arith.constant dense<0.000000e+00> : vector<256x128xf32>
    %6 = tpu.matmul %4, %5, %cst {dimension_numbers = #tpu.dot_dimension_numbers<[1], [0], [0], [1], [0, 0, 1, 1], [], []>} : vector<256x128xbf16>, vector<128x128xbf16>, vector<256x128xf32> -> vector<256x128xf32>
    %7 = arith.addf %3, %6 : vector<256x128xf32>
    %c0_6 = arith.constant 0 : index
    %c0_7 = arith.constant 0 : index
    %8 = vector.load %arg7[%c0_6, %c0_7] : memref<256x128xf32, #tpu.memory_space<vmem>>, vector<256x128xf32>
    tpu.vector_store %arg7[%c0_6, %c0_7], %7 {strides = array<i32>} : memref<256x128xf32, #tpu.memory_space<vmem>>, vector<256x128xf32>,
    %c2_i32 = arith.constant 2 : i32
    %9 = arith.cmpi eq, %arg2, %c2_i32 : i32
    %10 = arith.extui %9 : i1 to i32
    %c0_i32_8 = arith.constant 0 : i32
    %11 = arith.cmpi ne, %10, %c0_i32_8 : i32
    scf.if %11 {
      %c0_9 = arith.constant 0 : index
      %c0_10 = arith.constant 0 : index
      %12 = vector.load %arg7[%c0_9, %c0_10] : memref<256x128xf32, #tpu.memory_space<vmem>>, vector<256x128xf32>
      %c0_11 = arith.constant 0 : index
      %c0_12 = arith.constant 0 : index
      %13 = vector.load %arg5[%c0_11, %c0_12] : memref<1x128xf32, #tpu.memory_space<vmem>>, vector<1x128xf32>
      %14 = vector.broadcast %13 : vector<1x128xf32> to vector<256x128xf32>
      %15 = arith.addf %12, %14 : vector<256x128xf32>
      %c0_13 = arith.constant 0 : index
      %c0_14 = arith.constant 0 : index
      %16 = vector.load %arg6[%c0_13, %c0_14] : memref<256x128xf32, #tpu.memory_space<vmem>>, vector<256x128xf32>
      tpu.vector_store %arg6[%c0_13, %c0_14], %15 {strides = array<i32>} : memref<256x128xf32, #tpu.memory_space<vmem>>, vector<256x128xf32>,
    } else {
    }
    return
  }
  func.func @transform_0(%arg0: i32, %arg1: i32, %arg2: i32) -> (i32, i32) {
    %c0_i32 = arith.constant 0 : i32
    return %arg0, %arg2 : i32, i32
  }
  func.func @transform_1(%arg0: i32, %arg1: i32, %arg2: i32) -> (i32, i32) {
    %c0_i32 = arith.constant 0 : i32
    return %arg2, %arg1 : i32, i32
  }
  func.func @transform_2(%arg0: i32, %arg1: i32, %arg2: i32) -> (i32, i32) {
    %c0_i32 = arith.constant 0 : i32
    %c0_i32_0 = arith.constant 0 : i32
    return %c0_i32, %arg1 : i32, i32
  }
  func.func @transform_3(%arg0: i32, %arg1: i32, %arg2: i32) -> (i32, i32) {
    %c0_i32 = arith.constant 0 : i32
    return %arg0, %arg1 : i32, i32
  }
}

module attributes {stable_mosaic.version = 11 : i64} {
  func.func @_matmul_bias_act_kernel(%arg0: i32, %arg1: i32, %arg2: i32, %arg3: memref<256x128xbf16, #tpu.memory_space<vmem>>, %arg4: memref<128x128xbf16, #tpu.memory_space<vmem>>, %arg5: memref<1x128xf32, #tpu.memory_space<vmem>>, %arg6: memref<256x128xf32, #tpu.memory_space<vmem>>, %arg7: memref<256x128xf32, #tpu.memory_space<vmem>>) attributes {dimension_semantics = [#tpu.dimension_semantics<parallel>, #tpu.dimension_semantics<parallel>, #tpu.dimension_semantics<arbitrary>], iteration_bounds = array<i64: 2, 1, 7>, scalar_prefetch = 0 : i64, scratch_operands = 1 : i64, tpu.core_type = #tpu.core_type<tc>, window_params = [{transform_indices = @transform_0, window_bounds = array<i64: 256, 128>}, {transform_indices = @transform_1, window_bounds = array<i64: 128, 128>}, {transform_indices = @transform_2, window_bounds = array<i64: 1, 128>}, {transform_indices = @transform_3, window_bounds = array<i64: 256, 128>}]} {
    %c0_i32 = arith.constant 0 : i32
    %0 = arith.cmpi eq, %arg2, %c0_i32 : i32
    %1 = arith.extui %0 : i1 to i32
    %c0_i32_0 = arith.constant 0 : i32
    %2 = arith.cmpi ne, %1, %c0_i32_0 : i32
    scf.if %2 {
      %cst_9 = arith.constant 0.000000e+00 : f32
      %12 = vector.broadcast %cst_9 : f32 to vector<256x128xf32>
      %c0_10 = arith.constant 0 : index
      %c0_11 = arith.constant 0 : index
      %13 = vector.load %arg7[%c0_10, %c0_11] : memref<256x128xf32, #tpu.memory_space<vmem>>, vector<256x128xf32>
      tpu.vector_store %arg7[%c0_10, %c0_11], %12 {strides = array<i32>} : memref<256x128xf32, #tpu.memory_space<vmem>>, vector<256x128xf32>,
    } else {
    }
    %c0 = arith.constant 0 : index
    %c0_1 = arith.constant 0 : index
    %3 = vector.load %arg7[%c0, %c0_1] : memref<256x128xf32, #tpu.memory_space<vmem>>, vector<256x128xf32>
    %c0_2 = arith.constant 0 : index
    %c0_3 = arith.constant 0 : index
    %4 = vector.load %arg3[%c0_2, %c0_3] : memref<256x128xbf16, #tpu.memory_space<vmem>>, vector<256x128xbf16>
    %c0_4 = arith.constant 0 : index
    %c0_5 = arith.constant 0 : index
    %5 = vector.load %arg4[%c0_4, %c0_5] : memref<128x128xbf16, #tpu.memory_space<vmem>>, vector<128x128xbf16>
    %cst = arith.constant dense<0.000000e+00> : vector<256x128xf32>
    %6 = tpu.matmul %4, %5, %cst {dimension_numbers = #tpu.dot_dimension_numbers<[1], [0], [0], [1], [0, 0, 1, 1], [], []>} : vector<256x128xbf16>, vector<128x128xbf16>, vector<256x128xf32> -> vector<256x128xf32>
    %7 = arith.addf %3, %6 : vector<256x128xf32>
    %c0_6 = arith.constant 0 : index
    %c0_7 = arith.constant 0 : index
    %8 = vector.load %arg7[%c0_6, %c0_7] : memref<256x128xf32, #tpu.memory_space<vmem>>, vector<256x128xf32>
    tpu.vector_store %arg7[%c0_6, %c0_7], %7 {strides = array<i32>} : memref<256x128xf32, #tpu.memory_space<vmem>>, vector<256x128xf32>,
    %c6_i32 = arith.constant 6 : i32
    %9 = arith.cmpi eq, %arg2, %c6_i32 : i32
    %10 = arith.extui %9 : i1 to i32
    %c0_i32_8 = arith.constant 0 : i32
    %11 = arith.cmpi ne, %10, %c0_i32_8 : i32
    scf.if %11 {
      %c0_9 = arith.constant 0 : index
      %c0_10 = arith.constant 0 : index
      %12 = vector.load %arg7[%c0_9, %c0_10] : memref<256x128xf32, #tpu.memory_space<vmem>>, vector<256x128xf32>
      %c0_11 = arith.constant 0 : index
      %c0_12 = arith.constant 0 : index
      %13 = vector.load %arg5[%c0_11, %c0_12] : memref<1x128xf32, #tpu.memory_space<vmem>>, vector<1x128xf32>
      %14 = vector.broadcast %13 : vector<1x128xf32> to vector<256x128xf32>
      %15 = arith.addf %12, %14 : vector<256x128xf32>
      %16 = math.tanh %15 : vector<256x128xf32>
      %c0_13 = arith.constant 0 : index
      %c0_14 = arith.constant 0 : index
      %17 = vector.load %arg6[%c0_13, %c0_14] : memref<256x128xf32, #tpu.memory_space<vmem>>, vector<256x128xf32>
      tpu.vector_store %arg6[%c0_13, %c0_14], %16 {strides = array<i32>} : memref<256x128xf32, #tpu.memory_space<vmem>>, vector<256x128xf32>,
    } else {
    }
    return
  }
  func.func @transform_0(%arg0: i32, %arg1: i32, %arg2: i32) -> (i32, i32) {
    %c0_i32 = arith.constant 0 : i32
    return %arg0, %arg2 : i32, i32
  }
  func.func @transform_1(%arg0: i32, %arg1: i32, %arg2: i32) -> (i32, i32) {
    %c0_i32 = arith.constant 0 : i32
    return %arg2, %arg1 : i32, i32
  }
  func.func @transform_2(%arg0: i32, %arg1: i32, %arg2: i32) -> (i32, i32) {
    %c0_i32 = arith.constant 0 : i32
    %c0_i32_0 = arith.constant 0 : i32
    return %c0_i32, %arg1 : i32, i32
  }
  func.func @transform_3(%arg0: i32, %arg1: i32, %arg2: i32) -> (i32, i32) {
    %c0_i32 = arith.constant 0 : i32
    return %arg0, %arg1 : i32, i32
  }
}

</mosaic_0001>

<bundles_post_ra>
// kernel: global_generator_forward.30
= control target key start
LH: loop header
LB: loop body
LE: loop exit
PB: predicated region body
PF: predicated region fallthrough
CT: control target
= control target key end

     0   :  { %s896_s0 = inlined_call_operand.vmem [shape: f32[512,128], index: 0, kind: input, shape index: {}]   ;;  %s897_s1 = inlined_call_operand.vmem [shape: f32[1,128], index: 1, kind: input, shape index: {}]   ;;  %s898_s2 = inlined_call_operand.vmem [shape: f32[1,128], index: 2, kind: input, shape index: {}]   ;;  %s899_s3 = inlined_call_operand.vmem [shape: f32[512,128], index: 3, kind: output, shape index: {}]  }
   0x1   :  { %v14_v0 = vld [vmem:[%s896_s0] sm:$0xff]  ;;  %v15_v4 = vld [vmem:[%s896_s0 + $0x8] sm:$0xff]  ;;  %v16_v5 = vld [vmem:[%s896_s0 + $0x10] sm:$0xff] }
   0x2   :  { %v380_v1 = vld [vmem:[%s897_s1] ss:$0 sm:$0xff]  ;;  %v17_v6 = vld [vmem:[%s896_s0 + $0x18] sm:$0xff]  ;;  %v19_v11 = vld [vmem:[%s896_s0 + $0x28] sm:$0xff] }
   0x3   :  { %v385_v2 = vld [vmem:[%s898_s2] ss:$0 sm:$0xff]  ;;  %v85_v3 = vmul.f32 %v380_v1, %v14_v0  ;;  %v86_v7 = vmul.f32 %v380_v1, %v15_v4  ;;  %v87_v8 = vmul.f32 %v380_v1, %v16_v5  ;;  %v88_v9 = vmul.f32 %v380_v1, %v17_v6  ;;  %v20_v12 = vld [vmem:[%s896_s0 + $0x30] sm:$0xff]  ;;  %v21_v17 = vld [vmem:[%s896_s0 + $0x38] sm:$0xff] }
   0x4   :  { %v18_v10 = vld [vmem:[%s896_s0 + $0x20] sm:$0xff]  ;;  %v90_v15 = vmul.f32 %v380_v1, %v19_v11  ;;  %v91_v16 = vmul.f32 %v380_v1, %v20_v12  ;;  %v92_v21 = vmul.f32 %v380_v1, %v21_v17  ;;  %v23_v27 = vld [vmem:[%s896_s0 + $0x48] sm:$0xff]  ;;  %v24_v28 = vld [vmem:[%s896_s0 + $0x50] sm:$0xff] }
   0x5   :  { %v156_v13 = vadd.f32 %v385_v2, %v85_v3  ;;  %v89_v14 = vmul.f32 %v380_v1, %v18_v10  ;;  %v157_v18 = vadd.f32 %v385_v2, %v86_v7  ;;  %v158_v19 = vadd.f32 %v385_v2, %v87_v8  ;;  %v22_v22 = vld [vmem:[%s896_s0 + $0x40] sm:$0xff]  ;;  %v25_v29 = vld [vmem:[%s896_s0 + $0x58] sm:$0xff]  ;;  %v27_v35 = vld [vmem:[%s896_s0 + $0x68] sm:$0xff] }
   0x6   :  { %v159_v20 = vadd.f32 %v385_v2, %v88_v9  ;;  %v161_v25 = vadd.f32 %v385_v2, %v90_v15  ;;  %v162_v26 = vadd.f32 %v385_v2, %v91_v16  ;;  %v163_v33 = vadd.f32 %v385_v2, %v92_v21  ;;  %v26_v34 = vld [vmem:[%s896_s0 + $0x60] sm:$0xff]  ;;  %v28_v36 = vld [vmem:[%s896_s0 + $0x70] sm:$0xff]  ;;  %v29_v41 = vld [vmem:[%s896_s0 + $0x78] sm:$0xff] }
   0x7   :  { %v220_v23 = vmax.f32 %v156_v13, 0.0  ;;  %v160_v24 = vadd.f32 %v385_v2, %v89_v14  ;;  %v221_v30 = vmax.f32 %v157_v18, 0.0  ;;  %v222_v31 = vmax.f32 %v158_v19, 0.0  ;;  %v30_v54 = vld [vmem:[%s896_s0 + $0x80] sm:$0xff]  ;;  %v31_v59 = vld [vmem:[%s896_s0 + $0x88] sm:$0xff]  ;;  %v32_v60 = vld [vmem:[%s896_s0 + $0x90] sm:$0xff] }
   0x8   :  { %v223_v32 = vmax.f32 %v159_v20, 0.0  ;;  %v225_v38 = vmax.f32 %v161_v25, 0.0  ;;  %v226_v39 = vmax.f32 %v162_v26, 0.0  ;;  %v93_v40 = vmul.f32 %v380_v1, %v22_v22  ;;  %v33_v61 = vld [vmem:[%s896_s0 + $0x98] sm:$0xff]  ;;  %v34_v4 = vld [vmem:[%s896_s0 + $0xa0] sm:$0xff]  ;;  %v35_v5 = vld [vmem:[%s896_s0 + $0xa8] sm:$0xff] }
   0x9   :  { %284 = vst [vmem:[%s899_s3] sm:$0xff] %v220_v23  ;;  %v224_v37 = vmax.f32 %v160_v24, 0.0  ;;  %285 = vst [vmem:[%s899_s3 + $0x8] sm:$0xff] %v221_v30  ;;  %v227_v42 = vmax.f32 %v163_v33, 0.0  ;;  %v94_v43 = vmul.f32 %v380_v1, %v23_v27  ;;  %v95_v44 = vmul.f32 %v380_v1, %v24_v28  ;;  %v36_v6 = vld [vmem:[%s896_s0 + $0xb0] sm:$0xff]  ;;  %v37_v11 = vld [vmem:[%s896_s0 + $0xb8] sm:$0xff] }
   0xa   :  { %286 = vst [vmem:[%s899_s3 + $0x10] sm:$0xff] %v222_v31  ;;  %287 = vst [vmem:[%s899_s3 + $0x18] sm:$0xff] %v223_v32  ;;  %v96_v45 = vmul.f32 %v380_v1, %v25_v29  ;;  %v164_v46 = vadd.f32 %v385_v2, %v93_v40  ;;  %v97_v47 = vmul.f32 %v380_v1, %v26_v34  ;;  %v38_v24 = vld [vmem:[%s896_s0 + $0xc0] sm:$0xff]  ;;  %v39_v29 = vld [vmem:[%s896_s0 + $0xc8] sm:$0xff] }
   0xb   :  { %288 = vst [vmem:[%s899_s3 + $0x20] sm:$0xff] %v224_v37  ;;  %289 = vst [vmem:[%s899_s3 + $0x28] sm:$0xff] %v225_v38  ;;  %v98_v48 = vmul.f32 %v380_v1, %v27_v35  ;;  %v99_v49 = vmul.f32 %v380_v1, %v28_v36  ;;  %v165_v50 = vadd.f32 %v385_v2, %v94_v43  ;;  %v40_v30 = vld [vmem:[%s896_s0 + $0xd0] sm:$0xff]  ;;  %v41_v31 = vld [vmem:[%s896_s0 + $0xd8] sm:$0xff] }
   0xc   :  { %290 = vst [vmem:[%s899_s3 + $0x30] sm:$0xff] %v226_v39  ;;  %291 = vst [vmem:[%s899_s3 + $0x38] sm:$0xff] %v227_v42  ;;  %v166_v51 = vadd.f32 %v385_v2, %v95_v44  ;;  %v167_v52 = vadd.f32 %v385_v2, %v96_v45  ;;  %v100_v53 = vmul.f32 %v380_v1, %v29_v41  ;;  %v228_v55 = vmax.f32 %v164_v46, 0.0  ;;  %v42_v36 = vld [vmem:[%s896_s0 + $0xe0] sm:$0xff]  ;;  %v43_v37 = vld [vmem:[%s896_s0 + $0xe8] sm:$0xff] }
   0xd   :  { %v168_v56 = vadd.f32 %v385_v2, %v97_v47  ;;  %v169_v57 = vadd.f32 %v385_v2, %v98_v48  ;;  %v170_v58 = vadd.f32 %v385_v2, %v99_v49  ;;  %v229_v62 = vmax.f32 %v165_v50, 0.0  ;;  %v44_v38 = vld [vmem:[%s896_s0 + $0xf0] sm:$0xff]  ;;  %v45_v43 = vld [vmem:[%s896_s0 + $0xf8] sm:$0xff] }
   0xe   :  { %v230_v63 = vmax.f32 %v166_v51, 0.0  ;;  %v231_v0 = vmax.f32 %v167_v52, 0.0  ;;  %v171_v3 = vadd.f32 %v385_v2, %v100_v53  ;;  %292 = vst [vmem:[%s899_s3 + $0x40] sm:$0xff] %v228_v55  ;;  %v101_v10 = vmul.f32 %v380_v1, %v30_v54 }
   0xf   :  { %v232_v7 = vmax.f32 %v168_v56, 0.0  ;;  %v233_v8 = vmax.f32 %v169_v57, 0.0  ;;  %v234_v9 = vmax.f32 %v170_v58, 0.0  ;;  %293 = vst [vmem:[%s899_s3 + $0x48] sm:$0xff] %v229_v62  ;;  %v102_v13 = vmul.f32 %v380_v1, %v31_v59  ;;  %v46_v56 = vld [vmem:[%s896_s0 + $0x100] sm:$0xff]  ;;  %v48_v62 = vld [vmem:[%s896_s0 + $0x110] sm:$0xff] }
  0x10   :  { %294 = vst [vmem:[%s899_s3 + $0x50] sm:$0xff] %v230_v63  ;;  %295 = vst [vmem:[%s899_s3 + $0x58] sm:$0xff] %v231_v0  ;;  %v235_v12 = vmax.f32 %v171_v3, 0.0  ;;  %v103_v14 = vmul.f32 %v380_v1, %v32_v60  ;;  %v104_v15 = vmul.f32 %v380_v1, %v33_v61  ;;  %v172_v16 = vadd.f32 %v385_v2, %v101_v10  ;;  %v47_v61 = vld [vmem:[%s896_s0 + $0x108] sm:$0xff]  ;;  %v49_v63 = vld [vmem:[%s896_s0 + $0x118] sm:$0xff] }
  0x11   :  { %296 = vst [vmem:[%s899_s3 + $0x60] sm:$0xff] %v232_v7  ;;  %297 = vst [vmem:[%s899_s3 + $0x68] sm:$0xff] %v233_v8  ;;  %v105_v17 = vmul.f32 %v380_v1, %v34_v4  ;;  %v106_v18 = vmul.f32 %v380_v1, %v35_v5  ;;  %v107_v19 = vmul.f32 %v380_v1, %v36_v6  ;;  %v50_v6 = vld [vmem:[%s896_s0 + $0x120] sm:$0xff]  ;;  %v51_v7 = vld [vmem:[%s896_s0 + $0x128] sm:$0xff] }
  0x12   :  { %298 = vst [vmem:[%s899_s3 + $0x70] sm:$0xff] %v234_v9  ;;  %299 = vst [vmem:[%s899_s3 + $0x78] sm:$0xff] %v235_v12  ;;  %v173_v20 = vadd.f32 %v385_v2, %v102_v13  ;;  %v174_v21 = vadd.f32 %v385_v2, %v103_v14  ;;  %v175_v22 = vadd.f32 %v385_v2, %v104_v15  ;;  %v236_v25 = vmax.f32 %v172_v16, 0.0  ;;  %v52_v8 = vld [vmem:[%s896_s0 + $0x130] sm:$0xff]  ;;  %v53_v13 = vld [vmem:[%s896_s0 + $0x138] sm:$0xff] }
  0x13   :  { %v108_v23 = vmul.f32 %v380_v1, %v37_v11  ;;  %v176_v26 = vadd.f32 %v385_v2, %v105_v17  ;;  %v177_v27 = vadd.f32 %v385_v2, %v106_v18  ;;  %v178_v28 = vadd.f32 %v385_v2, %v107_v19 }
  0x14   :  { %v237_v32 = vmax.f32 %v173_v20, 0.0  ;;  %v238_v33 = vmax.f32 %v174_v21, 0.0  ;;  %v239_v34 = vmax.f32 %v175_v22, 0.0  ;;  %300 = vst [vmem:[%s899_s3 + $0x80] sm:$0xff] %v236_v25  ;;  %v109_v42 = vmul.f32 %v380_v1, %v38_v24 }
  0x15   :  { %v179_v35 = vadd.f32 %v385_v2, %v108_v23  ;;  %v240_v39 = vmax.f32 %v176_v26, 0.0  ;;  %v241_v40 = vmax.f32 %v177_v27, 0.0  ;;  %v242_v41 = vmax.f32 %v178_v28, 0.0  ;;  %v54_v26 = vld [vmem:[%s896_s0 + $0x140] sm:$0xff] }
  0x16   :  { %301 = vst [vmem:[%s899_s3 + $0x88] sm:$0xff] %v237_v32  ;;  %302 = vst [vmem:[%s899_s3 + $0x90] sm:$0xff] %v238_v33  ;;  %v110_v45 = vmul.f32 %v380_v1, %v39_v29  ;;  %v111_v46 = vmul.f32 %v380_v1, %v40_v30  ;;  %v112_v47 = vmul.f32 %v380_v1, %v41_v31  ;;  %v55_v31 = vld [vmem:[%s896_s0 + $0x148] sm:$0xff]  ;;  %v56_v32 = vld [vmem:[%s896_s0 + $0x150] sm:$0xff] }
  0x17   :  { %303 = vst [vmem:[%s899_s3 + $0x98] sm:$0xff] %v239_v34  ;;  %v243_v44 = vmax.f32 %v179_v35, 0.0  ;;  %304 = vst [vmem:[%s899_s3 + $0xa0] sm:$0xff] %v240_v39  ;;  %v180_v48 = vadd.f32 %v385_v2, %v109_v42  ;;  %v113_v49 = vmul.f32 %v380_v1, %v42_v36  ;;  %v114_v50 = vmul.f32 %v380_v1, %v43_v37  ;;  %v57_v33 = vld [vmem:[%s896_s0 + $0x158] sm:$0xff]  ;;  %v59_v39 = vld [vmem:[%s896_s0 + $0x168] sm:$0xff] }
  0x18   :  { %305 = vst [vmem:[%s899_s3 + $0xa8] sm:$0xff] %v241_v40  ;;  %306 = vst [vmem:[%s899_s3 + $0xb0] sm:$0xff] %v242_v41  ;;  %v115_v51 = vmul.f32 %v380_v1, %v44_v38  ;;  %v181_v52 = vadd.f32 %v385_v2, %v110_v45  ;;  %v182_v53 = vadd.f32 %v385_v2, %v111_v46  ;;  %v58_v38 = vld [vmem:[%s896_s0 + $0x160] sm:$0xff]  ;;  %v60_v40 = vld [vmem:[%s896_s0 + $0x170] sm:$0xff] }
  0x19   :  { %307 = vst [vmem:[%s899_s3 + $0xb8] sm:$0xff] %v243_v44  ;;  %v183_v54 = vadd.f32 %v385_v2, %v112_v47  ;;  %v116_v55 = vmul.f32 %v380_v1, %v45_v43  ;;  %v244_v57 = vmax.f32 %v180_v48, 0.0  ;;  %v184_v58 = vadd.f32 %v385_v2, %v113_v49  ;;  %v61_v45 = vld [vmem:[%s896_s0 + $0x178] sm:$0xff] }
  0x1a   :  { %v185_v59 = vadd.f32 %v385_v2, %v114_v50  ;;  %v186_v60 = vadd.f32 %v385_v2, %v115_v51  ;;  %v245_v0 = vmax.f32 %v181_v52, 0.0  ;;  %v246_v3 = vmax.f32 %v182_v53, 0.0 }
  0x1b   :  { %v247_v4 = vmax.f32 %v183_v54, 0.0  ;;  %v187_v5 = vadd.f32 %v385_v2, %v116_v55  ;;  %308 = vst [vmem:[%s899_s3 + $0xc0] sm:$0xff] %v244_v57  ;;  %v248_v9 = vmax.f32 %v184_v58, 0.0  ;;  %v117_v12 = vmul.f32 %v380_v1, %v46_v56  ;;  %v62_v58 = vld [vmem:[%s896_s0 + $0x180] sm:$0xff] }
  0x1c   :  { %v249_v10 = vmax.f32 %v185_v59, 0.0  ;;  %v250_v11 = vmax.f32 %v186_v60, 0.0  ;;  %309 = vst [vmem:[%s899_s3 + $0xc8] sm:$0xff] %v245_v0  ;;  %310 = vst [vmem:[%s899_s3 + $0xd0] sm:$0xff] %v246_v3  ;;  %v118_v15 = vmul.f32 %v380_v1, %v47_v61  ;;  %v119_v16 = vmul.f32 %v380_v1, %v48_v62  ;;  %v64_v0 = vld [vmem:[%s896_s0 + $0x190] sm:$0xff]  ;;  %v65_v3 = vld [vmem:[%s896_s0 + $0x198] sm:$0xff] }
  0x1d   :  { %311 = vst [vmem:[%s899_s3 + $0xd8] sm:$0xff] %v247_v4  ;;  %v251_v14 = vmax.f32 %v187_v5, 0.0  ;;  %v120_v17 = vmul.f32 %v380_v1, %v49_v63  ;;  %312 = vst [vmem:[%s899_s3 + $0xe0] sm:$0xff] %v248_v9  ;;  %v188_v18 = vadd.f32 %v385_v2, %v117_v12  ;;  %v121_v19 = vmul.f32 %v380_v1, %v50_v6  ;;  %v63_v63 = vld [vmem:[%s896_s0 + $0x188] sm:$0xff] }
  0x1e   :  { %313 = vst [vmem:[%s899_s3 + $0xe8] sm:$0xff] %v249_v10  ;;  %314 = vst [vmem:[%s899_s3 + $0xf0] sm:$0xff] %v250_v11  ;;  %v122_v20 = vmul.f32 %v380_v1, %v51_v7  ;;  %v123_v21 = vmul.f32 %v380_v1, %v52_v8  ;;  %v189_v22 = vadd.f32 %v385_v2, %v118_v15  ;;  %v66_v8 = vld [vmem:[%s896_s0 + $0x1a0] sm:$0xff]  ;;  %v67_v9 = vld [vmem:[%s896_s0 + $0x1a8] sm:$0xff] }
  0x1f   :  { %315 = vst [vmem:[%s899_s3 + $0xf8] sm:$0xff] %v251_v14  ;;  %v190_v23 = vadd.f32 %v385_v2, %v119_v16  ;;  %v191_v24 = vadd.f32 %v385_v2, %v120_v17  ;;  %v124_v25 = vmul.f32 %v380_v1, %v53_v13  ;;  %v252_v27 = vmax.f32 %v188_v18, 0.0  ;;  %v68_v10 = vld [vmem:[%s896_s0 + $0x1b0] sm:$0xff]  ;;  %v69_v15 = vld [vmem:[%s896_s0 + $0x1b8] sm:$0xff] }
  0x20   :  { %v192_v28 = vadd.f32 %v385_v2, %v121_v19  ;;  %v193_v29 = vadd.f32 %v385_v2, %v122_v20  ;;  %v194_v30 = vadd.f32 %v385_v2, %v123_v21  ;;  %v253_v34 = vmax.f32 %v189_v22, 0.0 }
  0x21   :  { %v254_v35 = vmax.f32 %v190_v23, 0.0  ;;  %v255_v36 = vmax.f32 %v191_v24, 0.0  ;;  %v195_v37 = vadd.f32 %v385_v2, %v124_v25  ;;  %316 = vst [vmem:[%s899_s3 + $0x100] sm:$0xff] %v252_v27  ;;  %v125_v44 = vmul.f32 %v380_v1, %v54_v26 }
  0x22   :  { %v256_v41 = vmax.f32 %v192_v28, 0.0  ;;  %v257_v42 = vmax.f32 %v193_v29, 0.0  ;;  %v258_v43 = vmax.f32 %v194_v30, 0.0  ;;  %317 = vst [vmem:[%s899_s3 + $0x108] sm:$0xff] %v253_v34  ;;  %v126_v47 = vmul.f32 %v380_v1, %v55_v31  ;;  %v70_v28 = vld [vmem:[%s896_s0 + $0x1c0] sm:$0xff]  ;;  %v72_v34 = vld [vmem:[%s896_s0 + $0x1d0] sm:$0xff] }
  0x23   :  { %318 = vst [vmem:[%s899_s3 + $0x110] sm:$0xff] %v254_v35  ;;  %319 = vst [vmem:[%s899_s3 + $0x118] sm:$0xff] %v255_v36  ;;  %v259_v46 = vmax.f32 %v195_v37, 0.0  ;;  %v127_v48 = vmul.f32 %v380_v1, %v56_v32  ;;  %v128_v49 = vmul.f32 %v380_v1, %v57_v33  ;;  %v196_v50 = vadd.f32 %v385_v2, %v125_v44  ;;  %v71_v33 = vld [vmem:[%s896_s0 + $0x1c8] sm:$0xff]  ;;  %v73_v35 = vld [vmem:[%s896_s0 + $0x1d8] sm:$0xff] }
  0x24   :  { %320 = vst [vmem:[%s899_s3 + $0x120] sm:$0xff] %v256_v41  ;;  %321 = vst [vmem:[%s899_s3 + $0x128] sm:$0xff] %v257_v42  ;;  %v129_v51 = vmul.f32 %v380_v1, %v58_v38  ;;  %v130_v52 = vmul.f32 %v380_v1, %v59_v39  ;;  %v131_v53 = vmul.f32 %v380_v1, %v60_v40  ;;  %v74_v40 = vld [vmem:[%s896_s0 + $0x1e0] sm:$0xff]  ;;  %v75_v41 = vld [vmem:[%s896_s0 + $0x1e8] sm:$0xff] }
  0x25   :  { %322 = vst [vmem:[%s899_s3 + $0x130] sm:$0xff] %v258_v43  ;;  %323 = vst [vmem:[%s899_s3 + $0x138] sm:$0xff] %v259_v46  ;;  %v197_v54 = vadd.f32 %v385_v2, %v126_v47  ;;  %v198_v55 = vadd.f32 %v385_v2, %v127_v48  ;;  %v199_v56 = vadd.f32 %v385_v2, %v128_v49  ;;  %v260_v59 = vmax.f32 %v196_v50, 0.0  ;;  %v76_v42 = vld [vmem:[%s896_s0 + $0x1f0] sm:$0xff]  ;;  %v77_v47 = vld [vmem:[%s896_s0 + $0x1f8] sm:$0xff] }
  0x26   :  { %v132_v57 = vmul.f32 %v380_v1, %v61_v45  ;;  %v200_v60 = vadd.f32 %v385_v2, %v129_v51  ;;  %v201_v61 = vadd.f32 %v385_v2, %v130_v52  ;;  %v202_v62 = vadd.f32 %v385_v2, %v131_v53 }
  0x27   :  { %v261_v4 = vmax.f32 %v197_v54, 0.0  ;;  %v262_v5 = vmax.f32 %v198_v55, 0.0  ;;  %v263_v6 = vmax.f32 %v199_v56, 0.0  ;;  %324 = vst [vmem:[%s899_s3 + $0x140] sm:$0xff] %v260_v59  ;;  %v133_v14 = vmul.f32 %v380_v1, %v62_v58 }
  0x28   :  { %v203_v7 = vadd.f32 %v385_v2, %v132_v57  ;;  %v264_v11 = vmax.f32 %v200_v60, 0.0  ;;  %v265_v12 = vmax.f32 %v201_v61, 0.0  ;;  %v266_v13 = vmax.f32 %v202_v62, 0.0 }
  0x29   :  { %325 = vst [vmem:[%s899_s3 + $0x148] sm:$0xff] %v261_v4  ;;  %326 = vst [vmem:[%s899_s3 + $0x150] sm:$0xff] %v262_v5  ;;  %v134_v17 = vmul.f32 %v380_v1, %v63_v63  ;;  %v135_v18 = vmul.f32 %v380_v1, %v64_v0  ;;  %v136_v19 = vmul.f32 %v380_v1, %v65_v3 }
  0x2a   :  { %327 = vst [vmem:[%s899_s3 + $0x158] sm:$0xff] %v263_v6  ;;  %v267_v16 = vmax.f32 %v203_v7, 0.0  ;;  %328 = vst [vmem:[%s899_s3 + $0x160] sm:$0xff] %v264_v11  ;;  %v204_v20 = vadd.f32 %v385_v2, %v133_v14  ;;  %v137_v21 = vmul.f32 %v380_v1, %v66_v8  ;;  %v138_v22 = vmul.f32 %v380_v1, %v67_v9 }
  0x2b   :  { %329 = vst [vmem:[%s899_s3 + $0x168] sm:$0xff] %v265_v12  ;;  %330 = vst [vmem:[%s899_s3 + $0x170] sm:$0xff] %v266_v13  ;;  %v139_v23 = vmul.f32 %v380_v1, %v68_v10  ;;  %v205_v24 = vadd.f32 %v385_v2, %v134_v17  ;;  %v206_v25 = vadd.f32 %v385_v2, %v135_v18 }
  0x2c   :  { %331 = vst [vmem:[%s899_s3 + $0x178] sm:$0xff] %v267_v16  ;;  %v207_v26 = vadd.f32 %v385_v2, %v136_v19  ;;  %v140_v27 = vmul.f32 %v380_v1, %v69_v15  ;;  %v268_v29 = vmax.f32 %v204_v20, 0.0  ;;  %v208_v30 = vadd.f32 %v385_v2, %v137_v21 }
  0x2d   :  { %v209_v31 = vadd.f32 %v385_v2, %v138_v22  ;;  %v210_v32 = vadd.f32 %v385_v2, %v139_v23  ;;  %v269_v36 = vmax.f32 %v205_v24, 0.0  ;;  %v270_v37 = vmax.f32 %v206_v25, 0.0 }
  0x2e   :  { %v271_v38 = vmax.f32 %v207_v26, 0.0  ;;  %v211_v39 = vadd.f32 %v385_v2, %v140_v27  ;;  %332 = vst [vmem:[%s899_s3 + $0x180] sm:$0xff] %v268_v29  ;;  %v272_v43 = vmax.f32 %v208_v30, 0.0  ;;  %v141_v46 = vmul.f32 %v380_v1, %v70_v28 }
  0x2f   :  { %v273_v44 = vmax.f32 %v209_v31, 0.0  ;;  %v274_v45 = vmax.f32 %v210_v32, 0.0  ;;  %333 = vst [vmem:[%s899_s3 + $0x188] sm:$0xff] %v269_v36  ;;  %334 = vst [vmem:[%s899_s3 + $0x190] sm:$0xff] %v270_v37  ;;  %v142_v49 = vmul.f32 %v380_v1, %v71_v33  ;;  %v143_v50 = vmul.f32 %v380_v1, %v72_v34 }
  0x30   :  { %335 = vst [vmem:[%s899_s3 + $0x198] sm:$0xff] %v271_v38  ;;  %v275_v48 = vmax.f32 %v211_v39, 0.0  ;;  %v144_v51 = vmul.f32 %v380_v1, %v73_v35  ;;  %336 = vst [vmem:[%s899_s3 + $0x1a0] sm:$0xff] %v272_v43  ;;  %v212_v52 = vadd.f32 %v385_v2, %v141_v46  ;;  %v145_v53 = vmul.f32 %v380_v1, %v74_v40 }
  0x31   :  { %337 = vst [vmem:[%s899_s3 + $0x1a8] sm:$0xff] %v273_v44  ;;  %338 = vst [vmem:[%s899_s3 + $0x1b0] sm:$0xff] %v274_v45  ;;  %v146_v54 = vmul.f32 %v380_v1, %v75_v41  ;;  %v147_v55 = vmul.f32 %v380_v1, %v76_v42  ;;  %v213_v56 = vadd.f32 %v385_v2, %v142_v49 }
  0x32   :  { %339 = vst [vmem:[%s899_s3 + $0x1b8] sm:$0xff] %v275_v48  ;;  %v214_v57 = vadd.f32 %v385_v2, %v143_v50  ;;  %v215_v58 = vadd.f32 %v385_v2, %v144_v51  ;;  %v148_v59 = vmul.f32 %v380_v1, %v77_v47  ;;  %v276_v60 = vmax.f32 %v212_v52, 0.0 }
  0x33   :  { %v216_v61 = vadd.f32 %v385_v2, %v145_v53  ;;  %v217_v62 = vadd.f32 %v385_v2, %v146_v54  ;;  %v218_v63 = vadd.f32 %v385_v2, %v147_v55  ;;  %v277_v0 = vmax.f32 %v213_v56, 0.0 }
  0x34   :  { %v278_v3 = vmax.f32 %v214_v57, 0.0  ;;  %v279_v4 = vmax.f32 %v215_v58, 0.0  ;;  %v219_v5 = vadd.f32 %v385_v2, %v148_v59  ;;  %340 = vst [vmem:[%s899_s3 + $0x1c0] sm:$0xff] %v276_v60 }
  0x35   :  { %v280_v6 = vmax.f32 %v216_v61, 0.0  ;;  %v281_v7 = vmax.f32 %v217_v62, 0.0  ;;  %v282_v8 = vmax.f32 %v218_v63, 0.0  ;;  %341 = vst [vmem:[%s899_s3 + $0x1c8] sm:$0xff] %v277_v0 }
  0x36   :  { %342 = vst [vmem:[%s899_s3 + $0x1d0] sm:$0xff] %v278_v3  ;;  %343 = vst [vmem:[%s899_s3 + $0x1d8] sm:$0xff] %v279_v4  ;;  %v283_v1 = vmax.f32 %v219_v5, 0.0 }
  0x37   :  { %344 = vst [vmem:[%s899_s3 + $0x1e0] sm:$0xff] %v280_v6  ;;  %345 = vst [vmem:[%s899_s3 + $0x1e8] sm:$0xff] %v281_v7 }
  0x38   :  { %346 = vst [vmem:[%s899_s3 + $0x1f0] sm:$0xff] %v282_v8  ;;  %347 = vst [vmem:[%s899_s3 + $0x1f8] sm:$0xff] %v283_v1 }

// kernel: global_generator_forward.29
= control target key start
LH: loop header
LB: loop body
LE: loop exit
PB: predicated region body
PF: predicated region fallthrough
CT: control target
= control target key end

     0   :  { %v684_v0 = vmov 0.0   ;;  %s910_s0 = inlined_call_operand.vmem [shape: f32[512,128], index: 0, kind: input, shape index: {}]   ;;  %s911_s1 = inlined_call_operand.vmem [shape: f32[1,128], index: 1, kind: output, shape index: {0}]   ;;  %s912_s2 = inlined_call_operand.vmem [shape: f32[1,128], index: 2, kind: output, shape index: {1}]  }
   0x1   :  { %14 = vst [vmem:[%s911_s1] sm:$0x1] %v684_v0  ;;  %15 = vst [vmem:[%s912_s2] sm:$0x1] %v684_v0  ;;  %v16_v1 = vld [vmem:[%s910_s0] sm:$0xff]  ;;  %v17_v2 = vld [vmem:[%s910_s0 + $0x8] sm:$0xff] }
   0x2   :  { %v18_v3 = vld [vmem:[%s910_s0 + $0x10] sm:$0xff]  ;;  %v19_v4 = vld [vmem:[%s910_s0 + $0x18] sm:$0xff]  ;;  %v468_v5 = vadd.f32 %v17_v2, %v16_v1  ;;  %v540_v6 = vmul.f32 %v16_v1, %v16_v1  ;;  %v541_v7 = vmul.f32 %v17_v2, %v17_v2  ;;  %v20_v9 = vld [vmem:[%s910_s0 + $0x20] sm:$0xff] }
   0x3   :  { %v542_v8 = vmul.f32 %v18_v3, %v18_v3  ;;  %v543_v11 = vmul.f32 %v19_v4, %v19_v4  ;;  %v21_v13 = vld [vmem:[%s910_s0 + $0x28] sm:$0xff]  ;;  %v544_v15 = vmul.f32 %v20_v9, %v20_v9  ;;  %v22_v17 = vld [vmem:[%s910_s0 + $0x30] sm:$0xff]  ;;  %v23_v21 = vld [vmem:[%s910_s0 + $0x38] sm:$0xff] }
   0x4   :  { %v469_v10 = vadd.f32 %v468_v5, %v18_v3  ;;  %v604_v12 = vadd.f32 %v541_v7, %v540_v6  ;;  %v545_v19 = vmul.f32 %v21_v13, %v21_v13  ;;  %v546_v23 = vmul.f32 %v22_v17, %v22_v17  ;;  %v24_v25 = vld [vmem:[%s910_s0 + $0x40] sm:$0xff]  ;;  %v25_v29 = vld [vmem:[%s910_s0 + $0x48] sm:$0xff]  ;;  %v26_v33 = vld [vmem:[%s910_s0 + $0x50] sm:$0xff] }
   0x5   :  { %v547_v27 = vmul.f32 %v23_v21, %v23_v21  ;;  %v548_v31 = vmul.f32 %v24_v25, %v24_v25  ;;  %v549_v35 = vmul.f32 %v25_v29, %v25_v29  ;;  %v27_v37 = vld [vmem:[%s910_s0 + $0x58] sm:$0xff]  ;;  %v550_v39 = vmul.f32 %v26_v33, %v26_v33  ;;  %v28_v41 = vld [vmem:[%s910_s0 + $0x60] sm:$0xff]  ;;  %v29_v45 = vld [vmem:[%s910_s0 + $0x68] sm:$0xff] }
   0x6   :  { %v470_v14 = vadd.f32 %v469_v10, %v19_v4  ;;  %v605_v16 = vadd.f32 %v604_v12, %v542_v8  ;;  %v551_v43 = vmul.f32 %v27_v37, %v27_v37  ;;  %v552_v47 = vmul.f32 %v28_v41, %v28_v41  ;;  %v30_v49 = vld [vmem:[%s910_s0 + $0x70] sm:$0xff]  ;;  %v31_v53 = vld [vmem:[%s910_s0 + $0x78] sm:$0xff]  ;;  %v32_v57 = vld [vmem:[%s910_s0 + $0x80] sm:$0xff] }
   0x7   :  { %v553_v51 = vmul.f32 %v29_v45, %v29_v45  ;;  %v554_v55 = vmul.f32 %v30_v49, %v30_v49  ;;  %v555_v59 = vmul.f32 %v31_v53, %v31_v53  ;;  %v33_v61 = vld [vmem:[%s910_s0 + $0x88] sm:$0xff]  ;;  %v556_v63 = vmul.f32 %v32_v57, %v32_v57  ;;  %v34_v1 = vld [vmem:[%s910_s0 + $0x90] sm:$0xff]  ;;  %v35_v5 = vld [vmem:[%s910_s0 + $0x98] sm:$0xff] }
   0x8   :  { %v471_v18 = vadd.f32 %v470_v14, %v20_v9  ;;  %v606_v20 = vadd.f32 %v605_v16, %v543_v11  ;;  %v557_v3 = vmul.f32 %v33_v61, %v33_v61  ;;  %v558_v7 = vmul.f32 %v34_v1, %v34_v1  ;;  %v36_v9 = vld [vmem:[%s910_s0 + $0xa0] sm:$0xff] }
   0x9   :  { %v559_v11 = vmul.f32 %v35_v5, %v35_v5 }
   0xa   :  { %v472_v22 = vadd.f32 %v471_v18, %v21_v13  ;;  %v607_v24 = vadd.f32 %v606_v20, %v544_v15  ;;  %v37_v13 = vld [vmem:[%s910_s0 + $0xa8] sm:$0xff]  ;;  %v560_v15 = vmul.f32 %v36_v9, %v36_v9 }
   0xc   :  { %v473_v26 = vadd.f32 %v472_v22, %v22_v17  ;;  %v608_v28 = vadd.f32 %v607_v24, %v545_v19  ;;  %v38_v17 = vld [vmem:[%s910_s0 + $0xb0] sm:$0xff]  ;;  %v561_v19 = vmul.f32 %v37_v13, %v37_v13 }
   0xe   :  { %v474_v30 = vadd.f32 %v473_v26, %v23_v21  ;;  %v609_v32 = vadd.f32 %v608_v28, %v546_v23  ;;  %v39_v21 = vld [vmem:[%s910_s0 + $0xb8] sm:$0xff]  ;;  %v562_v23 = vmul.f32 %v38_v17, %v38_v17 }
  0x10   :  { %v475_v34 = vadd.f32 %v474_v30, %v24_v25  ;;  %v610_v36 = vadd.f32 %v609_v32, %v547_v27  ;;  %v40_v25 = vld [vmem:[%s910_s0 + $0xc0] sm:$0xff]  ;;  %v563_v27 = vmul.f32 %v39_v21, %v39_v21 }
  0x12   :  { %v476_v38 = vadd.f32 %v475_v34, %v25_v29  ;;  %v611_v40 = vadd.f32 %v610_v36, %v548_v31  ;;  %v41_v29 = vld [vmem:[%s910_s0 + $0xc8] sm:$0xff]  ;;  %v564_v31 = vmul.f32 %v40_v25, %v40_v25 }
  0x14   :  { %v477_v42 = vadd.f32 %v476_v38, %v26_v33  ;;  %v612_v44 = vadd.f32 %v611_v40, %v549_v35  ;;  %v42_v33 = vld [vmem:[%s910_s0 + $0xd0] sm:$0xff]  ;;  %v565_v35 = vmul.f32 %v41_v29, %v41_v29 }
  0x16   :  { %v478_v46 = vadd.f32 %v477_v42, %v27_v37  ;;  %v613_v48 = vadd.f32 %v612_v44, %v550_v39  ;;  %v43_v37 = vld [vmem:[%s910_s0 + $0xd8] sm:$0xff]  ;;  %v566_v39 = vmul.f32 %v42_v33, %v42_v33 }
  0x18   :  { %v479_v50 = vadd.f32 %v478_v46, %v28_v41  ;;  %v614_v52 = vadd.f32 %v613_v48, %v551_v43  ;;  %v44_v41 = vld [vmem:[%s910_s0 + $0xe0] sm:$0xff]  ;;  %v567_v43 = vmul.f32 %v43_v37, %v43_v37 }
  0x1a   :  { %v480_v54 = vadd.f32 %v479_v50, %v29_v45  ;;  %v615_v56 = vadd.f32 %v614_v52, %v552_v47  ;;  %v45_v45 = vld [vmem:[%s910_s0 + $0xe8] sm:$0xff]  ;;  %v568_v47 = vmul.f32 %v44_v41, %v44_v41 }
  0x1c   :  { %v481_v58 = vadd.f32 %v480_v54, %v30_v49  ;;  %v616_v60 = vadd.f32 %v615_v56, %v553_v51  ;;  %v46_v49 = vld [vmem:[%s910_s0 + $0xf0] sm:$0xff]  ;;  %v569_v51 = vmul.f32 %v45_v45, %v45_v45 }
  0x1e   :  { %v482_v62 = vadd.f32 %v481_v58, %v31_v53  ;;  %v617_v0 = vadd.f32 %v616_v60, %v554_v55  ;;  %v47_v53 = vld [vmem:[%s910_s0 + $0xf8] sm:$0xff]  ;;  %v570_v55 = vmul.f32 %v46_v49, %v46_v49 }
  0x20   :  { %v483_v2 = vadd.f32 %v482_v62, %v32_v57  ;;  %v618_v4 = vadd.f32 %v617_v0, %v555_v59  ;;  %v48_v57 = vld [vmem:[%s910_s0 + $0x100] sm:$0xff]  ;;  %v571_v59 = vmul.f32 %v47_v53, %v47_v53 }
  0x22   :  { %v484_v6 = vadd.f32 %v483_v2, %v33_v61  ;;  %v619_v8 = vadd.f32 %v618_v4, %v556_v63  ;;  %v49_v61 = vld [vmem:[%s910_s0 + $0x108] sm:$0xff]  ;;  %v572_v63 = vmul.f32 %v48_v57, %v48_v57 }
  0x24   :  { %v485_v10 = vadd.f32 %v484_v6, %v34_v1  ;;  %v620_v12 = vadd.f32 %v619_v8, %v557_v3  ;;  %v50_v1 = vld [vmem:[%s910_s0 + $0x110] sm:$0xff]  ;;  %v573_v3 = vmul.f32 %v49_v61, %v49_v61 }
  0x26   :  { %v486_v14 = vadd.f32 %v485_v10, %v35_v5  ;;  %v621_v16 = vadd.f32 %v620_v12, %v558_v7  ;;  %v51_v5 = vld [vmem:[%s910_s0 + $0x118] sm:$0xff]  ;;  %v574_v7 = vmul.f32 %v50_v1, %v50_v1 }
  0x28   :  { %v487_v18 = vadd.f32 %v486_v14, %v36_v9  ;;  %v622_v20 = vadd.f32 %v621_v16, %v559_v11  ;;  %v52_v9 = vld [vmem:[%s910_s0 + $0x120] sm:$0xff]  ;;  %v575_v11 = vmul.f32 %v51_v5, %v51_v5 }
  0x2a   :  { %v488_v22 = vadd.f32 %v487_v18, %v37_v13  ;;  %v623_v24 = vadd.f32 %v622_v20, %v560_v15  ;;  %v53_v13 = vld [vmem:[%s910_s0 + $0x128] sm:$0xff]  ;;  %v576_v15 = vmul.f32 %v52_v9, %v52_v9 }
  0x2c   :  { %v489_v26 = vadd.f32 %v488_v22, %v38_v17  ;;  %v624_v28 = vadd.f32 %v623_v24, %v561_v19  ;;  %v54_v17 = vld [vmem:[%s910_s0 + $0x130] sm:$0xff]  ;;  %v577_v19 = vmul.f32 %v53_v13, %v53_v13 }
  0x2e   :  { %v490_v30 = vadd.f32 %v489_v26, %v39_v21  ;;  %v625_v32 = vadd.f32 %v624_v28, %v562_v23  ;;  %v55_v21 = vld [vmem:[%s910_s0 + $0x138] sm:$0xff]  ;;  %v578_v23 = vmul.f32 %v54_v17, %v54_v17 }
  0x30   :  { %v491_v34 = vadd.f32 %v490_v30, %v40_v25  ;;  %v626_v36 = vadd.f32 %v625_v32, %v563_v27  ;;  %v56_v25 = vld [vmem:[%s910_s0 + $0x140] sm:$0xff]  ;;  %v579_v27 = vmul.f32 %v55_v21, %v55_v21 }
  0x32   :  { %v492_v38 = vadd.f32 %v491_v34, %v41_v29  ;;  %v627_v40 = vadd.f32 %v626_v36, %v564_v31  ;;  %v57_v29 = vld [vmem:[%s910_s0 + $0x148] sm:$0xff]  ;;  %v580_v31 = vmul.f32 %v56_v25, %v56_v25 }
  0x34   :  { %v493_v42 = vadd.f32 %v492_v38, %v42_v33  ;;  %v628_v44 = vadd.f32 %v627_v40, %v565_v35  ;;  %v58_v33 = vld [vmem:[%s910_s0 + $0x150] sm:$0xff]  ;;  %v581_v35 = vmul.f32 %v57_v29, %v57_v29 }
  0x36   :  { %v494_v46 = vadd.f32 %v493_v42, %v43_v37  ;;  %v629_v48 = vadd.f32 %v628_v44, %v566_v39  ;;  %v59_v37 = vld [vmem:[%s910_s0 + $0x158] sm:$0xff]  ;;  %v582_v39 = vmul.f32 %v58_v33, %v58_v33 }
  0x38   :  { %v495_v50 = vadd.f32 %v494_v46, %v44_v41  ;;  %v630_v52 = vadd.f32 %v629_v48, %v567_v43  ;;  %v60_v41 = vld [vmem:[%s910_s0 + $0x160] sm:$0xff]  ;;  %v583_v43 = vmul.f32 %v59_v37, %v59_v37 }
  0x3a   :  { %v496_v54 = vadd.f32 %v495_v50, %v45_v45  ;;  %v631_v56 = vadd.f32 %v630_v52, %v568_v47  ;;  %v61_v45 = vld [vmem:[%s910_s0 + $0x168] sm:$0xff]  ;;  %v584_v47 = vmul.f32 %v60_v41, %v60_v41 }
  0x3c   :  { %v497_v58 = vadd.f32 %v496_v54, %v46_v49  ;;  %v632_v60 = vadd.f32 %v631_v56, %v569_v51  ;;  %v62_v49 = vld [vmem:[%s910_s0 + $0x170] sm:$0xff]  ;;  %v585_v51 = vmul.f32 %v61_v45, %v61_v45 }
  0x3e   :  { %v498_v62 = vadd.f32 %v497_v58, %v47_v53  ;;  %v633_v0 = vadd.f32 %v632_v60, %v570_v55  ;;  %v63_v53 = vld [vmem:[%s910_s0 + $0x178] sm:$0xff]  ;;  %v586_v55 = vmul.f32 %v62_v49, %v62_v49 }
  0x40   :  { %v499_v2 = vadd.f32 %v498_v62, %v48_v57  ;;  %v634_v4 = vadd.f32 %v633_v0, %v571_v59  ;;  %v64_v57 = vld [vmem:[%s910_s0 + $0x180] sm:$0xff]  ;;  %v587_v59 = vmul.f32 %v63_v53, %v63_v53 }
  0x42   :  { %v500_v6 = vadd.f32 %v499_v2, %v49_v61  ;;  %v635_v8 = vadd.f32 %v634_v4, %v572_v63  ;;  %v65_v61 = vld [vmem:[%s910_s0 + $0x188] sm:$0xff]  ;;  %v588_v63 = vmul.f32 %v64_v57, %v64_v57 }
  0x44   :  { %v501_v10 = vadd.f32 %v500_v6, %v50_v1  ;;  %v636_v12 = vadd.f32 %v635_v8, %v573_v3  ;;  %v66_v1 = vld [vmem:[%s910_s0 + $0x190] sm:$0xff]  ;;  %v589_v3 = vmul.f32 %v65_v61, %v65_v61 }
  0x46   :  { %v502_v14 = vadd.f32 %v501_v10, %v51_v5  ;;  %v637_v16 = vadd.f32 %v636_v12, %v574_v7  ;;  %v67_v5 = vld [vmem:[%s910_s0 + $0x198] sm:$0xff]  ;;  %v590_v7 = vmul.f32 %v66_v1, %v66_v1 }
  0x48   :  { %v503_v18 = vadd.f32 %v502_v14, %v52_v9  ;;  %v638_v20 = vadd.f32 %v637_v16, %v575_v11  ;;  %v68_v9 = vld [vmem:[%s910_s0 + $0x1a0] sm:$0xff]  ;;  %v591_v11 = vmul.f32 %v67_v5, %v67_v5 }
  0x4a   :  { %v504_v22 = vadd.f32 %v503_v18, %v53_v13  ;;  %v639_v24 = vadd.f32 %v638_v20, %v576_v15  ;;  %v69_v13 = vld [vmem:[%s910_s0 + $0x1a8] sm:$0xff]  ;;  %v592_v15 = vmul.f32 %v68_v9, %v68_v9 }
  0x4c   :  { %v505_v26 = vadd.f32 %v504_v22, %v54_v17  ;;  %v640_v28 = vadd.f32 %v639_v24, %v577_v19  ;;  %v70_v17 = vld [vmem:[%s910_s0 + $0x1b0] sm:$0xff]  ;;  %v593_v19 = vmul.f32 %v69_v13, %v69_v13 }
  0x4e   :  { %v506_v30 = vadd.f32 %v505_v26, %v55_v21  ;;  %v641_v32 = vadd.f32 %v640_v28, %v578_v23  ;;  %v71_v21 = vld [vmem:[%s910_s0 + $0x1b8] sm:$0xff]  ;;  %v594_v23 = vmul.f32 %v70_v17, %v70_v17 }
  0x50   :  { %v507_v34 = vadd.f32 %v506_v30, %v56_v25  ;;  %v642_v36 = vadd.f32 %v641_v32, %v579_v27  ;;  %v72_v25 = vld [vmem:[%s910_s0 + $0x1c0] sm:$0xff]  ;;  %v595_v27 = vmul.f32 %v71_v21, %v71_v21 }
  0x52   :  { %v508_v38 = vadd.f32 %v507_v34, %v57_v29  ;;  %v643_v40 = vadd.f32 %v642_v36, %v580_v31  ;;  %v73_v29 = vld [vmem:[%s910_s0 + $0x1c8] sm:$0xff]  ;;  %v596_v31 = vmul.f32 %v72_v25, %v72_v25 }
  0x54   :  { %v509_v42 = vadd.f32 %v508_v38, %v58_v33  ;;  %v644_v44 = vadd.f32 %v643_v40, %v581_v35  ;;  %v74_v33 = vld [vmem:[%s910_s0 + $0x1d0] sm:$0xff]  ;;  %v597_v35 = vmul.f32 %v73_v29, %v73_v29 }
  0x56   :  { %v510_v46 = vadd.f32 %v509_v42, %v59_v37  ;;  %v645_v48 = vadd.f32 %v644_v44, %v582_v39  ;;  %v75_v37 = vld [vmem:[%s910_s0 + $0x1d8] sm:$0xff]  ;;  %v598_v39 = vmul.f32 %v74_v33, %v74_v33 }
  0x58   :  { %v511_v50 = vadd.f32 %v510_v46, %v60_v41  ;;  %v646_v52 = vadd.f32 %v645_v48, %v583_v43  ;;  %v76_v41 = vld [vmem:[%s910_s0 + $0x1e0] sm:$0xff]  ;;  %v599_v43 = vmul.f32 %v75_v37, %v75_v37 }
  0x5a   :  { %v512_v54 = vadd.f32 %v511_v50, %v61_v45  ;;  %v647_v56 = vadd.f32 %v646_v52, %v584_v47  ;;  %v77_v45 = vld [vmem:[%s910_s0 + $0x1e8] sm:$0xff]  ;;  %v600_v47 = vmul.f32 %v76_v41, %v76_v41 }
  0x5c   :  { %v513_v58 = vadd.f32 %v512_v54, %v62_v49  ;;  %v648_v60 = vadd.f32 %v647_v56, %v585_v51  ;;  %v78_v49 = vld [vmem:[%s910_s0 + $0x1f0] sm:$0xff]  ;;  %v601_v51 = vmul.f32 %v77_v45, %v77_v45 }
  0x5e   :  { %v514_v62 = vadd.f32 %v513_v58, %v63_v53  ;;  %v649_v0 = vadd.f32 %v648_v60, %v586_v55  ;;  %v79_v53 = vld [vmem:[%s910_s0 + $0x1f8] sm:$0xff]  ;;  %v602_v55 = vmul.f32 %v78_v49, %v78_v49 }
  0x5f   :  { %v603_v58 = vmul.f32 %v79_v53, %v79_v53 }
  0x60   :  { %v515_v2 = vadd.f32 %v514_v62, %v64_v57  ;;  %v650_v4 = vadd.f32 %v649_v0, %v587_v59 }
  0x62   :  { %v516_v6 = vadd.f32 %v515_v2, %v65_v61  ;;  %v651_v8 = vadd.f32 %v650_v4, %v588_v63 }
  0x64   :  { %v517_v10 = vadd.f32 %v516_v6, %v66_v1  ;;  %v652_v12 = vadd.f32 %v651_v8, %v589_v3 }
  0x66   :  { %v518_v14 = vadd.f32 %v517_v10, %v67_v5  ;;  %v653_v16 = vadd.f32 %v652_v12, %v590_v7  ;;  %v467_v7 = vld [vmem:[%s911_s1] sm:$0x1] }
  0x67   :  { %v539_v12 = vld [vmem:[%s912_s2] sm:$0x1] }
  0x68   :  { %v519_v18 = vadd.f32 %v518_v14, %v68_v9  ;;  %v654_v20 = vadd.f32 %v653_v16, %v591_v11 }
  0x6a   :  { %v520_v22 = vadd.f32 %v519_v18, %v69_v13  ;;  %v655_v24 = vadd.f32 %v654_v20, %v592_v15 }
  0x6c   :  { %v521_v26 = vadd.f32 %v520_v22, %v70_v17  ;;  %v656_v28 = vadd.f32 %v655_v24, %v593_v19 }
  0x6e   :  { %v522_v30 = vadd.f32 %v521_v26, %v71_v21  ;;  %v657_v32 = vadd.f32 %v656_v28, %v594_v23 }
  0x70   :  { %v523_v34 = vadd.f32 %v522_v30, %v72_v25  ;;  %v658_v36 = vadd.f32 %v657_v32, %v595_v27 }
  0x72   :  { %v524_v38 = vadd.f32 %v523_v34, %v73_v29  ;;  %v659_v40 = vadd.f32 %v658_v36, %v596_v31 }
  0x74   :  { %v525_v42 = vadd.f32 %v524_v38, %v74_v33  ;;  %v660_v44 = vadd.f32 %v659_v40, %v597_v35 }
  0x76   :  { %v526_v46 = vadd.f32 %v525_v42, %v75_v37  ;;  %v661_v48 = vadd.f32 %v660_v44, %v598_v39 }
  0x78   :  { %v527_v50 = vadd.f32 %v526_v46, %v76_v41  ;;  %v662_v52 = vadd.f32 %v661_v48, %v599_v43 }
  0x7a   :  { %v528_v54 = vadd.f32 %v527_v50, %v77_v45  ;;  %v663_v56 = vadd.f32 %v662_v52, %v600_v47 }
  0x7c   :  { %v529_v57 = vadd.f32 %v528_v54, %v78_v49  ;;  %v664_v59 = vadd.f32 %v663_v56, %v601_v51 }
  0x7e   :  { %v530_v60 = vadd.f32 %v529_v57, %v79_v53  ;;  %v665_v61 = vadd.f32 %v664_v59, %v602_v55 }
  0x80   :  { %v531_v62 = vrot.slane %v530_v60, 4  ;;  %v666_v63 = vadd.f32 %v665_v61, %v603_v58 }
  0x82   :  { %v532_v0 = vadd.f32 %v531_v62, %v530_v60  ;;  %v667_v1 = vrot.slane %v666_v63, 4 }
  0x84   :  { %v533_v2 = vrot.slane %v532_v0, 2  ;;  %v668_v3 = vadd.f32 %v667_v1, %v666_v63 }
  0x86   :  { %v534_v4 = vadd.f32 %v533_v2, %v532_v0  ;;  %v669_v5 = vrot.slane %v668_v3, 2 }
  0x88   :  { %v535_v6 = vrot.slane %v534_v4, 1  ;;  %v670_v8 = vadd.f32 %v669_v5, %v668_v3 }
  0x8a   :  { %v536_v9 = vadd.f32 %v535_v6, %v534_v4  ;;  %v671_v10 = vrot.slane %v670_v8, 1 }
  0x8c   :  { %v537_v11 = vadd.f32 %v536_v9, %v467_v7  ;;  %v672_v13 = vadd.f32 %v671_v10, %v670_v8 }
  0x8e   :  { %538 = vst [vmem:[%s911_s1] sm:$0x1] %v537_v11  ;;  %v673_v14 = vadd.f32 %v672_v13, %v539_v12 }
  0x90   :  { %674 = vst [vmem:[%s912_s2] sm:$0x1] %v673_v14 }

// kernel: global_generator_forward.28
= control target key start
LH: loop header
LB: loop body
LE: loop exit
PB: predicated region body
PF: predicated region fallthrough
CT: control target
= control target key end

     0   :  { %s1180_s12 = smov 0   ;;  %s1182_s13 = smov 0   ;;  %s1330_s0 = inlined_call_operand.vmem [shape: bf16[512,128], index: 0, kind: input, shape index: {}]   ;;  %s1331_s1 = inlined_call_operand.vmem [shape: bf16[128,128], index: 1, kind: input, shape index: {}]   ;;  %s1332_s2 = inlined_call_operand.vmem [shape: f32[1,128], index: 2, kind: input, shape index: {}]   ;;  %s1333_s3 = inlined_call_operand.vmem [shape: f32[512,128], index: 3, kind: output, shape index: {}]  }
   0x1   :  { %s1184_s14 = smov 0  }
   0x2 LB: > { %s32_s15 = sadd.s32 1, %s1154_s13  ;;  %p968_p0 = scmp.ge.s32.totalorder %s1158_s14, 1  ;;  %s1158_s14 = sphi %s1184_s14, %s13_s14   ;;  %s1154_s13 = sphi %s1182_s13, %s1335_s13   ;;  %s1150_s12 = sphi %s1180_s12, %s1334_s12  }
   0x3   : > { %p34_p1 = scmp.ge.s32.totalorder %s32_s15, 2  ;;  %p188_p2 = scmp.lt.s32.totalorder %s1158_s14, 3 }
   0x5   : > { %s1337_s15 = smov (%p34_p1, %s32_s15), 0  ;;  %p189_p3 = pnand %p968_p0, %p188_p2 }
   0x6   : > { %v1112_v0 = vld [vmem:[%s1331_s1] sm:$0xff] (!%p189_p3)   ;;  %s969_s18 = sshll.u32 (!%p189_p3), %s1150_s12, 5  ;;  %v1113_v1 = vld [vmem:[%s1331_s1 + $0x8] sm:$0xff] (!%p189_p3)   ;;  %v1114_v2 = vld [vmem:[%s1331_s1 + $0x10] sm:$0xff] (!%p189_p3)  }
   0x7   : > { %192 = sbr.rel (%p189_p3) target bundleno = 281 (0x119), region = 32  ;;  %p230_p4 = scmp.lt.s32.totalorder (!%p189_p3), %s969_s18, 63  ;;  %1024 = vmatprep.subr.bf16.mxu0 (!%p189_p3), %v1112_v0  ;;  %1072 = vmatprep.subr.bf16.mxu1 (!%p189_p3), %v1112_v0  ;;  %v1115_v3 = vld [vmem:[%s1331_s1 + $0x18] sm:$0xff] (!%p189_p3)   ;;  %v1116_v6 = vld [vmem:[%s1331_s1 + $0x20] sm:$0xff] (!%p189_p3)   ;;  %v1117_v7 = vld [vmem:[%s1331_s1 + $0x28] sm:$0xff] (!%p189_p3)  }
   0x8   : > { %1025 = vmatpush3.bf16.msra.mxu0 (!%p189_p3), %v1112_v0  ;;  %1080 = vmatpush3.bf16.msra.mxu1 (!%p189_p3), %v1112_v0  ;;  %v1118_v8 = vld [vmem:[%s1331_s1 + $0x30] sm:$0xff] (!%p189_p3)   ;;  %v1119_v9 = vld [vmem:[%s1331_s1 + $0x38] sm:$0xff] (!%p189_p3)   ;;  %v1250_v24 = vld [vmem:[%s1332_s2] ss:$0 sm:$0xff] (!%p189_p3) }
   0x9   : > { %1026 = vmatprep.subr.bf16.mxu0 (!%p189_p3), %v1113_v1  ;;  %1073 = vmatprep.subr.bf16.mxu1 (!%p189_p3), %v1113_v1 }
   0xc   : > { %1027 = vmatpush3.bf16.msra.mxu0 (!%p189_p3), %v1113_v1  ;;  %1081 = vmatpush3.bf16.msra.mxu1 (!%p189_p3), %v1113_v1 }
   0xd   : > { %1028 = vmatprep.subr.bf16.mxu0 (!%p189_p3), %v1114_v2  ;;  %1074 = vmatprep.subr.bf16.mxu1 (!%p189_p3), %v1114_v2 }
   0xe   : > { %s1339_s18 = smov (!%p230_p4, %s969_s18), 63 }
   0xf   : > { %s970_s23 = sshll.u32 %s1339_s18, 2  ;;  %s972_s10 = sshll.u32 %s1339_s18, 3 }
  0x10   : > { %s1213_s26 = scalar_lea.vmem %s1330_s0, %s970_s23  ;;  %1029 = vmatpush3.bf16.msra.mxu0 %v1114_v2  ;;  %1082 = vmatpush3.bf16.msra.mxu1 %v1114_v2  ;;  %s1255_s19 = scalar_lea.vmem %s1333_s3, %s972_s10 }
  0x11   : > { %v1120_v4 = vld [vmem:[%s1213_s26] sm:$0xff]   ;;  %1030 = vmatprep.subr.bf16.mxu0 %v1115_v3  ;;  %1075 = vmatprep.subr.bf16.mxu1 %v1115_v3  ;;  %v1122_v10 = vld [vmem:[%s1213_s26 + $0x8] sm:$0xff]   ;;  %v1124_v12 = vld [vmem:[%s1213_s26 + $0x10] sm:$0xff]  }
  0x12   : > { %v1121_v5 = vld [vmem:[%s1213_s26 + $0x40] sm:$0xff]   ;;  %1040 = vmatprep.mubr.bf16.mxu0 %v1120_v4  ;;  %v1123_v11 = vld [vmem:[%s1213_s26 + $0x48] sm:$0xff]   ;;  %v1125_v13 = vld [vmem:[%s1213_s26 + $0x50] sm:$0xff]  }
  0x13   : > { %1056 = vmatprep.mubr.bf16.mxu1 %v1121_v5  ;;  %v1126_v14 = vld [vmem:[%s1213_s26 + $0x18] sm:$0xff]   ;;  %v1128_v16 = vld [vmem:[%s1213_s26 + $0x20] sm:$0xff]   ;;  %v1130_v18 = vld [vmem:[%s1213_s26 + $0x28] sm:$0xff]  }
  0x14   : > { %1031 = vmatpush3.bf16.msra.mxu0 %v1115_v3  ;;  %1083 = vmatpush3.bf16.msra.mxu1 %v1115_v3  ;;  %v1127_v15 = vld [vmem:[%s1213_s26 + $0x58] sm:$0xff]   ;;  %v1129_v17 = vld [vmem:[%s1213_s26 + $0x60] sm:$0xff]   ;;  %v1131_v19 = vld [vmem:[%s1213_s26 + $0x68] sm:$0xff]  }
  0x15   : > { %1032 = vmatprep.subr.bf16.mxu0 %v1116_v6  ;;  %1076 = vmatprep.subr.bf16.mxu1 %v1116_v6  ;;  %v1132_v20 = vld [vmem:[%s1213_s26 + $0x30] sm:$0xff]   ;;  %v1134_v22 = vld [vmem:[%s1213_s26 + $0x38] sm:$0xff]  }
  0x16   : > { %v1133_v21 = vld [vmem:[%s1213_s26 + $0x70] sm:$0xff]   ;;  %v1135_v23 = vld [vmem:[%s1213_s26 + $0x78] sm:$0xff]  }
  0x18   : > { %1033 = vmatpush3.bf16.msra.mxu0 %v1116_v6  ;;  %1084 = vmatpush3.bf16.msra.mxu1 %v1116_v6 }
  0x19   : > { %1034 = vmatprep.subr.bf16.mxu0 %v1117_v7  ;;  %1077 = vmatprep.subr.bf16.mxu1 %v1117_v7 }
  0x1c   : > { %1035 = vmatpush3.bf16.msra.mxu0 %v1117_v7  ;;  %1085 = vmatpush3.bf16.msra.mxu1 %v1117_v7 }
  0x1d   : > { %1036 = vmatprep.subr.bf16.mxu0 %v1118_v8  ;;  %1078 = vmatprep.subr.bf16.mxu1 %v1118_v8 }
  0x20   : > { %1037 = vmatpush3.bf16.msra.mxu0 %v1118_v8  ;;  %1086 = vmatpush3.bf16.msra.mxu1 %v1118_v8 }
  0x21   : > { %1038 = vmatprep.subr.bf16.mxu0 %v1119_v9  ;;  %1079 = vmatprep.subr.bf16.mxu1 %v1119_v9 }
  0x24   : > { %1039 = vmatpush3.bf16.msra.mxu0 %v1119_v9  ;;  %1087 = vmatpush3.bf16.msra.mxu1 %v1119_v9 }
  0x27   : > { %1041 = vmatmul.mubr.bf16.vlgmr.msra.gmra.mrb[0].mxu0 %v1122_v10  ;;  %1057 = vmatmul.mubr.bf16.vlgmr.msra.gmra.mrb[0].mxu1 %v1123_v11 }
  0x28   : > { %1044 = vmatprep.mubr.bf16.mxu0 %v1124_v12  ;;  %1060 = vmatprep.mubr.bf16.mxu1 %v1125_v13 }
  0x2f   : > { %1045 = vmatmul.mubr.bf16.gmra.mrb[4].mxu0 %v1126_v14  ;;  %1061 = vmatmul.mubr.bf16.gmra.mrb[4].mxu1 %v1127_v15 }
  0x30   : > { %1048 = vmatprep.mubr.bf16.mxu0 %v1128_v16  ;;  %1064 = vmatprep.mubr.bf16.mxu1 %v1129_v17 }
  0x37   : > { %1049 = vmatmul.mubr.bf16.gmra.mrb[8].mxu0 %v1130_v18  ;;  %1065 = vmatmul.mubr.bf16.gmra.mrb[8].mxu1 %v1131_v19 }
  0x38   : > { %1052 = vmatprep.mubr.bf16.mxu0 %v1132_v20  ;;  %1068 = vmatprep.mubr.bf16.mxu1 %v1133_v21 }
  0x3f   : > { %1053 = vmatmul.mubr.bf16.gmra.mrb[12].mxu0 %v1134_v22  ;;  %1069 = vmatmul.mubr.bf16.gmra.mrb[12].mxu1 %v1135_v23 }
  0xfa   : > { %v1042_v25 = vpop.f32.mrb[0].mxu0  ;;  %v1058_v26 = vpop.f32.mrb[0].mxu1 }
  0xfb   : > { %v789_v27 = vadd.f32 %v1042_v25, %v1250_v24  ;;  %v805_v28 = vadd.f32 %v1058_v26, %v1250_v24  ;;  %v554_v29 = vpop.f32.mrb[1].mxu0  ;;  %v618_v30 = vpop.f32.mrb[1].mxu1 }
  0xfc   : > { %v787_v31 = vadd.f32 %v1250_v24, %v554_v29  ;;  %v803_v32 = vadd.f32 %v1250_v24, %v618_v30  ;;  %v1043_v33 = vpop.f32.mrb[2].mxu0  ;;  %v1059_v34 = vpop.f32.mrb[2].mxu1 }
  0xfd   : > { %821 = vst [vmem:[%s1255_s19 + $0x10] sm:$0xff] %v789_v27  ;;  %837 = vst [vmem:[%s1255_s19 + $0x90] sm:$0xff] %v805_v28  ;;  %v790_v35 = vadd.f32 %v1043_v33, %v1250_v24  ;;  %v806_v36 = vadd.f32 %v1059_v34, %v1250_v24  ;;  %v557_v37 = vpop.f32.mrb[3].mxu0  ;;  %v621_v38 = vpop.f32.mrb[3].mxu1 }
  0xfe   : > { %819 = vst [vmem:[%s1255_s19] sm:$0xff] %v787_v31  ;;  %835 = vst [vmem:[%s1255_s19 + $0x80] sm:$0xff] %v803_v32  ;;  %v788_v39 = vadd.f32 %v1250_v24, %v557_v37  ;;  %v804_v40 = vadd.f32 %v1250_v24, %v621_v38 }
  0xff   : > { %822 = vst [vmem:[%s1255_s19 + $0x18] sm:$0xff] %v790_v35  ;;  %838 = vst [vmem:[%s1255_s19 + $0x98] sm:$0xff] %v806_v36 }
 0x100   : > { %820 = vst [vmem:[%s1255_s19 + $0x8] sm:$0xff] %v788_v39  ;;  %836 = vst [vmem:[%s1255_s19 + $0x88] sm:$0xff] %v804_v40 }
 0x102   : > { %v1046_v41 = vpop.f32.mrb[4].mxu0  ;;  %v1062_v42 = vpop.f32.mrb[4].mxu1 }
 0x103   : > { %v793_v43 = vadd.f32 %v1046_v41, %v1250_v24  ;;  %v809_v44 = vadd.f32 %v1062_v42, %v1250_v24  ;;  %v570_v45 = vpop.f32.mrb[5].mxu0  ;;  %v634_v46 = vpop.f32.mrb[5].mxu1 }
 0x104   : > { %v791_v47 = vadd.f32 %v1250_v24, %v570_v45  ;;  %v807_v48 = vadd.f32 %v1250_v24, %v634_v46  ;;  %v1047_v49 = vpop.f32.mrb[6].mxu0  ;;  %v1063_v50 = vpop.f32.mrb[6].mxu1 }
 0x105   : > { %825 = vst [vmem:[%s1255_s19 + $0x30] sm:$0xff] %v793_v43  ;;  %841 = vst [vmem:[%s1255_s19 + $0xb0] sm:$0xff] %v809_v44  ;;  %v794_v51 = vadd.f32 %v1047_v49, %v1250_v24  ;;  %v810_v52 = vadd.f32 %v1063_v50, %v1250_v24  ;;  %v573_v53 = vpop.f32.mrb[7].mxu0  ;;  %v637_v54 = vpop.f32.mrb[7].mxu1 }
 0x106   : > { %823 = vst [vmem:[%s1255_s19 + $0x20] sm:$0xff] %v791_v47  ;;  %839 = vst [vmem:[%s1255_s19 + $0xa0] sm:$0xff] %v807_v48  ;;  %v792_v55 = vadd.f32 %v1250_v24, %v573_v53  ;;  %v808_v56 = vadd.f32 %v1250_v24, %v637_v54 }
 0x107   : > { %826 = vst [vmem:[%s1255_s19 + $0x38] sm:$0xff] %v794_v51  ;;  %842 = vst [vmem:[%s1255_s19 + $0xb8] sm:$0xff] %v810_v52 }
 0x108   : > { %824 = vst [vmem:[%s1255_s19 + $0x28] sm:$0xff] %v792_v55  ;;  %840 = vst [vmem:[%s1255_s19 + $0xa8] sm:$0xff] %v808_v56 }
 0x10a   : > { %v1050_v57 = vpop.f32.mrb[8].mxu0  ;;  %v1066_v58 = vpop.f32.mrb[8].mxu1 }
 0x10b   : > { %v797_v59 = vadd.f32 %v1050_v57, %v1250_v24  ;;  %v813_v60 = vadd.f32 %v1066_v58, %v1250_v24  ;;  %v586_v61 = vpop.f32.mrb[9].mxu0  ;;  %v650_v62 = vpop.f32.mrb[9].mxu1 }
 0x10c   : > { %v795_v63 = vadd.f32 %v1250_v24, %v586_v61  ;;  %v811_v0 = vadd.f32 %v1250_v24, %v650_v62  ;;  %v1051_v1 = vpop.f32.mrb[10].mxu0  ;;  %v1067_v2 = vpop.f32.mrb[10].mxu1 }
 0x10d   : > { %829 = vst [vmem:[%s1255_s19 + $0x50] sm:$0xff] %v797_v59  ;;  %845 = vst [vmem:[%s1255_s19 + $0xd0] sm:$0xff] %v813_v60  ;;  %v798_v3 = vadd.f32 %v1051_v1, %v1250_v24  ;;  %v814_v4 = vadd.f32 %v1067_v2, %v1250_v24  ;;  %v589_v5 = vpop.f32.mrb[11].mxu0  ;;  %v653_v6 = vpop.f32.mrb[11].mxu1 }
 0x10e   : > { %827 = vst [vmem:[%s1255_s19 + $0x40] sm:$0xff] %v795_v63  ;;  %843 = vst [vmem:[%s1255_s19 + $0xc0] sm:$0xff] %v811_v0  ;;  %v796_v7 = vadd.f32 %v1250_v24, %v589_v5  ;;  %v812_v8 = vadd.f32 %v1250_v24, %v653_v6 }
 0x10f   : > { %830 = vst [vmem:[%s1255_s19 + $0x58] sm:$0xff] %v798_v3  ;;  %846 = vst [vmem:[%s1255_s19 + $0xd8] sm:$0xff] %v814_v4 }
 0x110   : > { %828 = vst [vmem:[%s1255_s19 + $0x48] sm:$0xff] %v796_v7  ;;  %844 = vst [vmem:[%s1255_s19 + $0xc8] sm:$0xff] %v812_v8 }
 0x112   : > { %v1054_v9 = vpop.f32.mrb[12].mxu0  ;;  %v1070_v10 = vpop.f32.mrb[12].mxu1 }
 0x113   : > { %v801_v11 = vadd.f32 %v1054_v9, %v1250_v24  ;;  %v817_v12 = vadd.f32 %v1070_v10, %v1250_v24  ;;  %v602_v13 = vpop.f32.mrb[13].mxu0  ;;  %v666_v14 = vpop.f32.mrb[13].mxu1 }
 0x114   : > { %v799_v15 = vadd.f32 %v1250_v24, %v602_v13  ;;  %v815_v16 = vadd.f32 %v1250_v24, %v666_v14  ;;  %v1055_v17 = vpop.f32.mrb[14].mxu0  ;;  %v1071_v18 = vpop.f32.mrb[14].mxu1 }
 0x115   : > { %833 = vst [vmem:[%s1255_s19 + $0x70] sm:$0xff] %v801_v11  ;;  %849 = vst [vmem:[%s1255_s19 + $0xf0] sm:$0xff] %v817_v12  ;;  %v802_v19 = vadd.f32 %v1055_v17, %v1250_v24  ;;  %v818_v20 = vadd.f32 %v1071_v18, %v1250_v24  ;;  %v605_v21 = vpop.f32.mrb[15].mxu0  ;;  %v669_v22 = vpop.f32.mrb[15].mxu1 }
 0x116   : > { %831 = vst [vmem:[%s1255_s19 + $0x60] sm:$0xff] %v799_v15  ;;  %847 = vst [vmem:[%s1255_s19 + $0xe0] sm:$0xff] %v815_v16  ;;  %v800_v23 = vadd.f32 %v1250_v24, %v605_v21  ;;  %v816_v25 = vadd.f32 %v1250_v24, %v669_v22 }
 0x117   : > { %834 = vst [vmem:[%s1255_s19 + $0x78] sm:$0xff] %v802_v19  ;;  %850 = vst [vmem:[%s1255_s19 + $0xf8] sm:$0xff] %v818_v20 }
 0x118   : > { %832 = vst [vmem:[%s1255_s19 + $0x68] sm:$0xff] %v800_v23  ;;  %848 = vst [vmem:[%s1255_s19 + $0xe8] sm:$0xff] %v816_v25 }
 0x119 PF: > { %s13_s14 = sadd.s32 1, %s1158_s14   ;;  %s1334_s12 = smov %s1154_s13 }
 0x11a   : > { %p10_p5 = scmp.ge.s32.totalorder %s13_s14, 4   ;;  %s1335_s13 = smov %s1337_s15 }
 0x11c   :  { %12 = sbr.rel (!%p10_p5) target bundleno = 2 (0x2), region = 76 }

// kernel: global_generator_forward.31
= control target key start
LH: loop header
LB: loop body
LE: loop exit
PB: predicated region body
PF: predicated region fallthrough
CT: control target
= control target key end

     0   :  { %s804_s1 = inlined_call_operand.vmem [shape: bf16[256,128], index: 1, kind: input, shape index: {}]   ;;  %s805_s0 = inlined_call_operand.vmem [shape: bf16[128,256], index: 0, kind: input, shape index: {}]   ;;  %s806_s2 = inlined_call_operand.vmem [shape: f32[1,128], index: 2, kind: input, shape index: {}]   ;;  %s807_s3 = inlined_call_operand.vmem [shape: f32[128,128], index: 3, kind: output, shape index: {}]  }
   0x1   :  { %v579_v0 = vld [vmem:[%s804_s1 + $0x40] sm:$0xff]   ;;  %v581_v2 = vld [vmem:[%s804_s1 + $0x48] sm:$0xff]   ;;  %v583_v4 = vld [vmem:[%s804_s1 + $0x50] sm:$0xff]  }
   0x2   :  { %v580_v1 = vld [vmem:[%s804_s1] sm:$0xff]   ;;  %499 = vmatprep.subr.bf16.mxu0 %v579_v0  ;;  %563 = vmatprep.subr.bf16.mxu1 %v579_v0  ;;  %v582_v3 = vld [vmem:[%s804_s1 + $0x8] sm:$0xff]   ;;  %v584_v5 = vld [vmem:[%s804_s1 + $0x10] sm:$0xff]  }
   0x3   :  { %500 = vmatpush3.bf16.msra.mxu0 %v580_v1  ;;  %571 = vmatpush3.bf16.msra.mxu1 %v580_v1  ;;  %v585_v6 = vld [vmem:[%s804_s1 + $0x58] sm:$0xff]   ;;  %v587_v8 = vld [vmem:[%s804_s1 + $0x60] sm:$0xff]   ;;  %v589_v10 = vld [vmem:[%s804_s1 + $0x68] sm:$0xff]  }
   0x4   :  { %501 = vmatprep.subr.bf16.mxu0 %v581_v2  ;;  %564 = vmatprep.subr.bf16.mxu1 %v581_v2  ;;  %v586_v7 = vld [vmem:[%s804_s1 + $0x18] sm:$0xff]   ;;  %v588_v9 = vld [vmem:[%s804_s1 + $0x20] sm:$0xff]   ;;  %v590_v13 = vld [vmem:[%s804_s1 + $0x28] sm:$0xff]  }
   0x5   :  { %v597_v11 = vld [vmem:[%s805_s0 + $0x4] ss:$8 sps:$4 sm:$0xff]   ;;  %v591_v14 = vld [vmem:[%s804_s1 + $0x70] sm:$0xff]   ;;  %v593_v16 = vld [vmem:[%s804_s1 + $0x78] sm:$0xff]  }
   0x6   :  { %v600_v12 = vld [vmem:[%s805_s0 + $0x44] ss:$8 sps:$4 sm:$0xff]   ;;  %307 = vmatprep.mubr.bf16.mxu0 %v597_v11  ;;  %v592_v15 = vld [vmem:[%s804_s1 + $0x30] sm:$0xff]   ;;  %v594_v17 = vld [vmem:[%s804_s1 + $0x38] sm:$0xff]  }
   0x7   :  { %502 = vmatpush3.bf16.msra.mxu0 %v582_v3  ;;  %572 = vmatpush3.bf16.msra.mxu1 %v582_v3  ;;  %v595_v18 = vld [vmem:[%s805_s0] ss:$8 sps:$4 sm:$0xff]   ;;  %v601_v20 = vld [vmem:[%s805_s0 + $0x14] ss:$8 sps:$4 sm:$0xff]   ;;  %v605_v22 = vld [vmem:[%s805_s0 + $0x10] ss:$8 sps:$4 sm:$0xff]  }
   0x8   :  { %503 = vmatprep.subr.bf16.mxu0 %v583_v4  ;;  %565 = vmatprep.subr.bf16.mxu1 %v583_v4  ;;  %v598_v19 = vld [vmem:[%s805_s0 + $0x40] ss:$8 sps:$4 sm:$0xff]   ;;  %v603_v21 = vld [vmem:[%s805_s0 + $0x54] ss:$8 sps:$4 sm:$0xff]   ;;  %v606_v23 = vld [vmem:[%s805_s0 + $0x50] ss:$8 sps:$4 sm:$0xff]  }
   0x9   :  { %339 = vmatprep.mubr.bf16.mxu1 %v600_v12  ;;  %v607_v24 = vld [vmem:[%s805_s0 + $0x24] ss:$8 sps:$4 sm:$0xff]   ;;  %v611_v26 = vld [vmem:[%s805_s0 + $0x20] ss:$8 sps:$4 sm:$0xff]   ;;  %v613_v28 = vld [vmem:[%s805_s0 + $0x34] ss:$8 sps:$4 sm:$0xff]  }
   0xa   :  { %v609_v25 = vld [vmem:[%s805_s0 + $0x64] ss:$8 sps:$4 sm:$0xff]   ;;  %v612_v27 = vld [vmem:[%s805_s0 + $0x60] ss:$8 sps:$4 sm:$0xff]   ;;  %v615_v29 = vld [vmem:[%s805_s0 + $0x74] ss:$8 sps:$4 sm:$0xff]  }
   0xb   :  { %504 = vmatpush3.bf16.msra.mxu0 %v584_v5  ;;  %573 = vmatpush3.bf16.msra.mxu1 %v584_v5  ;;  %v617_v30 = vld [vmem:[%s805_s0 + $0x30] ss:$8 sps:$4 sm:$0xff]   ;;  %v738_v35 = vld [vmem:[%s806_s2] ss:$0 sm:$0xff] }
   0xc   :  { %505 = vmatprep.subr.bf16.mxu0 %v585_v6  ;;  %566 = vmatprep.subr.bf16.mxu1 %v585_v6  ;;  %v618_v31 = vld [vmem:[%s805_s0 + $0x70] ss:$8 sps:$4 sm:$0xff]  }
   0xf   :  { %506 = vmatpush3.bf16.msra.mxu0 %v586_v7  ;;  %574 = vmatpush3.bf16.msra.mxu1 %v586_v7 }
  0x10   :  { %507 = vmatprep.subr.bf16.mxu0 %v587_v8  ;;  %567 = vmatprep.subr.bf16.mxu1 %v587_v8 }
  0x13   :  { %508 = vmatpush3.bf16.msra.mxu0 %v588_v9  ;;  %575 = vmatpush3.bf16.msra.mxu1 %v588_v9 }
  0x14   :  { %509 = vmatprep.subr.bf16.mxu0 %v589_v10  ;;  %568 = vmatprep.subr.bf16.mxu1 %v589_v10 }
  0x17   :  { %510 = vmatpush3.bf16.msra.mxu0 %v590_v13  ;;  %576 = vmatpush3.bf16.msra.mxu1 %v590_v13 }
  0x18   :  { %511 = vmatprep.subr.bf16.mxu0 %v591_v14  ;;  %569 = vmatprep.subr.bf16.mxu1 %v591_v14 }
  0x1b   :  { %512 = vmatpush3.bf16.msra.mxu0 %v592_v15  ;;  %577 = vmatpush3.bf16.msra.mxu1 %v592_v15 }
  0x1c   :  { %513 = vmatprep.subr.bf16.mxu0 %v593_v16  ;;  %570 = vmatprep.subr.bf16.mxu1 %v593_v16 }
  0x1f   :  { %514 = vmatpush3.bf16.msra.mxu0 %v594_v17  ;;  %578 = vmatpush3.bf16.msra.mxu1 %v594_v17 }
  0x22   :  { %308 = vmatmul.mubr.bf16.vlgmr.msra.gmra.mrb[0].mxu0 %v595_v18  ;;  %340 = vmatmul.mubr.bf16.vlgmr.msra.gmra.mrb[0].mxu1 %v598_v19 }
  0x23   :  { %315 = vmatprep.mubr.bf16.mxu0 %v601_v20  ;;  %347 = vmatprep.mubr.bf16.mxu1 %v603_v21 }
  0x2a   :  { %316 = vmatmul.mubr.bf16.gmra.mrb[4].mxu0 %v605_v22  ;;  %348 = vmatmul.mubr.bf16.gmra.mrb[4].mxu1 %v606_v23 }
  0x2b   :  { %323 = vmatprep.mubr.bf16.mxu0 %v607_v24  ;;  %355 = vmatprep.mubr.bf16.mxu1 %v609_v25 }
  0x32   :  { %324 = vmatmul.mubr.bf16.gmra.mrb[8].mxu0 %v611_v26  ;;  %356 = vmatmul.mubr.bf16.gmra.mrb[8].mxu1 %v612_v27 }
  0x33   :  { %331 = vmatprep.mubr.bf16.mxu0 %v613_v28  ;;  %363 = vmatprep.mubr.bf16.mxu1 %v615_v29 }
  0x3a   :  { %332 = vmatmul.mubr.bf16.gmra.mrb[12].mxu0 %v617_v30  ;;  %364 = vmatmul.mubr.bf16.gmra.mrb[12].mxu1 %v618_v31 }
  0xf5   :  { %v515_v32 = vpop.f32.mrb[0].mxu0  ;;  %v539_v33 = vpop.f32.mrb[0].mxu1 }
  0xf6   :  { %v516_v34 = vpop.f32.mrb[1].mxu0  ;;  %v540_v36 = vpop.f32.mrb[1].mxu1 }
  0xf7   :  { %v517_v37 = vadd.f32 %v516_v34, %v515_v32  ;;  %v541_v38 = vadd.f32 %v540_v36, %v539_v33  ;;  %v518_v39 = vpop.f32.mrb[2].mxu0  ;;  %v542_v40 = vpop.f32.mrb[2].mxu1 }
  0xf8   :  { %v519_v41 = vpop.f32.mrb[3].mxu0  ;;  %v543_v42 = vpop.f32.mrb[3].mxu1 }
  0xf9   :  { %v430_v43 = vadd.f32 %v517_v37, %v738_v35  ;;  %v438_v44 = vadd.f32 %v541_v38, %v738_v35  ;;  %v520_v45 = vadd.f32 %v519_v41, %v518_v39  ;;  %v544_v46 = vadd.f32 %v543_v42, %v542_v40 }
  0xfb   :  { %446 = vst [vmem:[%s807_s3] sm:$0xff] %v430_v43  ;;  %454 = vst [vmem:[%s807_s3 + $0x40] sm:$0xff] %v438_v44  ;;  %v431_v47 = vadd.f32 %v520_v45, %v738_v35  ;;  %v439_v48 = vadd.f32 %v544_v46, %v738_v35 }
  0xfd   :  { %447 = vst [vmem:[%s807_s3 + $0x8] sm:$0xff] %v431_v47  ;;  %455 = vst [vmem:[%s807_s3 + $0x48] sm:$0xff] %v439_v48  ;;  %v521_v49 = vpop.f32.mrb[4].mxu0  ;;  %v545_v50 = vpop.f32.mrb[4].mxu1 }
  0xfe   :  { %v522_v51 = vpop.f32.mrb[5].mxu0  ;;  %v546_v52 = vpop.f32.mrb[5].mxu1 }
  0xff   :  { %v523_v53 = vadd.f32 %v522_v51, %v521_v49  ;;  %v547_v54 = vadd.f32 %v546_v52, %v545_v50  ;;  %v524_v55 = vpop.f32.mrb[6].mxu0  ;;  %v548_v56 = vpop.f32.mrb[6].mxu1 }
 0x100   :  { %v525_v57 = vpop.f32.mrb[7].mxu0  ;;  %v549_v58 = vpop.f32.mrb[7].mxu1 }
 0x101   :  { %v432_v59 = vadd.f32 %v523_v53, %v738_v35  ;;  %v440_v60 = vadd.f32 %v547_v54, %v738_v35  ;;  %v526_v61 = vadd.f32 %v525_v57, %v524_v55  ;;  %v550_v62 = vadd.f32 %v549_v58, %v548_v56 }
 0x103   :  { %448 = vst [vmem:[%s807_s3 + $0x10] sm:$0xff] %v432_v59  ;;  %456 = vst [vmem:[%s807_s3 + $0x50] sm:$0xff] %v440_v60  ;;  %v433_v63 = vadd.f32 %v526_v61, %v738_v35  ;;  %v441_v0 = vadd.f32 %v550_v62, %v738_v35 }
 0x105   :  { %449 = vst [vmem:[%s807_s3 + $0x18] sm:$0xff] %v433_v63  ;;  %457 = vst [vmem:[%s807_s3 + $0x58] sm:$0xff] %v441_v0  ;;  %v527_v1 = vpop.f32.mrb[8].mxu0  ;;  %v551_v2 = vpop.f32.mrb[8].mxu1 }
 0x106   :  { %v528_v3 = vpop.f32.mrb[9].mxu0  ;;  %v552_v4 = vpop.f32.mrb[9].mxu1 }
 0x107   :  { %v529_v5 = vadd.f32 %v528_v3, %v527_v1  ;;  %v553_v6 = vadd.f32 %v552_v4, %v551_v2  ;;  %v530_v7 = vpop.f32.mrb[10].mxu0  ;;  %v554_v8 = vpop.f32.mrb[10].mxu1 }
 0x108   :  { %v531_v9 = vpop.f32.mrb[11].mxu0  ;;  %v555_v10 = vpop.f32.mrb[11].mxu1 }
 0x109   :  { %v434_v11 = vadd.f32 %v529_v5, %v738_v35  ;;  %v442_v12 = vadd.f32 %v553_v6, %v738_v35  ;;  %v532_v13 = vadd.f32 %v531_v9, %v530_v7  ;;  %v556_v14 = vadd.f32 %v555_v10, %v554_v8 }
 0x10b   :  { %450 = vst [vmem:[%s807_s3 + $0x20] sm:$0xff] %v434_v11  ;;  %458 = vst [vmem:[%s807_s3 + $0x60] sm:$0xff] %v442_v12  ;;  %v435_v15 = vadd.f32 %v532_v13, %v738_v35  ;;  %v443_v16 = vadd.f32 %v556_v14, %v738_v35 }
 0x10d   :  { %451 = vst [vmem:[%s807_s3 + $0x28] sm:$0xff] %v435_v15  ;;  %459 = vst [vmem:[%s807_s3 + $0x68] sm:$0xff] %v443_v16  ;;  %v533_v17 = vpop.f32.mrb[12].mxu0  ;;  %v557_v18 = vpop.f32.mrb[12].mxu1 }
 0x10e   :  { %v534_v19 = vpop.f32.mrb[13].mxu0  ;;  %v558_v20 = vpop.f32.mrb[13].mxu1 }
 0x10f   :  { %v535_v21 = vadd.f32 %v534_v19, %v533_v17  ;;  %v559_v22 = vadd.f32 %v558_v20, %v557_v18  ;;  %v536_v23 = vpop.f32.mrb[14].mxu0  ;;  %v560_v24 = vpop.f32.mrb[14].mxu1 }
 0x110   :  { %v537_v25 = vpop.f32.mrb[15].mxu0  ;;  %v561_v26 = vpop.f32.mrb[15].mxu1 }
 0x111   :  { %v436_v27 = vadd.f32 %v535_v21, %v738_v35  ;;  %v444_v28 = vadd.f32 %v559_v22, %v738_v35  ;;  %v538_v29 = vadd.f32 %v537_v25, %v536_v23  ;;  %v562_v30 = vadd.f32 %v561_v26, %v560_v24 }
 0x113   :  { %452 = vst [vmem:[%s807_s3 + $0x30] sm:$0xff] %v436_v27  ;;  %460 = vst [vmem:[%s807_s3 + $0x70] sm:$0xff] %v444_v28  ;;  %v437_v31 = vadd.f32 %v538_v29, %v738_v35  ;;  %v445_v32 = vadd.f32 %v562_v30, %v738_v35 }
 0x115   :  { %453 = vst [vmem:[%s807_s3 + $0x38] sm:$0xff] %v437_v31  ;;  %461 = vst [vmem:[%s807_s3 + $0x78] sm:$0xff] %v445_v32 }

// kernel: global_generator_forward.32
= control target key start
LH: loop header
LB: loop body
LE: loop exit
PB: predicated region body
PF: predicated region fallthrough
CT: control target
= control target key end

     0   :  { %v204_v0 = vmov 0.0   ;;  %s286_s1 = inlined_call_operand.vmem [shape: f32[1,128], index: 1, kind: output, shape index: {0}]   ;;  %s287_s2 = inlined_call_operand.vmem [shape: f32[1,128], index: 2, kind: output, shape index: {1}]   ;;  %s288_s0 = inlined_call_operand.vmem [shape: f32[128,128], index: 0, kind: input, shape index: {}]  }
   0x1   :  { %14 = vst [vmem:[%s286_s1] sm:$0x1] %v204_v0  ;;  %15 = vst [vmem:[%s287_s2] sm:$0x1] %v204_v0  ;;  %v16_v1 = vld [vmem:[%s288_s0] sm:$0xff]  ;;  %v17_v2 = vld [vmem:[%s288_s0 + $0x8] sm:$0xff] }
   0x2   :  { %v18_v3 = vld [vmem:[%s288_s0 + $0x10] sm:$0xff]  ;;  %v19_v4 = vld [vmem:[%s288_s0 + $0x18] sm:$0xff]  ;;  %v132_v5 = vadd.f32 %v17_v2, %v16_v1  ;;  %v156_v6 = vmul.f32 %v16_v1, %v16_v1  ;;  %v157_v7 = vmul.f32 %v17_v2, %v17_v2  ;;  %v20_v9 = vld [vmem:[%s288_s0 + $0x20] sm:$0xff] }
   0x3   :  { %v158_v8 = vmul.f32 %v18_v3, %v18_v3  ;;  %v159_v11 = vmul.f32 %v19_v4, %v19_v4  ;;  %v21_v13 = vld [vmem:[%s288_s0 + $0x28] sm:$0xff]  ;;  %v160_v15 = vmul.f32 %v20_v9, %v20_v9  ;;  %v22_v17 = vld [vmem:[%s288_s0 + $0x30] sm:$0xff]  ;;  %v23_v21 = vld [vmem:[%s288_s0 + $0x38] sm:$0xff] }
   0x4   :  { %v133_v10 = vadd.f32 %v132_v5, %v18_v3  ;;  %v172_v12 = vadd.f32 %v157_v7, %v156_v6  ;;  %v161_v19 = vmul.f32 %v21_v13, %v21_v13  ;;  %v162_v23 = vmul.f32 %v22_v17, %v22_v17  ;;  %v24_v25 = vld [vmem:[%s288_s0 + $0x40] sm:$0xff]  ;;  %v25_v29 = vld [vmem:[%s288_s0 + $0x48] sm:$0xff]  ;;  %v26_v33 = vld [vmem:[%s288_s0 + $0x50] sm:$0xff] }
   0x5   :  { %v163_v27 = vmul.f32 %v23_v21, %v23_v21  ;;  %v164_v31 = vmul.f32 %v24_v25, %v24_v25  ;;  %v165_v35 = vmul.f32 %v25_v29, %v25_v29  ;;  %v27_v37 = vld [vmem:[%s288_s0 + $0x58] sm:$0xff]  ;;  %v166_v39 = vmul.f32 %v26_v33, %v26_v33  ;;  %v28_v41 = vld [vmem:[%s288_s0 + $0x60] sm:$0xff]  ;;  %v29_v45 = vld [vmem:[%s288_s0 + $0x68] sm:$0xff] }
   0x6   :  { %v134_v14 = vadd.f32 %v133_v10, %v19_v4  ;;  %v173_v16 = vadd.f32 %v172_v12, %v158_v8  ;;  %v167_v43 = vmul.f32 %v27_v37, %v27_v37  ;;  %v168_v47 = vmul.f32 %v28_v41, %v28_v41  ;;  %v30_v49 = vld [vmem:[%s288_s0 + $0x70] sm:$0xff]  ;;  %v31_v53 = vld [vmem:[%s288_s0 + $0x78] sm:$0xff] }
   0x7   :  { %v169_v51 = vmul.f32 %v29_v45, %v29_v45  ;;  %v170_v55 = vmul.f32 %v30_v49, %v30_v49  ;;  %v171_v58 = vmul.f32 %v31_v53, %v31_v53 }
   0x8   :  { %v135_v18 = vadd.f32 %v134_v14, %v20_v9  ;;  %v174_v20 = vadd.f32 %v173_v16, %v159_v11  ;;  %v131_v7 = vld [vmem:[%s286_s1] sm:$0x1] }
   0x9   :  { %v155_v12 = vld [vmem:[%s287_s2] sm:$0x1] }
   0xa   :  { %v136_v22 = vadd.f32 %v135_v18, %v21_v13  ;;  %v175_v24 = vadd.f32 %v174_v20, %v160_v15 }
   0xc   :  { %v137_v26 = vadd.f32 %v136_v22, %v22_v17  ;;  %v176_v28 = vadd.f32 %v175_v24, %v161_v19 }
   0xe   :  { %v138_v30 = vadd.f32 %v137_v26, %v23_v21  ;;  %v177_v32 = vadd.f32 %v176_v28, %v162_v23 }
  0x10   :  { %v139_v34 = vadd.f32 %v138_v30, %v24_v25  ;;  %v178_v36 = vadd.f32 %v177_v32, %v163_v27 }
  0x12   :  { %v140_v38 = vadd.f32 %v139_v34, %v25_v29  ;;  %v179_v40 = vadd.f32 %v178_v36, %v164_v31 }
  0x14   :  { %v141_v42 = vadd.f32 %v140_v38, %v26_v33  ;;  %v180_v44 = vadd.f32 %v179_v40, %v165_v35 }
  0x16   :  { %v142_v46 = vadd.f32 %v141_v42, %v27_v37  ;;  %v181_v48 = vadd.f32 %v180_v44, %v166_v39 }
  0x18   :  { %v143_v50 = vadd.f32 %v142_v46, %v28_v41  ;;  %v182_v52 = vadd.f32 %v181_v48, %v167_v43 }
  0x1a   :  { %v144_v54 = vadd.f32 %v143_v50, %v29_v45  ;;  %v183_v56 = vadd.f32 %v182_v52, %v168_v47 }
  0x1c   :  { %v145_v57 = vadd.f32 %v144_v54, %v30_v49  ;;  %v184_v59 = vadd.f32 %v183_v56, %v169_v51 }
  0x1e   :  { %v146_v60 = vadd.f32 %v145_v57, %v31_v53  ;;  %v185_v61 = vadd.f32 %v184_v59, %v170_v55 }
  0x20   :  { %v147_v62 = vrot.slane %v146_v60, 4  ;;  %v186_v63 = vadd.f32 %v185_v61, %v171_v58 }
  0x22   :  { %v148_v0 = vadd.f32 %v147_v62, %v146_v60  ;;  %v187_v1 = vrot.slane %v186_v63, 4 }
  0x24   :  { %v149_v2 = vrot.slane %v148_v0, 2  ;;  %v188_v3 = vadd.f32 %v187_v1, %v186_v63 }
  0x26   :  { %v150_v4 = vadd.f32 %v149_v2, %v148_v0  ;;  %v189_v5 = vrot.slane %v188_v3, 2 }
  0x28   :  { %v151_v6 = vrot.slane %v150_v4, 1  ;;  %v190_v8 = vadd.f32 %v189_v5, %v188_v3 }
  0x2a   :  { %v152_v9 = vadd.f32 %v151_v6, %v150_v4  ;;  %v191_v10 = vrot.slane %v190_v8, 1 }
  0x2c   :  { %v153_v11 = vadd.f32 %v152_v9, %v131_v7  ;;  %v192_v13 = vadd.f32 %v191_v10, %v190_v8 }
  0x2e   :  { %154 = vst [vmem:[%s286_s1] sm:$0x1] %v153_v11  ;;  %v193_v14 = vadd.f32 %v192_v13, %v155_v12 }
  0x30   :  { %194 = vst [vmem:[%s287_s2] sm:$0x1] %v193_v14 }

// kernel: global_generator_forward.33
= control target key start
LH: loop header
LB: loop body
LE: loop exit
PB: predicated region body
PF: predicated region fallthrough
CT: control target
= control target key end

     0   :  { %s254_s0 = inlined_call_operand.vmem [shape: f32[128,128], index: 0, kind: input, shape index: {}]   ;;  %s255_s1 = inlined_call_operand.vmem [shape: f32[1,128], index: 1, kind: input, shape index: {}]   ;;  %s256_s2 = inlined_call_operand.vmem [shape: f32[1,128], index: 2, kind: input, shape index: {}]   ;;  %s257_s3 = inlined_call_operand.vmem [shape: f32[128,128], index: 3, kind: output, shape index: {}]  }
   0x1   :  { %v14_v0 = vld [vmem:[%s254_s0] sm:$0xff]  ;;  %v15_v4 = vld [vmem:[%s254_s0 + $0x8] sm:$0xff]  ;;  %v16_v5 = vld [vmem:[%s254_s0 + $0x10] sm:$0xff] }
   0x2   :  { %v112_v1 = vld [vmem:[%s255_s1] ss:$0 sm:$0xff]  ;;  %v17_v6 = vld [vmem:[%s254_s0 + $0x18] sm:$0xff]  ;;  %v19_v11 = vld [vmem:[%s254_s0 + $0x28] sm:$0xff] }
   0x3   :  { %v143_v2 = vld [vmem:[%s256_s2] ss:$0 sm:$0xff]  ;;  %v37_v3 = vmul.f32 %v112_v1, %v14_v0  ;;  %v38_v7 = vmul.f32 %v112_v1, %v15_v4  ;;  %v39_v8 = vmul.f32 %v112_v1, %v16_v5  ;;  %v40_v9 = vmul.f32 %v112_v1, %v17_v6  ;;  %v20_v12 = vld [vmem:[%s254_s0 + $0x30] sm:$0xff]  ;;  %v21_v17 = vld [vmem:[%s254_s0 + $0x38] sm:$0xff] }
   0x4   :  { %v18_v10 = vld [vmem:[%s254_s0 + $0x20] sm:$0xff]  ;;  %v42_v15 = vmul.f32 %v112_v1, %v19_v11  ;;  %v43_v16 = vmul.f32 %v112_v1, %v20_v12  ;;  %v44_v21 = vmul.f32 %v112_v1, %v21_v17  ;;  %v23_v27 = vld [vmem:[%s254_s0 + $0x48] sm:$0xff]  ;;  %v24_v28 = vld [vmem:[%s254_s0 + $0x50] sm:$0xff] }
   0x5   :  { %v60_v13 = vadd.f32 %v143_v2, %v37_v3  ;;  %v41_v14 = vmul.f32 %v112_v1, %v18_v10  ;;  %v61_v18 = vadd.f32 %v143_v2, %v38_v7  ;;  %v62_v19 = vadd.f32 %v143_v2, %v39_v8  ;;  %v22_v22 = vld [vmem:[%s254_s0 + $0x40] sm:$0xff]  ;;  %v25_v29 = vld [vmem:[%s254_s0 + $0x58] sm:$0xff]  ;;  %v27_v35 = vld [vmem:[%s254_s0 + $0x68] sm:$0xff] }
   0x6   :  { %v63_v20 = vadd.f32 %v143_v2, %v40_v9  ;;  %v65_v25 = vadd.f32 %v143_v2, %v42_v15  ;;  %v66_v26 = vadd.f32 %v143_v2, %v43_v16  ;;  %v67_v33 = vadd.f32 %v143_v2, %v44_v21  ;;  %v26_v34 = vld [vmem:[%s254_s0 + $0x60] sm:$0xff]  ;;  %v28_v36 = vld [vmem:[%s254_s0 + $0x70] sm:$0xff]  ;;  %v29_v41 = vld [vmem:[%s254_s0 + $0x78] sm:$0xff] }
   0x7   :  { %v76_v23 = vmax.f32 %v60_v13, 0.0  ;;  %v64_v24 = vadd.f32 %v143_v2, %v41_v14  ;;  %v77_v30 = vmax.f32 %v61_v18, 0.0  ;;  %v78_v31 = vmax.f32 %v62_v19, 0.0 }
   0x8   :  { %v79_v32 = vmax.f32 %v63_v20, 0.0  ;;  %v81_v38 = vmax.f32 %v65_v25, 0.0  ;;  %v82_v39 = vmax.f32 %v66_v26, 0.0  ;;  %v45_v40 = vmul.f32 %v112_v1, %v22_v22 }
   0x9   :  { %92 = vst [vmem:[%s257_s3] sm:$0xff] %v76_v23  ;;  %v80_v37 = vmax.f32 %v64_v24, 0.0  ;;  %93 = vst [vmem:[%s257_s3 + $0x8] sm:$0xff] %v77_v30  ;;  %v83_v42 = vmax.f32 %v67_v33, 0.0  ;;  %v46_v43 = vmul.f32 %v112_v1, %v23_v27  ;;  %v47_v44 = vmul.f32 %v112_v1, %v24_v28 }
   0xa   :  { %94 = vst [vmem:[%s257_s3 + $0x10] sm:$0xff] %v78_v31  ;;  %95 = vst [vmem:[%s257_s3 + $0x18] sm:$0xff] %v79_v32  ;;  %v48_v45 = vmul.f32 %v112_v1, %v25_v29  ;;  %v68_v46 = vadd.f32 %v143_v2, %v45_v40  ;;  %v49_v47 = vmul.f32 %v112_v1, %v26_v34 }
   0xb   :  { %96 = vst [vmem:[%s257_s3 + $0x20] sm:$0xff] %v80_v37  ;;  %97 = vst [vmem:[%s257_s3 + $0x28] sm:$0xff] %v81_v38  ;;  %v50_v48 = vmul.f32 %v112_v1, %v27_v35  ;;  %v51_v49 = vmul.f32 %v112_v1, %v28_v36  ;;  %v69_v50 = vadd.f32 %v143_v2, %v46_v43 }
   0xc   :  { %98 = vst [vmem:[%s257_s3 + $0x30] sm:$0xff] %v82_v39  ;;  %99 = vst [vmem:[%s257_s3 + $0x38] sm:$0xff] %v83_v42  ;;  %v70_v51 = vadd.f32 %v143_v2, %v47_v44  ;;  %v71_v52 = vadd.f32 %v143_v2, %v48_v45  ;;  %v52_v53 = vmul.f32 %v112_v1, %v29_v41  ;;  %v84_v54 = vmax.f32 %v68_v46, 0.0 }
   0xd   :  { %v72_v55 = vadd.f32 %v143_v2, %v49_v47  ;;  %v73_v56 = vadd.f32 %v143_v2, %v50_v48  ;;  %v74_v57 = vadd.f32 %v143_v2, %v51_v49  ;;  %v85_v58 = vmax.f32 %v69_v50, 0.0 }
   0xe   :  { %v86_v59 = vmax.f32 %v70_v51, 0.0  ;;  %v87_v60 = vmax.f32 %v71_v52, 0.0  ;;  %v75_v61 = vadd.f32 %v143_v2, %v52_v53  ;;  %100 = vst [vmem:[%s257_s3 + $0x40] sm:$0xff] %v84_v54 }
   0xf   :  { %v88_v62 = vmax.f32 %v72_v55, 0.0  ;;  %v89_v63 = vmax.f32 %v73_v56, 0.0  ;;  %v90_v0 = vmax.f32 %v74_v57, 0.0  ;;  %101 = vst [vmem:[%s257_s3 + $0x48] sm:$0xff] %v85_v58 }
  0x10   :  { %102 = vst [vmem:[%s257_s3 + $0x50] sm:$0xff] %v86_v59  ;;  %103 = vst [vmem:[%s257_s3 + $0x58] sm:$0xff] %v87_v60  ;;  %v91_v1 = vmax.f32 %v75_v61, 0.0 }
  0x11   :  { %104 = vst [vmem:[%s257_s3 + $0x60] sm:$0xff] %v88_v62  ;;  %105 = vst [vmem:[%s257_s3 + $0x68] sm:$0xff] %v89_v63 }
  0x12   :  { %106 = vst [vmem:[%s257_s3 + $0x70] sm:$0xff] %v90_v0  ;;  %107 = vst [vmem:[%s257_s3 + $0x78] sm:$0xff] %v91_v1 }

// kernel: global_generator_forward.35
= control target key start
LH: loop header
LB: loop body
LE: loop exit
PB: predicated region body
PF: predicated region fallthrough
CT: control target
= control target key end

     0   :  { %v84_v0 = vmov 0.0   ;;  %s130_s1 = inlined_call_operand.vmem [shape: f32[1,128], index: 1, kind: output, shape index: {0}]   ;;  %s131_s2 = inlined_call_operand.vmem [shape: f32[1,128], index: 2, kind: output, shape index: {1}]   ;;  %s132_s0 = inlined_call_operand.vmem [shape: f32[32,128], index: 0, kind: input, shape index: {}]  }
   0x1   :  { %14 = vst [vmem:[%s130_s1] sm:$0x1] %v84_v0  ;;  %15 = vst [vmem:[%s131_s2] sm:$0x1] %v84_v0  ;;  %v16_v1 = vld [vmem:[%s132_s0] sm:$0xff]  ;;  %v17_v2 = vld [vmem:[%s132_s0 + $0x8] sm:$0xff] }
   0x2   :  { %v18_v3 = vld [vmem:[%s132_s0 + $0x10] sm:$0xff]  ;;  %v19_v4 = vld [vmem:[%s132_s0 + $0x18] sm:$0xff]  ;;  %v48_v5 = vadd.f32 %v17_v2, %v16_v1  ;;  %v60_v6 = vmul.f32 %v16_v1, %v16_v1  ;;  %v61_v7 = vmul.f32 %v17_v2, %v17_v2 }
   0x3   :  { %v62_v8 = vmul.f32 %v18_v3, %v18_v3  ;;  %v63_v10 = vmul.f32 %v19_v4, %v19_v4 }
   0x4   :  { %v49_v9 = vadd.f32 %v48_v5, %v18_v3  ;;  %v64_v11 = vadd.f32 %v61_v7, %v60_v6 }
   0x6   :  { %v50_v12 = vadd.f32 %v49_v9, %v19_v4  ;;  %v65_v13 = vadd.f32 %v64_v11, %v62_v8 }
   0x8   :  { %v51_v14 = vrot.slane %v50_v12, 4  ;;  %v66_v15 = vadd.f32 %v65_v13, %v63_v10  ;;  %v47_v24 = vld [vmem:[%s130_s1] sm:$0x1] }
   0x9   :  { %v59_v27 = vld [vmem:[%s131_s2] sm:$0x1] }
   0xa   :  { %v52_v16 = vadd.f32 %v51_v14, %v50_v12  ;;  %v67_v17 = vrot.slane %v66_v15, 4 }
   0xc   :  { %v53_v18 = vrot.slane %v52_v16, 2  ;;  %v68_v19 = vadd.f32 %v67_v17, %v66_v15 }
   0xe   :  { %v54_v20 = vadd.f32 %v53_v18, %v52_v16  ;;  %v69_v21 = vrot.slane %v68_v19, 2 }
  0x10   :  { %v55_v22 = vrot.slane %v54_v20, 1  ;;  %v70_v23 = vadd.f32 %v69_v21, %v68_v19 }
  0x12   :  { %v56_v25 = vadd.f32 %v55_v22, %v54_v20  ;;  %v71_v26 = vrot.slane %v70_v23, 1 }
  0x14   :  { %v57_v28 = vadd.f32 %v56_v25, %v47_v24  ;;  %v72_v29 = vadd.f32 %v71_v26, %v70_v23 }
  0x16   :  { %58 = vst [vmem:[%s130_s1] sm:$0x1] %v57_v28  ;;  %v73_v30 = vadd.f32 %v72_v29, %v59_v27 }
  0x18   :  { %74 = vst [vmem:[%s131_s2] sm:$0x1] %v73_v30 }

// kernel: global_generator_forward.34
= control target key start
LH: loop header
LB: loop body
LE: loop exit
PB: predicated region body
PF: predicated region fallthrough
CT: control target
= control target key end

     0   :  { %s757_s12 = smov 0   ;;  %s759_s13 = smov 0   ;;  %s856_s0 = inlined_call_operand.vmem [shape: bf16[32,384], index: 0, kind: input, shape index: {}]   ;;  %s857_s1 = inlined_call_operand.vmem [shape: bf16[384,128], index: 1, kind: input, shape index: {}]   ;;  %s858_s2 = inlined_call_operand.vmem [shape: f32[1,128], index: 2, kind: input, shape index: {}]   ;;  %s859_s3 = inlined_call_operand.vmem [shape: f32[32,128], index: 3, kind: output, shape index: {}]  }
   0x1   :  { %s761_s14 = smov 0   ;;  %s763_s15 = smov 0  }
   0x2   :  { %s765_s16 = smov 0  }
   0x3 LB: > { %s25_s17 = sadd.s32 1, %s730_s15  ;;  %p48_p1 = scmp.ne.s32.totalorder %s722_s13, %s718_s12  ;;  %s734_s16 = sphi %s765_s16, %s13_s16   ;;  %s730_s15 = sphi %s763_s15, %s863_s15   ;;  %s726_s14 = sphi %s761_s14, %s862_s14   ;;  %s722_s13 = sphi %s759_s13, %s861_s13   ;;  %s718_s12 = sphi %s757_s12, %s860_s12  }
   0x4   : > { %p26_p0 = scmp.ge.s32.totalorder %s25_s17, 3  ;;  %p49_p2 = scmp.eq.s32.totalorder %s734_s16, 0 }
   0x5   : > { %s41_s19 = sadd.s32 1, %s722_s13  ;;  %p591_p5 = scmp.ge.s32.totalorder %s734_s16, 3 }
   0x6   : > { %s865_s17 = smov (%p26_p0, %s25_s17), 0  ;;  %p50_p3 = por %p49_p2, %p48_p1 }
   0x7   : > { %s37_s18 = ssub.s32 %s730_s15, %s865_s17  ;;  %162 = sbr.rel (%p591_p5) target bundleno = 21 (0x15), region = 20 }
   0x8   : > { %p39_p4 = scmp.eq.s32.totalorder %s37_s18, 0 }
   0xa   : > { %s792_s20 = scalar_select %p39_p4, %s722_s13, %s41_s19  }
   0xe   : > { %165 = sbr.rel (!%p50_p3) target bundleno = 21 (0x15), region = 24  ;;  %s167_s21 = sand.u32 (%p50_p3), 1, %s722_s13  }
   0xf   : > { %s593_s22 = sshll.u32 (%p50_p3), %s730_s15, 2  ;;  %s592_s23 = sshll.u32 (%p50_p3), %s167_s21, 4 }
  0x10   : > { %s174_s26 = scalar_lea.vmem (%p50_p3), %s856_s0, %s593_s22  ;;  %s169_s27 = scalar_lea.vmem (%p50_p3), [#allocation3], %s592_s23 }
  0x11   : > { %v190_v0 = vld [vmem:[%s174_s26] sm:$0xf] (%p50_p3)  ;;  %v192_v1 = vld [vmem:[%s174_s26 + $0xc] sm:$0xf] (%p50_p3)  ;;  %v194_v2 = vld [vmem:[%s174_s26 + $0x18] sm:$0xf] (%p50_p3) }
  0x12   : > { %191 = vst [vmem:[%s169_s27] sm:$0xf] (%p50_p3), %v190_v0  ;;  %193 = vst [vmem:[%s169_s27 + $0x4] sm:$0xf] (%p50_p3), %v192_v1  ;;  %v196_v3 = vld [vmem:[%s174_s26 + $0x24] sm:$0xf] (%p50_p3) }
  0x13   : > { %195 = vst [vmem:[%s169_s27 + $0x8] sm:$0xf] (%p50_p3), %v194_v2  ;;  %197 = vst [vmem:[%s169_s27 + $0xc] sm:$0xf] (%p50_p3), %v196_v3 }
  0x15 PF: > { %p594_p6 = scmp.ge.s32.totalorder %s734_s16, 1  ;;  %p239_p7 = scmp.lt.s32.totalorder %s734_s16, 4 }
  0x17   : > { %p240_p8 = pnand %p594_p6, %p239_p7 }
  0x18   : > { %s246_s28 = sand.u32 (!%p240_p8), 1, %s718_s12   ;;  %s596_s29 = sshll.u32 (!%p240_p8), %s726_s14, 4 }
  0x19   : > { %243 = sbr.rel (%p240_p8) target bundleno = 300 (0x12c), region = 69  ;;  %s804_s30 = sshll.u32 (!%p240_p8), %s246_s28, 4 }
  0x1a   : > { %p285_p9 = scmp.lt.s32.totalorder (!%p240_p8), %s596_s29, 47  ;;  %s248_s8 = scalar_lea.vmem (!%p240_p8), [#allocation3], %s804_s30 }
  0x1b   : > { %p598_p10 = scmp.ne.s32.totalorder (!%p240_p8), %s726_s14, 0 }
  0x20   : > { %s867_s29 = smov (!%p285_p9, %s596_s29), 47  ;;  %309 = sbr.rel (%p598_p10) target bundleno = 39 (0x27), region = 77 }
  0x21   : > { %s597_s4 = sshll.u32 %s867_s29, 2  ;;  %v736_v4 = vmov (!%p598_p10), 0.0  }
  0x22   : > { %s809_s7 = scalar_lea.vmem %s857_s1, %s597_s4  ;;  %310 = vst [vmem:[#allocation2] sm:$0xff] (!%p598_p10), %v736_v4  ;;  %311 = vst [vmem:[#allocation2 + $0x8] sm:$0xff] (!%p598_p10), %v736_v4 }
  0x23   : > { %312 = vst [vmem:[#allocation2 + $0x10] sm:$0xff] (!%p598_p10), %v736_v4  ;;  %313 = vst [vmem:[#allocation2 + $0x18] sm:$0xff] (!%p598_p10), %v736_v4 }
  0x27 PF: > { %v686_v5 = vld [vmem:[%s809_s7] sm:$0xff]   ;;  %v687_v6 = vld [vmem:[%s809_s7 + $0x8] sm:$0xff]   ;;  %v688_v7 = vld [vmem:[%s809_s7 + $0x10] sm:$0xff]   ;;  %p609_p11 = scmp.ne.s32.totalorder %s726_s14, 2 }
  0x28   : > { %625 = vmatprep.subr.bf16.mxu0 %v686_v5  ;;  %v689_v8 = vld [vmem:[%s809_s7 + $0x18] sm:$0xff]   ;;  %v694_v9 = vld [vmem:[%s248_s8] sm:$0xff]   ;;  %v691_v11 = vld [vmem:[%s809_s7 + $0x28] sm:$0xff]  }
  0x29   : > { %626 = vmatpush3.bf16.msra.mxu0 %v686_v5  ;;  %641 = vmatprep.mubr.bf16.mxu0 %v694_v9  ;;  %v690_v10 = vld [vmem:[%s809_s7 + $0x20] sm:$0xff]   ;;  %v692_v12 = vld [vmem:[%s809_s7 + $0x30] sm:$0xff]   ;;  %v693_v13 = vld [vmem:[%s809_s7 + $0x38] sm:$0xff]  }
  0x2a   : > { %627 = vmatprep.subr.bf16.mxu0 %v687_v6  ;;  %v695_v14 = vld [vmem:[%s248_s8 + $0x8] sm:$0xff]   ;;  %v316_v15 = vld [vmem:[#allocation2 + $0x10] sm:$0xff]  ;;  %v314_v16 = vld [vmem:[#allocation2] sm:$0xff] }
  0x2b   : > { %v317_v18 = vld [vmem:[#allocation2 + $0x18] sm:$0xff]  ;;  %v315_v21 = vld [vmem:[#allocation2 + $0x8] sm:$0xff]  ;;  %v610_v28 = vld [vmem:[%s858_s2] ss:$0 sm:$0xff] (!%p609_p11) }
  0x2d   : > { %628 = vmatpush3.bf16.msra.mxu0 %v687_v6 }
  0x2e   : > { %629 = vmatprep.subr.bf16.mxu0 %v688_v7 }
  0x31   : > { %630 = vmatpush3.bf16.msra.mxu0 %v688_v7 }
  0x32   : > { %631 = vmatprep.subr.bf16.mxu0 %v689_v8 }
  0x35   : > { %632 = vmatpush3.bf16.msra.mxu0 %v689_v8 }
  0x36   : > { %633 = vmatprep.subr.bf16.mxu0 %v690_v10 }
  0x39   : > { %634 = vmatpush3.bf16.msra.mxu0 %v690_v10 }
  0x3a   : > { %635 = vmatprep.subr.bf16.mxu0 %v691_v11 }
  0x3d   : > { %636 = vmatpush3.bf16.msra.mxu0 %v691_v11 }
  0x3e   : > { %637 = vmatprep.subr.bf16.mxu0 %v692_v12 }
  0x41   : > { %638 = vmatpush3.bf16.msra.mxu0 %v692_v12 }
  0x42   : > { %639 = vmatprep.subr.bf16.mxu0 %v693_v13 }
  0x45   : > { %640 = vmatpush3.bf16.msra.mxu0 %v693_v13 }
  0x48   : > { %642 = vmatmul.mubr.bf16.vlgmr.msra.gmra.mrb[0].mxu0 %v695_v14 }
 0x11b   : > { %v643_v17 = vpop.f32.mrb[0].mxu0  ;;  %458 = sbr.rel (%p609_p11) target bundleno = 300 (0x12c), region = 81 }
 0x11c   : > { %v449_v19 = vadd.f32 %v643_v17, %v316_v15  ;;  %v432_v20 = vpop.f32.mrb[1].mxu0 }
 0x11d   : > { %v447_v22 = vadd.f32 %v432_v20, %v314_v16  ;;  %v644_v23 = vpop.f32.mrb[2].mxu0 }
 0x11e   : > { %453 = vst [vmem:[#allocation2 + $0x10] sm:$0xff] %v449_v19  ;;  %v450_v24 = vadd.f32 %v644_v23, %v317_v18  ;;  %v435_v25 = vpop.f32.mrb[3].mxu0 }
 0x11f   : > { %451 = vst [vmem:[#allocation2] sm:$0xff] %v447_v22  ;;  %v448_v26 = vadd.f32 %v435_v25, %v315_v21 }
 0x120   : > { %454 = vst [vmem:[#allocation2 + $0x18] sm:$0xff] %v450_v24 }
 0x121   : > { %452 = vst [vmem:[#allocation2 + $0x8] sm:$0xff] %v448_v26 }
 0x125   : > { %v461_v32 = vld [vmem:[#allocation2 + $0x10] sm:$0xff] }
 0x126   : > { %v459_v27 = vld [vmem:[#allocation2] sm:$0xff]  ;;  %v472_v34 = vadd.f32 %v610_v28, %v461_v32 }
 0x127   : > { %v470_v30 = vadd.f32 %v610_v28, %v459_v27  ;;  %v462_v33 = vld [vmem:[#allocation2 + $0x18] sm:$0xff] }
 0x128   : > { %v460_v29 = vld [vmem:[#allocation2 + $0x8] sm:$0xff]  ;;  %v473_v35 = vadd.f32 %v610_v28, %v462_v33  ;;  %476 = vst [vmem:[%s859_s3 + $0x10] sm:$0xff] %v472_v34 }
 0x129   : > { %v471_v31 = vadd.f32 %v610_v28, %v460_v29  ;;  %474 = vst [vmem:[%s859_s3] sm:$0xff] %v470_v30 }
 0x12a   : > { %477 = vst [vmem:[%s859_s3 + $0x18] sm:$0xff] %v473_v35 }
 0x12b   : > { %475 = vst [vmem:[%s859_s3 + $0x8] sm:$0xff] %v471_v31 }
 0x12c PF: > { %s13_s16 = sadd.s32 1, %s734_s16   ;;  %s860_s12 = smov %s722_s13 }
 0x12d   : > { %p10_p12 = scmp.ge.s32.totalorder %s13_s16, 5   ;;  %s861_s13 = smov %s792_s20 }
 0x12e   : > { %s862_s14 = smov %s730_s15  ;;  %s863_s15 = smov %s865_s17 }
 0x12f   :  { %12 = sbr.rel (!%p10_p12) target bundleno = 3 (0x3), region = 122 }

// kernel: global_generator_forward.36
= control target key start
LH: loop header
LB: loop body
LE: loop exit
PB: predicated region body
PF: predicated region fallthrough
CT: control target
= control target key end

     0   :  { %s104_s0 = inlined_call_operand.vmem [shape: f32[32,128], index: 0, kind: input, shape index: {}]   ;;  %s105_s1 = inlined_call_operand.vmem [shape: f32[1,128], index: 1, kind: input, shape index: {}]   ;;  %s106_s2 = inlined_call_operand.vmem [shape: f32[1,128], index: 2, kind: input, shape index: {}]   ;;  %s107_s3 = inlined_call_operand.vmem [shape: f32[32,128], index: 3, kind: output, shape index: {}]  }
   0x1   :  { %v14_v0 = vld [vmem:[%s104_s0] sm:$0xff]  ;;  %v15_v4 = vld [vmem:[%s104_s0 + $0x8] sm:$0xff]  ;;  %v16_v5 = vld [vmem:[%s104_s0 + $0x10] sm:$0xff] }
   0x2   :  { %v52_v1 = vld [vmem:[%s105_s1] ss:$0 sm:$0xff]  ;;  %v17_v6 = vld [vmem:[%s104_s0 + $0x18] sm:$0xff] }
   0x3   :  { %v53_v2 = vld [vmem:[%s106_s2] ss:$0 sm:$0xff]  ;;  %v25_v3 = vmul.f32 %v52_v1, %v14_v0  ;;  %v26_v7 = vmul.f32 %v52_v1, %v15_v4  ;;  %v27_v8 = vmul.f32 %v52_v1, %v16_v5  ;;  %v28_v9 = vmul.f32 %v52_v1, %v17_v6 }
   0x5   :  { %v36_v10 = vadd.f32 %v53_v2, %v25_v3  ;;  %v37_v11 = vadd.f32 %v53_v2, %v26_v7  ;;  %v38_v12 = vadd.f32 %v53_v2, %v27_v8  ;;  %v39_v13 = vadd.f32 %v53_v2, %v28_v9 }
   0x7   :  { %v40_v14 = vmax.f32 %v36_v10, 0.0  ;;  %v41_v15 = vmax.f32 %v37_v11, 0.0  ;;  %v42_v16 = vmax.f32 %v38_v12, 0.0  ;;  %v43_v17 = vmax.f32 %v39_v13, 0.0 }
   0x9   :  { %44 = vst [vmem:[%s107_s3] sm:$0xff] %v40_v14  ;;  %45 = vst [vmem:[%s107_s3 + $0x8] sm:$0xff] %v41_v15 }
   0xa   :  { %46 = vst [vmem:[%s107_s3 + $0x10] sm:$0xff] %v42_v16  ;;  %47 = vst [vmem:[%s107_s3 + $0x18] sm:$0xff] %v43_v17 }

// kernel: global_generator_forward.42
= control target key start
LH: loop header
LB: loop body
LE: loop exit
PB: predicated region body
PF: predicated region fallthrough
CT: control target
= control target key end

     0   :  { %s128_s0 = inlined_call_operand.vmem [shape: f32[32,128], index: 0, kind: input, shape index: {}]   ;;  %s129_s1 = inlined_call_operand.vmem [shape: f32[1,128], index: 1, kind: input, shape index: {}]   ;;  %s130_s2 = inlined_call_operand.vmem [shape: f32[1,128], index: 2, kind: input, shape index: {}]   ;;  %s131_s3 = inlined_call_operand.vmem [shape: f32[32,128], index: 3, kind: input, shape index: {}]   ;;  %s132_s4 = inlined_call_operand.vmem [shape: f32[32,128], index: 4, kind: output, shape index: {}]  }
   0x1   :  { %v17_v0 = vld [vmem:[%s128_s0] sm:$0xff]  ;;  %v18_v4 = vld [vmem:[%s128_s0 + $0x8] sm:$0xff]  ;;  %v19_v7 = vld [vmem:[%s128_s0 + $0x10] sm:$0xff] }
   0x2   :  { %v59_v1 = vld [vmem:[%s129_s1] ss:$0 sm:$0xff]  ;;  %v20_v8 = vld [vmem:[%s128_s0 + $0x18] sm:$0xff]  ;;  %v44_v10 = vld [vmem:[%s131_s3 + $0x8] sm:$0xff] }
   0x3   :  { %v60_v2 = vld [vmem:[%s130_s2] ss:$0 sm:$0xff]  ;;  %v28_v3 = vmul.f32 %v59_v1, %v17_v0  ;;  %v29_v6 = vmul.f32 %v59_v1, %v18_v4  ;;  %v30_v11 = vmul.f32 %v59_v1, %v19_v7  ;;  %v31_v12 = vmul.f32 %v59_v1, %v20_v8  ;;  %v45_v14 = vld [vmem:[%s131_s3 + $0x10] sm:$0xff]  ;;  %v46_v15 = vld [vmem:[%s131_s3 + $0x18] sm:$0xff] }
   0x4   :  { %v43_v5 = vld [vmem:[%s131_s3] sm:$0xff] }
   0x5   :  { %v39_v9 = vadd.f32 %v60_v2, %v28_v3  ;;  %v40_v13 = vadd.f32 %v60_v2, %v29_v6  ;;  %v41_v17 = vadd.f32 %v60_v2, %v30_v11  ;;  %v42_v18 = vadd.f32 %v60_v2, %v31_v12 }
   0x7   :  { %v47_v16 = vadd.f32 %v43_v5, %v39_v9  ;;  %v48_v19 = vadd.f32 %v44_v10, %v40_v13  ;;  %v49_v20 = vadd.f32 %v45_v14, %v41_v17  ;;  %v50_v21 = vadd.f32 %v46_v15, %v42_v18 }
   0x9   :  { %51 = vst [vmem:[%s132_s4] sm:$0xff] %v47_v16  ;;  %52 = vst [vmem:[%s132_s4 + $0x8] sm:$0xff] %v48_v19 }
   0xa   :  { %53 = vst [vmem:[%s132_s4 + $0x10] sm:$0xff] %v49_v20  ;;  %54 = vst [vmem:[%s132_s4 + $0x18] sm:$0xff] %v50_v21 }

// kernel: global_generator_forward.37
= control target key start
LH: loop header
LB: loop body
LE: loop exit
PB: predicated region body
PF: predicated region fallthrough
CT: control target
= control target key end

     0   :  { %s757_s12 = smov 0   ;;  %s759_s13 = smov 0   ;;  %s856_s0 = inlined_call_operand.vmem [shape: bf16[32,640], index: 0, kind: input, shape index: {}]   ;;  %s857_s1 = inlined_call_operand.vmem [shape: bf16[640,128], index: 1, kind: input, shape index: {}]   ;;  %s858_s2 = inlined_call_operand.vmem [shape: f32[1,128], index: 2, kind: input, shape index: {}]   ;;  %s859_s3 = inlined_call_operand.vmem [shape: f32[32,128], index: 3, kind: output, shape index: {}]  }
   0x1   :  { %s761_s14 = smov 0   ;;  %s763_s15 = smov 0  }
   0x2   :  { %s765_s16 = smov 0  }
   0x3 LB: > { %s25_s17 = sadd.s32 1, %s730_s15  ;;  %p48_p1 = scmp.ne.s32.totalorder %s722_s13, %s718_s12  ;;  %s734_s16 = sphi %s765_s16, %s13_s16   ;;  %s730_s15 = sphi %s763_s15, %s863_s15   ;;  %s726_s14 = sphi %s761_s14, %s862_s14   ;;  %s722_s13 = sphi %s759_s13, %s861_s13   ;;  %s718_s12 = sphi %s757_s12, %s860_s12  }
   0x4   : > { %p26_p0 = scmp.ge.s32.totalorder %s25_s17, 5  ;;  %p49_p2 = scmp.eq.s32.totalorder %s734_s16, 0 }
   0x5   : > { %s41_s19 = sadd.s32 1, %s722_s13  ;;  %p591_p5 = scmp.ge.s32.totalorder %s734_s16, 5 }
   0x6   : > { %s865_s17 = smov (%p26_p0, %s25_s17), 0  ;;  %p50_p3 = por %p49_p2, %p48_p1 }
   0x7   : > { %s37_s18 = ssub.s32 %s730_s15, %s865_s17  ;;  %162 = sbr.rel (%p591_p5) target bundleno = 21 (0x15), region = 20 }
   0x8   : > { %p39_p4 = scmp.eq.s32.totalorder %s37_s18, 0 }
   0xa   : > { %s792_s20 = scalar_select %p39_p4, %s722_s13, %s41_s19  }
   0xe   : > { %165 = sbr.rel (!%p50_p3) target bundleno = 21 (0x15), region = 24  ;;  %s167_s21 = sand.u32 (%p50_p3), 1, %s722_s13  }
   0xf   : > { %s593_s22 = sshll.u32 (%p50_p3), %s730_s15, 2  ;;  %s592_s23 = sshll.u32 (%p50_p3), %s167_s21, 4 }
  0x10   : > { %s174_s26 = scalar_lea.vmem (%p50_p3), %s856_s0, %s593_s22  ;;  %s169_s27 = scalar_lea.vmem (%p50_p3), [#allocation3], %s592_s23 }
  0x11   : > { %v190_v0 = vld [vmem:[%s174_s26] sm:$0xf] (%p50_p3)  ;;  %v192_v1 = vld [vmem:[%s174_s26 + $0x14] sm:$0xf] (%p50_p3)  ;;  %v194_v2 = vld [vmem:[%s174_s26 + $0x28] sm:$0xf] (%p50_p3) }
  0x12   : > { %191 = vst [vmem:[%s169_s27] sm:$0xf] (%p50_p3), %v190_v0  ;;  %193 = vst [vmem:[%s169_s27 + $0x4] sm:$0xf] (%p50_p3), %v192_v1  ;;  %v196_v3 = vld [vmem:[%s174_s26 + $0x3c] sm:$0xf] (%p50_p3) }
  0x13   : > { %195 = vst [vmem:[%s169_s27 + $0x8] sm:$0xf] (%p50_p3), %v194_v2  ;;  %197 = vst [vmem:[%s169_s27 + $0xc] sm:$0xf] (%p50_p3), %v196_v3 }
  0x15 PF: > { %p594_p6 = scmp.ge.s32.totalorder %s734_s16, 1  ;;  %p239_p7 = scmp.lt.s32.totalorder %s734_s16, 6 }
  0x17   : > { %p240_p8 = pnand %p594_p6, %p239_p7 }
  0x18   : > { %s246_s28 = sand.u32 (!%p240_p8), 1, %s718_s12   ;;  %s596_s29 = sshll.u32 (!%p240_p8), %s726_s14, 4 }
  0x19   : > { %243 = sbr.rel (%p240_p8) target bundleno = 300 (0x12c), region = 69  ;;  %s804_s30 = sshll.u32 (!%p240_p8), %s246_s28, 4 }
  0x1a   : > { %p285_p9 = scmp.lt.s32.totalorder (!%p240_p8), %s596_s29, 79  ;;  %s248_s8 = scalar_lea.vmem (!%p240_p8), [#allocation3], %s804_s30 }
  0x1b   : > { %p598_p10 = scmp.ne.s32.totalorder (!%p240_p8), %s726_s14, 0 }
  0x20   : > { %s867_s29 = smov (!%p285_p9, %s596_s29), 79  ;;  %309 = sbr.rel (%p598_p10) target bundleno = 39 (0x27), region = 77 }
  0x21   : > { %s597_s4 = sshll.u32 %s867_s29, 2  ;;  %v736_v4 = vmov (!%p598_p10), 0.0  }
  0x22   : > { %s809_s7 = scalar_lea.vmem %s857_s1, %s597_s4  ;;  %310 = vst [vmem:[#allocation2] sm:$0xff] (!%p598_p10), %v736_v4  ;;  %311 = vst [vmem:[#allocation2 + $0x8] sm:$0xff] (!%p598_p10), %v736_v4 }
  0x23   : > { %312 = vst [vmem:[#allocation2 + $0x10] sm:$0xff] (!%p598_p10), %v736_v4  ;;  %313 = vst [vmem:[#allocation2 + $0x18] sm:$0xff] (!%p598_p10), %v736_v4 }
  0x27 PF: > { %v686_v5 = vld [vmem:[%s809_s7] sm:$0xff]   ;;  %v687_v6 = vld [vmem:[%s809_s7 + $0x8] sm:$0xff]   ;;  %v688_v7 = vld [vmem:[%s809_s7 + $0x10] sm:$0xff]   ;;  %p609_p11 = scmp.ne.s32.totalorder %s726_s14, 4 }
  0x28   : > { %625 = vmatprep.subr.bf16.mxu0 %v686_v5  ;;  %v689_v8 = vld [vmem:[%s809_s7 + $0x18] sm:$0xff]   ;;  %v694_v9 = vld [vmem:[%s248_s8] sm:$0xff]   ;;  %v691_v11 = vld [vmem:[%s809_s7 + $0x28] sm:$0xff]  }
  0x29   : > { %626 = vmatpush3.bf16.msra.mxu0 %v686_v5  ;;  %641 = vmatprep.mubr.bf16.mxu0 %v694_v9  ;;  %v690_v10 = vld [vmem:[%s809_s7 + $0x20] sm:$0xff]   ;;  %v692_v12 = vld [vmem:[%s809_s7 + $0x30] sm:$0xff]   ;;  %v693_v13 = vld [vmem:[%s809_s7 + $0x38] sm:$0xff]  }
  0x2a   : > { %627 = vmatprep.subr.bf16.mxu0 %v687_v6  ;;  %v695_v14 = vld [vmem:[%s248_s8 + $0x8] sm:$0xff]   ;;  %v316_v15 = vld [vmem:[#allocation2 + $0x10] sm:$0xff]  ;;  %v314_v16 = vld [vmem:[#allocation2] sm:$0xff] }
  0x2b   : > { %v317_v18 = vld [vmem:[#allocation2 + $0x18] sm:$0xff]  ;;  %v315_v21 = vld [vmem:[#allocation2 + $0x8] sm:$0xff]  ;;  %v610_v28 = vld [vmem:[%s858_s2] ss:$0 sm:$0xff] (!%p609_p11) }
  0x2d   : > { %628 = vmatpush3.bf16.msra.mxu0 %v687_v6 }
  0x2e   : > { %629 = vmatprep.subr.bf16.mxu0 %v688_v7 }
  0x31   : > { %630 = vmatpush3.bf16.msra.mxu0 %v688_v7 }
  0x32   : > { %631 = vmatprep.subr.bf16.mxu0 %v689_v8 }
  0x35   : > { %632 = vmatpush3.bf16.msra.mxu0 %v689_v8 }
  0x36   : > { %633 = vmatprep.subr.bf16.mxu0 %v690_v10 }
  0x39   : > { %634 = vmatpush3.bf16.msra.mxu0 %v690_v10 }
  0x3a   : > { %635 = vmatprep.subr.bf16.mxu0 %v691_v11 }
  0x3d   : > { %636 = vmatpush3.bf16.msra.mxu0 %v691_v11 }
  0x3e   : > { %637 = vmatprep.subr.bf16.mxu0 %v692_v12 }
  0x41   : > { %638 = vmatpush3.bf16.msra.mxu0 %v692_v12 }
  0x42   : > { %639 = vmatprep.subr.bf16.mxu0 %v693_v13 }
  0x45   : > { %640 = vmatpush3.bf16.msra.mxu0 %v693_v13 }
  0x48   : > { %642 = vmatmul.mubr.bf16.vlgmr.msra.gmra.mrb[0].mxu0 %v695_v14 }
 0x11b   : > { %v643_v17 = vpop.f32.mrb[0].mxu0  ;;  %458 = sbr.rel (%p609_p11) target bundleno = 300 (0x12c), region = 81 }
 0x11c   : > { %v449_v19 = vadd.f32 %v643_v17, %v316_v15  ;;  %v432_v20 = vpop.f32.mrb[1].mxu0 }
 0x11d   : > { %v447_v22 = vadd.f32 %v432_v20, %v314_v16  ;;  %v644_v23 = vpop.f32.mrb[2].mxu0 }
 0x11e   : > { %453 = vst [vmem:[#allocation2 + $0x10] sm:$0xff] %v449_v19  ;;  %v450_v24 = vadd.f32 %v644_v23, %v317_v18  ;;  %v435_v25 = vpop.f32.mrb[3].mxu0 }
 0x11f   : > { %451 = vst [vmem:[#allocation2] sm:$0xff] %v447_v22  ;;  %v448_v26 = vadd.f32 %v435_v25, %v315_v21 }
 0x120   : > { %454 = vst [vmem:[#allocation2 + $0x18] sm:$0xff] %v450_v24 }
 0x121   : > { %452 = vst [vmem:[#allocation2 + $0x8] sm:$0xff] %v448_v26 }
 0x125   : > { %v461_v32 = vld [vmem:[#allocation2 + $0x10] sm:$0xff] }
 0x126   : > { %v459_v27 = vld [vmem:[#allocation2] sm:$0xff]  ;;  %v472_v34 = vadd.f32 %v610_v28, %v461_v32 }
 0x127   : > { %v470_v30 = vadd.f32 %v610_v28, %v459_v27  ;;  %v462_v33 = vld [vmem:[#allocation2 + $0x18] sm:$0xff] }
 0x128   : > { %v460_v29 = vld [vmem:[#allocation2 + $0x8] sm:$0xff]  ;;  %v473_v35 = vadd.f32 %v610_v28, %v462_v33  ;;  %476 = vst [vmem:[%s859_s3 + $0x10] sm:$0xff] %v472_v34 }
 0x129   : > { %v471_v31 = vadd.f32 %v610_v28, %v460_v29  ;;  %474 = vst [vmem:[%s859_s3] sm:$0xff] %v470_v30 }
 0x12a   : > { %477 = vst [vmem:[%s859_s3 + $0x18] sm:$0xff] %v473_v35 }
 0x12b   : > { %475 = vst [vmem:[%s859_s3 + $0x8] sm:$0xff] %v471_v31 }
 0x12c PF: > { %s13_s16 = sadd.s32 1, %s734_s16   ;;  %s860_s12 = smov %s722_s13 }
 0x12d   : > { %p10_p12 = scmp.ge.s32.totalorder %s13_s16, 7   ;;  %s861_s13 = smov %s792_s20 }
 0x12e   : > { %s862_s14 = smov %s730_s15  ;;  %s863_s15 = smov %s865_s17 }
 0x12f   :  { %12 = sbr.rel (!%p10_p12) target bundleno = 3 (0x3), region = 122 }

// kernel: global_generator_forward.49
= control target key start
LH: loop header
LB: loop body
LE: loop exit
PB: predicated region body
PF: predicated region fallthrough
CT: control target
= control target key end

     0   :  { %s1031_s12 = smov 0   ;;  %s1033_s13 = smov 0   ;;  %s1187_s0 = inlined_call_operand.vmem [shape: bf16[128,640], index: 0, kind: input, shape index: {}]   ;;  %s1188_s1 = inlined_call_operand.vmem [shape: bf16[640,128], index: 1, kind: input, shape index: {}]   ;;  %s1189_s2 = inlined_call_operand.vmem [shape: f32[1,128], index: 2, kind: input, shape index: {}]   ;;  %s1190_s3 = inlined_call_operand.vmem [shape: f32[128,128], index: 3, kind: output, shape index: {}]  }
   0x1   :  { %s1035_s14 = smov 0   ;;  %s1037_s15 = smov 0  }
   0x2   :  { %s1039_s16 = smov 0  }
   0x3 LB: > { %s25_s17 = sadd.s32 1, %s1004_s15  ;;  %p48_p1 = scmp.ne.s32.totalorder %s996_s13, %s992_s12  ;;  %s1008_s16 = sphi %s1039_s16, %s13_s16   ;;  %s1004_s15 = sphi %s1037_s15, %s1194_s15   ;;  %s1000_s14 = sphi %s1035_s14, %s1193_s14   ;;  %s996_s13 = sphi %s1033_s13, %s1192_s13   ;;  %s992_s12 = sphi %s1031_s12, %s1191_s12  }
   0x4   : > { %p26_p0 = scmp.ge.s32.totalorder %s25_s17, 5  ;;  %p49_p2 = scmp.eq.s32.totalorder %s1008_s16, 0 }
   0x5   : > { %s41_s19 = sadd.s32 1, %s996_s13  ;;  %p819_p5 = scmp.ge.s32.totalorder %s1008_s16, 5 }
   0x6   : > { %s1196_s17 = smov (%p26_p0, %s25_s17), 0  ;;  %p50_p3 = por %p49_p2, %p48_p1 }
   0x7   : > { %s37_s18 = ssub.s32 %s1004_s15, %s1196_s17  ;;  %162 = sbr.rel (%p819_p5) target bundleno = 28 (0x1c), region = 20 }
   0x8   : > { %p39_p4 = scmp.eq.s32.totalorder %s37_s18, 0 }
   0xa   : > { %s1066_s20 = scalar_select %p39_p4, %s996_s13, %s41_s19  }
   0xe   : > { %165 = sbr.rel (!%p50_p3) target bundleno = 28 (0x1c), region = 24  ;;  %s167_s21 = sand.u32 (%p50_p3), 1, %s996_s13  }
   0xf   : > { %s821_s22 = sshll.u32 (%p50_p3), %s1004_s15, 2  ;;  %s820_s23 = sshll.u32 (%p50_p3), %s167_s21, 6 }
  0x10   : > { %s1074_s26 = scalar_lea.vmem (%p50_p3), %s1187_s0, %s821_s22  ;;  %s169_s27 = scalar_lea.vmem (%p50_p3), [#allocation3], %s820_s23 }
  0x11   : > { %v190_v0 = vld [vmem:[%s1074_s26] sm:$0xf] (%p50_p3)  ;;  %v192_v1 = vld [vmem:[%s1074_s26 + $0x14] sm:$0xf] (%p50_p3)  ;;  %v194_v2 = vld [vmem:[%s1074_s26 + $0x28] sm:$0xf] (%p50_p3) }
  0x12   : > { %191 = vst [vmem:[%s169_s27] sm:$0xf] (%p50_p3), %v190_v0  ;;  %193 = vst [vmem:[%s169_s27 + $0x4] sm:$0xf] (%p50_p3), %v192_v1  ;;  %v196_v3 = vld [vmem:[%s1074_s26 + $0x3c] sm:$0xf] (%p50_p3) }
  0x13   : > { %v198_v4 = vld [vmem:[%s1074_s26 + $0x50] sm:$0xf] (%p50_p3)  ;;  %195 = vst [vmem:[%s169_s27 + $0x8] sm:$0xf] (%p50_p3), %v194_v2  ;;  %197 = vst [vmem:[%s169_s27 + $0xc] sm:$0xf] (%p50_p3), %v196_v3 }
  0x14   : > { %199 = vst [vmem:[%s169_s27 + $0x10] sm:$0xf] (%p50_p3), %v198_v4  ;;  %v200_v5 = vld [vmem:[%s1074_s26 + $0x64] sm:$0xf] (%p50_p3)  ;;  %v202_v6 = vld [vmem:[%s1074_s26 + $0x78] sm:$0xf] (%p50_p3) }
  0x15   : > { %v204_v7 = vld [vmem:[%s1074_s26 + $0x8c] sm:$0xf]  ;;  %201 = vst [vmem:[%s169_s27 + $0x14] sm:$0xf] %v200_v5  ;;  %203 = vst [vmem:[%s169_s27 + $0x18] sm:$0xf] %v202_v6 }
  0x16   : > { %205 = vst [vmem:[%s169_s27 + $0x1c] sm:$0xf] %v204_v7  ;;  %v206_v8 = vld [vmem:[%s1074_s26 + $0xa0] sm:$0xf]  ;;  %v208_v9 = vld [vmem:[%s1074_s26 + $0xb4] sm:$0xf] }
  0x17   : > { %v210_v10 = vld [vmem:[%s1074_s26 + $0xc8] sm:$0xf]  ;;  %207 = vst [vmem:[%s169_s27 + $0x20] sm:$0xf] %v206_v8  ;;  %209 = vst [vmem:[%s169_s27 + $0x24] sm:$0xf] %v208_v9 }
  0x18   : > { %211 = vst [vmem:[%s169_s27 + $0x28] sm:$0xf] %v210_v10  ;;  %v212_v11 = vld [vmem:[%s1074_s26 + $0xdc] sm:$0xf]  ;;  %v214_v12 = vld [vmem:[%s1074_s26 + $0xf0] sm:$0xf] }
  0x19   : > { %v216_v13 = vld [vmem:[%s1074_s26 + $0x104] sm:$0xf]  ;;  %213 = vst [vmem:[%s169_s27 + $0x2c] sm:$0xf] %v212_v11  ;;  %215 = vst [vmem:[%s169_s27 + $0x30] sm:$0xf] %v214_v12 }
  0x1a   : > { %217 = vst [vmem:[%s169_s27 + $0x34] sm:$0xf] %v216_v13  ;;  %v218_v14 = vld [vmem:[%s1074_s26 + $0x118] sm:$0xf]  ;;  %v220_v15 = vld [vmem:[%s1074_s26 + $0x12c] sm:$0xf] }
  0x1b   : > { %219 = vst [vmem:[%s169_s27 + $0x38] sm:$0xf] %v218_v14  ;;  %221 = vst [vmem:[%s169_s27 + $0x3c] sm:$0xf] %v220_v15 }
  0x1c PF: > { %p822_p6 = scmp.ge.s32.totalorder %s1008_s16, 1  ;;  %p287_p7 = scmp.lt.s32.totalorder %s1008_s16, 6 }
  0x1e   : > { %p288_p8 = pnand %p822_p6, %p287_p7 }
  0x1f   : > { %s294_s28 = sand.u32 (!%p288_p8), 1, %s992_s12   ;;  %s824_s29 = sshll.u32 (!%p288_p8), %s1000_s14, 4 }
  0x20   : > { %291 = sbr.rel (%p288_p8) target bundleno = 319 (0x13f), region = 69  ;;  %s823_s30 = sshll.u32 (!%p288_p8), %s294_s28, 6 }
  0x21   : > { %p333_p9 = scmp.lt.s32.totalorder (!%p288_p8), %s824_s29, 79  ;;  %s1101_s8 = scalar_lea.vmem (!%p288_p8), [#allocation3], %s823_s30 }
  0x22   : > { %p826_p10 = scmp.ne.s32.totalorder (!%p288_p8), %s1000_s14, 0 }
  0x27   : > { %s1198_s29 = smov (!%p333_p9, %s824_s29), 79  ;;  %357 = sbr.rel (%p826_p10) target bundleno = 49 (0x31), region = 77 }
  0x28   : > { %s825_s4 = sshll.u32 %s1198_s29, 2  ;;  %v1010_v16 = vmov (!%p826_p10), 0.0  }
  0x29   : > { %s1099_s7 = scalar_lea.vmem %s1188_s1, %s825_s4  ;;  %358 = vst [vmem:[#allocation2] sm:$0xff] (!%p826_p10), %v1010_v16  ;;  %359 = vst [vmem:[#allocation2 + $0x8] sm:$0xff] (!%p826_p10), %v1010_v16 }
  0x2a   : > { %360 = vst [vmem:[#allocation2 + $0x10] sm:$0xff] (!%p826_p10), %v1010_v16  ;;  %361 = vst [vmem:[#allocation2 + $0x18] sm:$0xff] (!%p826_p10), %v1010_v16 }
  0x2b   : > { %362 = vst [vmem:[#allocation2 + $0x20] sm:$0xff] (!%p826_p10), %v1010_v16  ;;  %363 = vst [vmem:[#allocation2 + $0x28] sm:$0xff] (!%p826_p10), %v1010_v16 }
  0x2c   : > { %364 = vst [vmem:[#allocation2 + $0x30] sm:$0xff] (!%p826_p10), %v1010_v16  ;;  %365 = vst [vmem:[#allocation2 + $0x38] sm:$0xff] (!%p826_p10), %v1010_v16 }
  0x2d   : > { %366 = vst [vmem:[#allocation2 + $0x40] sm:$0xff] (!%p826_p10), %v1010_v16  ;;  %367 = vst [vmem:[#allocation2 + $0x48] sm:$0xff] (!%p826_p10), %v1010_v16 }
  0x2e   : > { %368 = vst [vmem:[#allocation2 + $0x50] sm:$0xff] %v1010_v16  ;;  %369 = vst [vmem:[#allocation2 + $0x58] sm:$0xff] %v1010_v16 }
  0x2f   : > { %370 = vst [vmem:[#allocation2 + $0x60] sm:$0xff] %v1010_v16  ;;  %371 = vst [vmem:[#allocation2 + $0x68] sm:$0xff] %v1010_v16 }
  0x30   : > { %372 = vst [vmem:[#allocation2 + $0x70] sm:$0xff] %v1010_v16  ;;  %373 = vst [vmem:[#allocation2 + $0x78] sm:$0xff] %v1010_v16 }
  0x31 PF: > { %v954_v17 = vld [vmem:[%s1099_s7] sm:$0xff]   ;;  %v955_v18 = vld [vmem:[%s1099_s7 + $0x8] sm:$0xff]   ;;  %v956_v19 = vld [vmem:[%s1099_s7 + $0x10] sm:$0xff]   ;;  %p843_p11 = scmp.ne.s32.totalorder %s1000_s14, 4 }
  0x32   : > { %865 = vmatprep.subr.bf16.mxu0 %v954_v17  ;;  %897 = vmatprep.subr.bf16.mxu1 %v954_v17  ;;  %v957_v20 = vld [vmem:[%s1099_s7 + $0x18] sm:$0xff]   ;;  %v962_v21 = vld [vmem:[%s1101_s8] sm:$0xff]   ;;  %v959_v24 = vld [vmem:[%s1099_s7 + $0x28] sm:$0xff]  }
  0x33   : > { %866 = vmatpush3.bf16.msra.mxu0 %v954_v17  ;;  %905 = vmatpush3.bf16.msra.mxu1 %v954_v17  ;;  %v963_v22 = vld [vmem:[%s1101_s8 + $0x20] sm:$0xff]   ;;  %v960_v25 = vld [vmem:[%s1099_s7 + $0x30] sm:$0xff]   ;;  %v961_v26 = vld [vmem:[%s1099_s7 + $0x38] sm:$0xff]  }
  0x34   : > { %867 = vmatprep.subr.bf16.mxu0 %v955_v18  ;;  %898 = vmatprep.subr.bf16.mxu1 %v955_v18  ;;  %v958_v23 = vld [vmem:[%s1099_s7 + $0x20] sm:$0xff]   ;;  %v964_v27 = vld [vmem:[%s1101_s8 + $0x8] sm:$0xff]   ;;  %v966_v29 = vld [vmem:[%s1101_s8 + $0x10] sm:$0xff]  }
  0x35   : > { %881 = vmatprep.mubr.bf16.mxu0 %v962_v21  ;;  %889 = vmatprep.mubr.bf16.mxu1 %v963_v22  ;;  %v965_v28 = vld [vmem:[%s1101_s8 + $0x28] sm:$0xff]   ;;  %v967_v30 = vld [vmem:[%s1101_s8 + $0x30] sm:$0xff]   ;;  %v968_v31 = vld [vmem:[%s1101_s8 + $0x18] sm:$0xff]  }
  0x36   : > { %v969_v32 = vld [vmem:[%s1101_s8 + $0x38] sm:$0xff]   ;;  %v376_v33 = vld [vmem:[#allocation2 + $0x10] sm:$0xff]  ;;  %v374_v35 = vld [vmem:[#allocation2] sm:$0xff] }
  0x37   : > { %868 = vmatpush3.bf16.msra.mxu0 %v955_v18  ;;  %906 = vmatpush3.bf16.msra.mxu1 %v955_v18  ;;  %v384_v34 = vld [vmem:[#allocation2 + $0x50] sm:$0xff]  ;;  %v382_v36 = vld [vmem:[#allocation2 + $0x40] sm:$0xff]  ;;  %v377_v39 = vld [vmem:[#allocation2 + $0x18] sm:$0xff] }
  0x38   : > { %869 = vmatprep.subr.bf16.mxu0 %v956_v19  ;;  %899 = vmatprep.subr.bf16.mxu1 %v956_v19  ;;  %v385_v40 = vld [vmem:[#allocation2 + $0x58] sm:$0xff]  ;;  %v375_v45 = vld [vmem:[#allocation2 + $0x8] sm:$0xff]  ;;  %v380_v57 = vld [vmem:[#allocation2 + $0x30] sm:$0xff] }
  0x39   : > { %v383_v46 = vld [vmem:[#allocation2 + $0x48] sm:$0xff]  ;;  %v388_v58 = vld [vmem:[#allocation2 + $0x70] sm:$0xff]  ;;  %v378_v59 = vld [vmem:[#allocation2 + $0x20] sm:$0xff] }
  0x3a   : > { %v386_v60 = vld [vmem:[#allocation2 + $0x60] sm:$0xff]  ;;  %v381_v63 = vld [vmem:[#allocation2 + $0x38] sm:$0xff]  ;;  %v379_v5 = vld [vmem:[#allocation2 + $0x28] sm:$0xff] }
  0x3b   : > { %870 = vmatpush3.bf16.msra.mxu0 %v956_v19  ;;  %907 = vmatpush3.bf16.msra.mxu1 %v956_v19  ;;  %v389_v0 = vld [vmem:[#allocation2 + $0x78] sm:$0xff]  ;;  %v387_v6 = vld [vmem:[#allocation2 + $0x68] sm:$0xff]  ;;  %v844_v18 = vld [vmem:[%s1189_s2] ss:$0 sm:$0xff] (!%p843_p11) }
  0x3c   : > { %871 = vmatprep.subr.bf16.mxu0 %v957_v20  ;;  %900 = vmatprep.subr.bf16.mxu1 %v957_v20 }
  0x3f   : > { %872 = vmatpush3.bf16.msra.mxu0 %v957_v20  ;;  %908 = vmatpush3.bf16.msra.mxu1 %v957_v20 }
  0x40   : > { %873 = vmatprep.subr.bf16.mxu0 %v958_v23  ;;  %901 = vmatprep.subr.bf16.mxu1 %v958_v23 }
  0x43   : > { %874 = vmatpush3.bf16.msra.mxu0 %v958_v23  ;;  %909 = vmatpush3.bf16.msra.mxu1 %v958_v23 }
  0x44   : > { %875 = vmatprep.subr.bf16.mxu0 %v959_v24  ;;  %902 = vmatprep.subr.bf16.mxu1 %v959_v24 }
  0x47   : > { %876 = vmatpush3.bf16.msra.mxu0 %v959_v24  ;;  %910 = vmatpush3.bf16.msra.mxu1 %v959_v24 }
  0x48   : > { %877 = vmatprep.subr.bf16.mxu0 %v960_v25  ;;  %903 = vmatprep.subr.bf16.mxu1 %v960_v25 }
  0x4b   : > { %878 = vmatpush3.bf16.msra.mxu0 %v960_v25  ;;  %911 = vmatpush3.bf16.msra.mxu1 %v960_v25 }
  0x4c   : > { %879 = vmatprep.subr.bf16.mxu0 %v961_v26  ;;  %904 = vmatprep.subr.bf16.mxu1 %v961_v26 }
  0x4f   : > { %880 = vmatpush3.bf16.msra.mxu0 %v961_v26  ;;  %912 = vmatpush3.bf16.msra.mxu1 %v961_v26 }
  0x52   : > { %882 = vmatmul.mubr.bf16.vlgmr.msra.gmra.mrb[0].mxu0 %v964_v27  ;;  %890 = vmatmul.mubr.bf16.vlgmr.msra.gmra.mrb[0].mxu1 %v965_v28 }
  0x53   : > { %885 = vmatprep.mubr.bf16.mxu0 %v966_v29  ;;  %893 = vmatprep.mubr.bf16.mxu1 %v967_v30 }
  0x5a   : > { %886 = vmatmul.mubr.bf16.gmra.mrb[4].mxu0 %v968_v31  ;;  %894 = vmatmul.mubr.bf16.gmra.mrb[4].mxu1 %v969_v32 }
 0x125   : > { %v883_v37 = vpop.f32.mrb[0].mxu0  ;;  %v891_v38 = vpop.f32.mrb[0].mxu1 }
 0x126   : > { %v617_v41 = vadd.f32 %v883_v37, %v376_v33  ;;  %v625_v42 = vadd.f32 %v891_v38, %v384_v34  ;;  %v552_v43 = vpop.f32.mrb[1].mxu0  ;;  %v584_v44 = vpop.f32.mrb[1].mxu1 }
 0x127   : > { %v615_v47 = vadd.f32 %v552_v43, %v374_v35  ;;  %v623_v48 = vadd.f32 %v584_v44, %v382_v36  ;;  %v884_v49 = vpop.f32.mrb[2].mxu0  ;;  %v892_v50 = vpop.f32.mrb[2].mxu1 }
 0x128   : > { %633 = vst [vmem:[#allocation2 + $0x10] sm:$0xff] %v617_v41  ;;  %641 = vst [vmem:[#allocation2 + $0x50] sm:$0xff] %v625_v42  ;;  %v618_v51 = vadd.f32 %v884_v49, %v377_v39  ;;  %v626_v52 = vadd.f32 %v892_v50, %v385_v40  ;;  %v555_v53 = vpop.f32.mrb[3].mxu0  ;;  %v587_v54 = vpop.f32.mrb[3].mxu1 }
 0x129   : > { %631 = vst [vmem:[#allocation2] sm:$0xff] %v615_v47  ;;  %639 = vst [vmem:[#allocation2 + $0x40] sm:$0xff] %v623_v48  ;;  %v616_v55 = vadd.f32 %v555_v53, %v375_v45  ;;  %v624_v56 = vadd.f32 %v587_v54, %v383_v46 }
 0x12a   : > { %634 = vst [vmem:[#allocation2 + $0x18] sm:$0xff] %v618_v51  ;;  %642 = vst [vmem:[#allocation2 + $0x58] sm:$0xff] %v626_v52 }
 0x12b   : > { %632 = vst [vmem:[#allocation2 + $0x8] sm:$0xff] %v616_v55  ;;  %640 = vst [vmem:[#allocation2 + $0x48] sm:$0xff] %v624_v56 }
 0x12d   : > { %v887_v61 = vpop.f32.mrb[4].mxu0  ;;  %v895_v62 = vpop.f32.mrb[4].mxu1  ;;  %650 = sbr.rel (%p843_p11) target bundleno = 319 (0x13f), region = 81 }
 0x12e   : > { %v621_v1 = vadd.f32 %v887_v61, %v380_v57  ;;  %v629_v2 = vadd.f32 %v895_v62, %v388_v58  ;;  %v568_v3 = vpop.f32.mrb[5].mxu0  ;;  %v600_v4 = vpop.f32.mrb[5].mxu1 }
 0x12f   : > { %v619_v7 = vadd.f32 %v568_v3, %v378_v59  ;;  %v627_v8 = vadd.f32 %v600_v4, %v386_v60  ;;  %v888_v9 = vpop.f32.mrb[6].mxu0  ;;  %v896_v10 = vpop.f32.mrb[6].mxu1  ;;  %v653_v22 = vld [vmem:[#allocation2 + $0x10] sm:$0xff] (!%p843_p11) }
 0x130   : > { %637 = vst [vmem:[#allocation2 + $0x30] sm:$0xff] %v621_v1  ;;  %645 = vst [vmem:[#allocation2 + $0x70] sm:$0xff] %v629_v2  ;;  %v622_v11 = vadd.f32 %v888_v9, %v381_v63  ;;  %v630_v12 = vadd.f32 %v896_v10, %v389_v0  ;;  %v571_v13 = vpop.f32.mrb[7].mxu0  ;;  %v603_v14 = vpop.f32.mrb[7].mxu1  ;;  %v651_v17 = vld [vmem:[#allocation2] sm:$0xff] (!%p843_p11)  ;;  %v676_v25 = vadd.f32 (!%p843_p11), %v844_v18, %v653_v22  ;;  %v661_v36 = vld [vmem:[#allocation2 + $0x50] sm:$0xff] (!%p843_p11) }
 0x131   : > { %635 = vst [vmem:[#allocation2 + $0x20] sm:$0xff] %v619_v7  ;;  %643 = vst [vmem:[#allocation2 + $0x60] sm:$0xff] %v627_v8  ;;  %v620_v15 = vadd.f32 %v571_v13, %v379_v5  ;;  %v628_v16 = vadd.f32 %v603_v14, %v387_v6  ;;  %v674_v20 = vadd.f32 (!%p843_p11), %v844_v18, %v651_v17  ;;  %v654_v23 = vld [vmem:[#allocation2 + $0x18] sm:$0xff] (!%p843_p11)  ;;  %v659_v34 = vld [vmem:[#allocation2 + $0x40] sm:$0xff] (!%p843_p11) }
 0x132   : > { %638 = vst [vmem:[#allocation2 + $0x38] sm:$0xff] %v622_v11  ;;  %646 = vst [vmem:[#allocation2 + $0x78] sm:$0xff] %v630_v12  ;;  %v652_v19 = vld [vmem:[#allocation2 + $0x8] sm:$0xff] (!%p843_p11)  ;;  %v677_v26 = vadd.f32 (!%p843_p11), %v844_v18, %v654_v23  ;;  %v682_v37 = vadd.f32 (!%p843_p11), %v844_v18, %v659_v34  ;;  %v684_v39 = vadd.f32 (!%p843_p11), %v844_v18, %v661_v36  ;;  %v662_v40 = vld [vmem:[#allocation2 + $0x58] sm:$0xff] (!%p843_p11) }
 0x133   : > { %636 = vst [vmem:[#allocation2 + $0x28] sm:$0xff] %v620_v15  ;;  %644 = vst [vmem:[#allocation2 + $0x68] sm:$0xff] %v628_v16  ;;  %v675_v21 = vadd.f32 (!%p843_p11), %v844_v18, %v652_v19  ;;  %v660_v35 = vld [vmem:[#allocation2 + $0x48] sm:$0xff] (!%p843_p11)  ;;  %v685_v43 = vadd.f32 (!%p843_p11), %v844_v18, %v662_v40 }
 0x134   : > { %690 = vst [vmem:[%s1190_s3] sm:$0xff] %v674_v20  ;;  %692 = vst [vmem:[%s1190_s3 + $0x10] sm:$0xff] %v676_v25  ;;  %v683_v38 = vadd.f32 %v844_v18, %v660_v35 }
 0x135   : > { %691 = vst [vmem:[%s1190_s3 + $0x8] sm:$0xff] %v675_v21  ;;  %693 = vst [vmem:[%s1190_s3 + $0x18] sm:$0xff] %v677_v26 }
 0x136   : > { %698 = vst [vmem:[%s1190_s3 + $0x40] sm:$0xff] %v682_v37  ;;  %699 = vst [vmem:[%s1190_s3 + $0x48] sm:$0xff] %v683_v38 }
 0x137   : > { %v657_v29 = vld [vmem:[#allocation2 + $0x30] sm:$0xff]  ;;  %700 = vst [vmem:[%s1190_s3 + $0x50] sm:$0xff] %v684_v39  ;;  %701 = vst [vmem:[%s1190_s3 + $0x58] sm:$0xff] %v685_v43 }
 0x138   : > { %v655_v24 = vld [vmem:[#allocation2 + $0x20] sm:$0xff]  ;;  %v680_v32 = vadd.f32 %v844_v18, %v657_v29  ;;  %v665_v46 = vld [vmem:[#allocation2 + $0x70] sm:$0xff] }
 0x139   : > { %v678_v27 = vadd.f32 %v844_v18, %v655_v24  ;;  %v658_v30 = vld [vmem:[#allocation2 + $0x38] sm:$0xff]  ;;  %v663_v41 = vld [vmem:[#allocation2 + $0x60] sm:$0xff]  ;;  %v688_v48 = vadd.f32 %v844_v18, %v665_v46 }
 0x13a   : > { %v656_v28 = vld [vmem:[#allocation2 + $0x28] sm:$0xff]  ;;  %v681_v33 = vadd.f32 %v844_v18, %v658_v30  ;;  %696 = vst [vmem:[%s1190_s3 + $0x30] sm:$0xff] %v680_v32  ;;  %v686_v44 = vadd.f32 %v844_v18, %v663_v41  ;;  %v666_v47 = vld [vmem:[#allocation2 + $0x78] sm:$0xff] }
 0x13b   : > { %v679_v31 = vadd.f32 %v844_v18, %v656_v28  ;;  %694 = vst [vmem:[%s1190_s3 + $0x20] sm:$0xff] %v678_v27  ;;  %v664_v42 = vld [vmem:[#allocation2 + $0x68] sm:$0xff]  ;;  %v689_v49 = vadd.f32 %v844_v18, %v666_v47  ;;  %704 = vst [vmem:[%s1190_s3 + $0x70] sm:$0xff] %v688_v48 }
 0x13c   : > { %697 = vst [vmem:[%s1190_s3 + $0x38] sm:$0xff] %v681_v33  ;;  %v687_v45 = vadd.f32 %v844_v18, %v664_v42  ;;  %702 = vst [vmem:[%s1190_s3 + $0x60] sm:$0xff] %v686_v44 }
 0x13d   : > { %695 = vst [vmem:[%s1190_s3 + $0x28] sm:$0xff] %v679_v31  ;;  %705 = vst [vmem:[%s1190_s3 + $0x78] sm:$0xff] %v689_v49 }
 0x13e   : > { %703 = vst [vmem:[%s1190_s3 + $0x68] sm:$0xff] %v687_v45 }
 0x13f PF: > { %s13_s16 = sadd.s32 1, %s1008_s16   ;;  %s1191_s12 = smov %s996_s13 }
 0x140   : > { %p10_p12 = scmp.ge.s32.totalorder %s13_s16, 7   ;;  %s1192_s13 = smov %s1066_s20 }
 0x141   : > { %s1193_s14 = smov %s1004_s15  ;;  %s1194_s15 = smov %s1196_s17 }
 0x142   :  { %12 = sbr.rel (!%p10_p12) target bundleno = 3 (0x3), region = 122 }

// kernel: global_generator_forward.52
= control target key start
LH: loop header
LB: loop body
LE: loop exit
PB: predicated region body
PF: predicated region fallthrough
CT: control target
= control target key end

     0   :  { %s1417_s12 = smov 0   ;;  %s1419_s13 = smov 0   ;;  %s1678_s0 = inlined_call_operand.vmem [shape: bf16[512,384], index: 0, kind: input, shape index: {}]   ;;  %s1679_s1 = inlined_call_operand.vmem [shape: bf16[384,128], index: 1, kind: input, shape index: {}]   ;;  %s1680_s2 = inlined_call_operand.vmem [shape: f32[1,128], index: 2, kind: input, shape index: {}]   ;;  %s1681_s3 = inlined_call_operand.vmem [shape: f32[512,128], index: 3, kind: output, shape index: {}]  }
   0x1   :  { %s1421_s14 = smov 0   ;;  %s1423_s15 = smov 0  }
   0x2   :  { %s1425_s16 = smov 0   ;;  %s1427_s17 = smov 0  }
   0x3   :  { %s1429_s18 = smov 0  }
   0x4 LB: > { %s25_s19 = sadd.s32 1, %s1386_s16  ;;  %s32_s20 = sadd.s32 1, %s1390_s17  ;;  %s1394_s18 = sphi %s1429_s18, %s13_s18   ;;  %s1390_s17 = sphi %s1427_s17, %s1687_s17   ;;  %s1386_s16 = sphi %s1425_s16, %s1686_s16   ;;  %s1382_s15 = sphi %s1423_s15, %s1685_s15   ;;  %s1378_s14 = sphi %s1421_s14, %s1684_s14   ;;  %s1374_s13 = sphi %s1419_s13, %s1683_s13   ;;  %s1370_s12 = sphi %s1417_s12, %s1682_s12  }
   0x5   : > { %p26_p0 = scmp.ge.s32.totalorder %s25_s19, 3  ;;  %p48_p1 = scmp.ne.s32.totalorder %s1374_s13, %s1370_s12 }
   0x6   : > { %p49_p2 = scmp.eq.s32.totalorder %s1394_s18, 0  ;;  %s41_s24 = sadd.s32 1, %s1374_s13 }
   0x7   : > { %s1689_s19 = smov (%p26_p0, %s25_s19), 0  ;;  %s1691_s20 = smov (!%p26_p0, %s32_s20), %s1390_s17 }
   0x8   : > { %p50_p3 = por %p49_p2, %p48_p1  ;;  %p34_p4 = scmp.ge.s32.totalorder %s1691_s20, 2 }
   0x9   : > { %s37_s21 = ssub.s32 %s1386_s16, %s1689_s19  ;;  %p1130_p6 = scmp.ge.s32.totalorder %s1394_s18, 6 }
   0xa   : > { %s1693_s20 = smov (%p34_p4, %s1691_s20), 0 }
   0xb   : > { %s36_s22 = ssub.s32 %s1390_s17, %s1693_s20  ;;  %162 = sbr.rel (%p1130_p6) target bundleno = 46 (0x2e), region = 20 }
   0xc   : > { %s38_s23 = sor.u32 %s37_s21, %s36_s22 }
   0xd   : > { %p39_p5 = scmp.eq.s32.totalorder %s38_s23, 0 }
   0xf   : > { %s1468_s25 = scalar_select %p39_p5, %s1374_s13, %s41_s24  }
  0x12   : > { %165 = sbr.rel (!%p50_p3) target bundleno = 46 (0x2e), region = 24  ;;  %s167_s26 = sand.u32 (%p50_p3), 1, %s1374_s13  }
  0x13   : > { %s1258_s27 = smul.u32 (%p50_p3), 96, %s1390_s17  ;;  %s1131_s28 = sshll.u32 (%p50_p3), %s167_s26, 7 }
  0x14   : > { %s1482_s7 = scalar_lea.vmem (%p50_p3), [#allocation3], %s1131_s28 }
  0x15   : > { %s172_s29 = sadd.s32 (%p50_p3), %s1386_s16, %s1258_s27 }
  0x16   : > { %s1134_s30 = sshll.u32 (%p50_p3), %s172_s29, 2 }
  0x17   : > { %s1477_s6 = scalar_lea.vmem (%p50_p3), %s1678_s0, %s1134_s30 }
  0x18   : > { %v190_v0 = vld [vmem:[%s1477_s6] sm:$0xf] (%p50_p3)  ;;  %v192_v1 = vld [vmem:[%s1477_s6 + $0xc] sm:$0xf] (%p50_p3)  ;;  %v194_v2 = vld [vmem:[%s1477_s6 + $0x18] sm:$0xf] (%p50_p3) }
  0x19   : > { %191 = vst [vmem:[%s1482_s7] sm:$0xf] %v190_v0  ;;  %193 = vst [vmem:[%s1482_s7 + $0x4] sm:$0xf] %v192_v1  ;;  %v196_v3 = vld [vmem:[%s1477_s6 + $0x24] sm:$0xf] }
  0x1a   : > { %195 = vst [vmem:[%s1482_s7 + $0x8] sm:$0xf] %v194_v2  ;;  %v198_v4 = vld [vmem:[%s1477_s6 + $0x30] sm:$0xf]  ;;  %v200_v5 = vld [vmem:[%s1477_s6 + $0x3c] sm:$0xf] }
  0x1b   : > { %197 = vst [vmem:[%s1482_s7 + $0xc] sm:$0xf] %v196_v3  ;;  %199 = vst [vmem:[%s1482_s7 + $0x10] sm:$0xf] %v198_v4  ;;  %v202_v6 = vld [vmem:[%s1477_s6 + $0x48] sm:$0xf] }
  0x1c   : > { %201 = vst [vmem:[%s1482_s7 + $0x14] sm:$0xf] %v200_v5  ;;  %v204_v7 = vld [vmem:[%s1477_s6 + $0x54] sm:$0xf]  ;;  %v206_v8 = vld [vmem:[%s1477_s6 + $0x60] sm:$0xf] }
  0x1d   : > { %203 = vst [vmem:[%s1482_s7 + $0x18] sm:$0xf] %v202_v6  ;;  %205 = vst [vmem:[%s1482_s7 + $0x1c] sm:$0xf] %v204_v7  ;;  %v208_v9 = vld [vmem:[%s1477_s6 + $0x6c] sm:$0xf] }
  0x1e   : > { %207 = vst [vmem:[%s1482_s7 + $0x20] sm:$0xf] %v206_v8  ;;  %v210_v10 = vld [vmem:[%s1477_s6 + $0x78] sm:$0xf]  ;;  %v212_v11 = vld [vmem:[%s1477_s6 + $0x84] sm:$0xf] }
  0x1f   : > { %209 = vst [vmem:[%s1482_s7 + $0x24] sm:$0xf] %v208_v9  ;;  %211 = vst [vmem:[%s1482_s7 + $0x28] sm:$0xf] %v210_v10  ;;  %v214_v12 = vld [vmem:[%s1477_s6 + $0x90] sm:$0xf] }
  0x20   : > { %213 = vst [vmem:[%s1482_s7 + $0x2c] sm:$0xf] %v212_v11  ;;  %v216_v13 = vld [vmem:[%s1477_s6 + $0x9c] sm:$0xf]  ;;  %v218_v14 = vld [vmem:[%s1477_s6 + $0xa8] sm:$0xf] }
  0x21   : > { %215 = vst [vmem:[%s1482_s7 + $0x30] sm:$0xf] %v214_v12  ;;  %217 = vst [vmem:[%s1482_s7 + $0x34] sm:$0xf] %v216_v13  ;;  %v220_v15 = vld [vmem:[%s1477_s6 + $0xb4] sm:$0xf] }
  0x22   : > { %219 = vst [vmem:[%s1482_s7 + $0x38] sm:$0xf] %v218_v14  ;;  %v222_v16 = vld [vmem:[%s1477_s6 + $0xc0] sm:$0xf]  ;;  %v224_v17 = vld [vmem:[%s1477_s6 + $0xcc] sm:$0xf] }
  0x23   : > { %221 = vst [vmem:[%s1482_s7 + $0x3c] sm:$0xf] %v220_v15  ;;  %223 = vst [vmem:[%s1482_s7 + $0x40] sm:$0xf] %v222_v16  ;;  %v226_v18 = vld [vmem:[%s1477_s6 + $0xd8] sm:$0xf] }
  0x24   : > { %225 = vst [vmem:[%s1482_s7 + $0x44] sm:$0xf] %v224_v17  ;;  %v228_v19 = vld [vmem:[%s1477_s6 + $0xe4] sm:$0xf]  ;;  %v230_v20 = vld [vmem:[%s1477_s6 + $0xf0] sm:$0xf] }
  0x25   : > { %227 = vst [vmem:[%s1482_s7 + $0x48] sm:$0xf] %v226_v18  ;;  %229 = vst [vmem:[%s1482_s7 + $0x4c] sm:$0xf] %v228_v19  ;;  %v232_v21 = vld [vmem:[%s1477_s6 + $0xfc] sm:$0xf] }
  0x26   : > { %231 = vst [vmem:[%s1482_s7 + $0x50] sm:$0xf] %v230_v20  ;;  %v234_v22 = vld [vmem:[%s1477_s6 + $0x108] sm:$0xf]  ;;  %v236_v23 = vld [vmem:[%s1477_s6 + $0x114] sm:$0xf] }
  0x27   : > { %233 = vst [vmem:[%s1482_s7 + $0x54] sm:$0xf] %v232_v21  ;;  %235 = vst [vmem:[%s1482_s7 + $0x58] sm:$0xf] %v234_v22  ;;  %v238_v24 = vld [vmem:[%s1477_s6 + $0x120] sm:$0xf] }
  0x28   : > { %237 = vst [vmem:[%s1482_s7 + $0x5c] sm:$0xf] %v236_v23  ;;  %v240_v25 = vld [vmem:[%s1477_s6 + $0x12c] sm:$0xf]  ;;  %v242_v26 = vld [vmem:[%s1477_s6 + $0x138] sm:$0xf] }
  0x29   : > { %239 = vst [vmem:[%s1482_s7 + $0x60] sm:$0xf] %v238_v24  ;;  %241 = vst [vmem:[%s1482_s7 + $0x64] sm:$0xf] %v240_v25  ;;  %v244_v27 = vld [vmem:[%s1477_s6 + $0x144] sm:$0xf] }
  0x2a   : > { %243 = vst [vmem:[%s1482_s7 + $0x68] sm:$0xf] %v242_v26  ;;  %v246_v28 = vld [vmem:[%s1477_s6 + $0x150] sm:$0xf]  ;;  %v248_v29 = vld [vmem:[%s1477_s6 + $0x15c] sm:$0xf] }
  0x2b   : > { %245 = vst [vmem:[%s1482_s7 + $0x6c] sm:$0xf] %v244_v27  ;;  %247 = vst [vmem:[%s1482_s7 + $0x70] sm:$0xf] %v246_v28  ;;  %v250_v30 = vld [vmem:[%s1477_s6 + $0x168] sm:$0xf] }
  0x2c   : > { %249 = vst [vmem:[%s1482_s7 + $0x74] sm:$0xf] %v248_v29  ;;  %v252_v31 = vld [vmem:[%s1477_s6 + $0x174] sm:$0xf]  ;;  %251 = vst [vmem:[%s1482_s7 + $0x78] sm:$0xf] %v250_v30 }
  0x2d   : > { %253 = vst [vmem:[%s1482_s7 + $0x7c] sm:$0xf] %v252_v31 }
  0x2e PF: > { %p1135_p7 = scmp.ge.s32.totalorder %s1394_s18, 1  ;;  %p351_p8 = scmp.lt.s32.totalorder %s1394_s18, 7 }
  0x30   : > { %p352_p9 = pnand %p1135_p7, %p351_p8 }
  0x31   : > { %s358_s8 = sand.u32 (!%p352_p9), 1, %s1370_s12   ;;  %s1137_s9 = sshll.u32 (!%p352_p9), %s1378_s14, 4 }
  0x32   : > { %355 = sbr.rel (%p352_p9) target bundleno = 361 (0x169), region = 69  ;;  %s1136_s10 = sshll.u32 (!%p352_p9), %s358_s8, 7 }
  0x33   : > { %p397_p10 = scmp.lt.s32.totalorder (!%p352_p9), %s1137_s9, 47  ;;  %s1139_s11 = sshll.u32 (!%p352_p9), %s1382_s15, 5 }
  0x34   : > { %p409_p11 = scmp.lt.s32.totalorder (!%p352_p9), %s1139_s11, 63  ;;  %s1560_s12 = scalar_lea.vmem (!%p352_p9), [#allocation3], %s1136_s10 }
  0x35   : > { %p1141_p12 = scmp.ne.s32.totalorder (!%p352_p9), %s1378_s14, 0 }
  0x39   : > { %s1695_s9 = smov (!%p397_p10, %s1137_s9), 47  ;;  %s1697_s11 = smov (!%p409_p11, %s1139_s11), 63 }
  0x3a   : > { %s1138_s21 = sshll.u32 %s1695_s9, 2  ;;  %s1140_s26 = sshll.u32 %s1697_s11, 3  ;;  %v1396_v32 = vmov (!%p1141_p12), 0.0  }
  0x3b   : > { %s1553_s24 = scalar_lea.vmem %s1679_s1, %s1138_s21  ;;  %s1558_s29 = scalar_lea.vmem %s1681_s3, %s1140_s26  ;;  %422 = vst [vmem:[#allocation2] sm:$0xff] (!%p1141_p12), %v1396_v32  ;;  %423 = vst [vmem:[#allocation2 + $0x8] sm:$0xff] (!%p1141_p12), %v1396_v32 }
  0x3c   : > { %421 = sbr.rel (%p1141_p12) target bundleno = 75 (0x4b), region = 77  ;;  %424 = vst [vmem:[#allocation2 + $0x10] sm:$0xff] (!%p1141_p12), %v1396_v32  ;;  %425 = vst [vmem:[#allocation2 + $0x18] sm:$0xff] (!%p1141_p12), %v1396_v32 }
  0x3d   : > { %426 = vst [vmem:[#allocation2 + $0x20] sm:$0xff] (!%p1141_p12), %v1396_v32  ;;  %427 = vst [vmem:[#allocation2 + $0x28] sm:$0xff] (!%p1141_p12), %v1396_v32 }
  0x3e   : > { %428 = vst [vmem:[#allocation2 + $0x30] sm:$0xff] (!%p1141_p12), %v1396_v32  ;;  %429 = vst [vmem:[#allocation2 + $0x38] sm:$0xff] (!%p1141_p12), %v1396_v32 }
  0x3f   : > { %430 = vst [vmem:[#allocation2 + $0x40] sm:$0xff] (!%p1141_p12), %v1396_v32  ;;  %431 = vst [vmem:[#allocation2 + $0x48] sm:$0xff] (!%p1141_p12), %v1396_v32 }
  0x40   : > { %432 = vst [vmem:[#allocation2 + $0x50] sm:$0xff] (!%p1141_p12), %v1396_v32  ;;  %433 = vst [vmem:[#allocation2 + $0x58] sm:$0xff] (!%p1141_p12), %v1396_v32 }
  0x41   : > { %434 = vst [vmem:[#allocation2 + $0x60] sm:$0xff] (!%p1141_p12), %v1396_v32  ;;  %435 = vst [vmem:[#allocation2 + $0x68] sm:$0xff] (!%p1141_p12), %v1396_v32 }
  0x42   : > { %436 = vst [vmem:[#allocation2 + $0x70] sm:$0xff] (!%p1141_p12), %v1396_v32  ;;  %437 = vst [vmem:[#allocation2 + $0x78] sm:$0xff] (!%p1141_p12), %v1396_v32 }
  0x43   : > { %438 = vst [vmem:[#allocation2 + $0x80] sm:$0xff] %v1396_v32  ;;  %439 = vst [vmem:[#allocation2 + $0x88] sm:$0xff] %v1396_v32 }
  0x44   : > { %440 = vst [vmem:[#allocation2 + $0x90] sm:$0xff] %v1396_v32  ;;  %441 = vst [vmem:[#allocation2 + $0x98] sm:$0xff] %v1396_v32 }
  0x45   : > { %442 = vst [vmem:[#allocation2 + $0xa0] sm:$0xff] %v1396_v32  ;;  %443 = vst [vmem:[#allocation2 + $0xa8] sm:$0xff] %v1396_v32 }
  0x46   : > { %444 = vst [vmem:[#allocation2 + $0xb0] sm:$0xff] %v1396_v32  ;;  %445 = vst [vmem:[#allocation2 + $0xb8] sm:$0xff] %v1396_v32 }
  0x47   : > { %446 = vst [vmem:[#allocation2 + $0xc0] sm:$0xff] %v1396_v32  ;;  %447 = vst [vmem:[#allocation2 + $0xc8] sm:$0xff] %v1396_v32 }
  0x48   : > { %448 = vst [vmem:[#allocation2 + $0xd0] sm:$0xff] %v1396_v32  ;;  %449 = vst [vmem:[#allocation2 + $0xd8] sm:$0xff] %v1396_v32 }
  0x49   : > { %450 = vst [vmem:[#allocation2 + $0xe0] sm:$0xff] %v1396_v32  ;;  %451 = vst [vmem:[#allocation2 + $0xe8] sm:$0xff] %v1396_v32 }
  0x4a   : > { %452 = vst [vmem:[#allocation2 + $0xf0] sm:$0xff] %v1396_v32  ;;  %453 = vst [vmem:[#allocation2 + $0xf8] sm:$0xff] %v1396_v32 }
  0x4b PF: > { %v1316_v33 = vld [vmem:[%s1553_s24] sm:$0xff]   ;;  %v1317_v34 = vld [vmem:[%s1553_s24 + $0x8] sm:$0xff]   ;;  %v1318_v35 = vld [vmem:[%s1553_s24 + $0x10] sm:$0xff]   ;;  %p1166_p13 = scmp.ne.s32.totalorder %s1378_s14, 2 }
  0x4c   : > { %1194 = vmatprep.subr.bf16.mxu0 %v1316_v33  ;;  %1242 = vmatprep.subr.bf16.mxu1 %v1316_v33  ;;  %v1319_v36 = vld [vmem:[%s1553_s24 + $0x18] sm:$0xff]   ;;  %v1324_v37 = vld [vmem:[%s1560_s12] sm:$0xff]   ;;  %v1321_v40 = vld [vmem:[%s1553_s24 + $0x28] sm:$0xff]  }
  0x4d   : > { %1195 = vmatpush3.bf16.msra.mxu0 %v1316_v33  ;;  %1250 = vmatpush3.bf16.msra.mxu1 %v1316_v33  ;;  %v1325_v38 = vld [vmem:[%s1560_s12 + $0x40] sm:$0xff]   ;;  %v1322_v41 = vld [vmem:[%s1553_s24 + $0x30] sm:$0xff]   ;;  %v1323_v42 = vld [vmem:[%s1553_s24 + $0x38] sm:$0xff]  }
  0x4e   : > { %1196 = vmatprep.subr.bf16.mxu0 %v1317_v34  ;;  %1243 = vmatprep.subr.bf16.mxu1 %v1317_v34  ;;  %v1320_v39 = vld [vmem:[%s1553_s24 + $0x20] sm:$0xff]   ;;  %v1326_v43 = vld [vmem:[%s1560_s12 + $0x8] sm:$0xff]   ;;  %v1328_v45 = vld [vmem:[%s1560_s12 + $0x10] sm:$0xff]  }
  0x4f   : > { %1210 = vmatprep.mubr.bf16.mxu0 %v1324_v37  ;;  %1226 = vmatprep.mubr.bf16.mxu1 %v1325_v38  ;;  %v1327_v44 = vld [vmem:[%s1560_s12 + $0x48] sm:$0xff]   ;;  %v1329_v46 = vld [vmem:[%s1560_s12 + $0x50] sm:$0xff]   ;;  %v1330_v47 = vld [vmem:[%s1560_s12 + $0x18] sm:$0xff]  }
  0x50   : > { %v1331_v48 = vld [vmem:[%s1560_s12 + $0x58] sm:$0xff]   ;;  %v1332_v49 = vld [vmem:[%s1560_s12 + $0x20] sm:$0xff]   ;;  %v1334_v51 = vld [vmem:[%s1560_s12 + $0x28] sm:$0xff]  }
  0x51   : > { %1197 = vmatpush3.bf16.msra.mxu0 %v1317_v34  ;;  %1251 = vmatpush3.bf16.msra.mxu1 %v1317_v34  ;;  %v1333_v50 = vld [vmem:[%s1560_s12 + $0x60] sm:$0xff]   ;;  %v1335_v52 = vld [vmem:[%s1560_s12 + $0x68] sm:$0xff]   ;;  %v1336_v53 = vld [vmem:[%s1560_s12 + $0x30] sm:$0xff]  }
  0x52   : > { %1198 = vmatprep.subr.bf16.mxu0 %v1318_v35  ;;  %1244 = vmatprep.subr.bf16.mxu1 %v1318_v35  ;;  %v1337_v54 = vld [vmem:[%s1560_s12 + $0x70] sm:$0xff]   ;;  %v1338_v55 = vld [vmem:[%s1560_s12 + $0x38] sm:$0xff]   ;;  %v454_v59 = vld [vmem:[#allocation2] sm:$0xff] }
  0x53   : > { %v1339_v56 = vld [vmem:[%s1560_s12 + $0x78] sm:$0xff]   ;;  %v456_v57 = vld [vmem:[#allocation2 + $0x10] sm:$0xff]  ;;  %v470_v60 = vld [vmem:[#allocation2 + $0x80] sm:$0xff] }
  0x54   : > { %v472_v58 = vld [vmem:[#allocation2 + $0x90] sm:$0xff]  ;;  %v457_v63 = vld [vmem:[#allocation2 + $0x18] sm:$0xff]  ;;  %v455_v5 = vld [vmem:[#allocation2 + $0x8] sm:$0xff] }
  0x55   : > { %1199 = vmatpush3.bf16.msra.mxu0 %v1318_v35  ;;  %1252 = vmatpush3.bf16.msra.mxu1 %v1318_v35  ;;  %v473_v0 = vld [vmem:[#allocation2 + $0x98] sm:$0xff]  ;;  %v471_v6 = vld [vmem:[#allocation2 + $0x88] sm:$0xff]  ;;  %v460_v17 = vld [vmem:[#allocation2 + $0x30] sm:$0xff] }
  0x56   : > { %1200 = vmatprep.subr.bf16.mxu0 %v1319_v36  ;;  %1245 = vmatprep.subr.bf16.mxu1 %v1319_v36  ;;  %v476_v18 = vld [vmem:[#allocation2 + $0xb0] sm:$0xff]  ;;  %v458_v19 = vld [vmem:[#allocation2 + $0x20] sm:$0xff]  ;;  %v461_v23 = vld [vmem:[#allocation2 + $0x38] sm:$0xff] }
  0x57   : > { %v474_v20 = vld [vmem:[#allocation2 + $0xa0] sm:$0xff]  ;;  %v477_v24 = vld [vmem:[#allocation2 + $0xb8] sm:$0xff]  ;;  %v459_v29 = vld [vmem:[#allocation2 + $0x28] sm:$0xff] }
  0x58   : > { %v475_v30 = vld [vmem:[#allocation2 + $0xa8] sm:$0xff] }
  0x59   : > { %1201 = vmatpush3.bf16.msra.mxu0 %v1319_v36  ;;  %1253 = vmatpush3.bf16.msra.mxu1 %v1319_v36 }
  0x5a   : > { %1202 = vmatprep.subr.bf16.mxu0 %v1320_v39  ;;  %1246 = vmatprep.subr.bf16.mxu1 %v1320_v39 }
  0x5d   : > { %1203 = vmatpush3.bf16.msra.mxu0 %v1320_v39  ;;  %1254 = vmatpush3.bf16.msra.mxu1 %v1320_v39 }
  0x5e   : > { %1204 = vmatprep.subr.bf16.mxu0 %v1321_v40  ;;  %1247 = vmatprep.subr.bf16.mxu1 %v1321_v40 }
  0x61   : > { %1205 = vmatpush3.bf16.msra.mxu0 %v1321_v40  ;;  %1255 = vmatpush3.bf16.msra.mxu1 %v1321_v40 }
  0x62   : > { %1206 = vmatprep.subr.bf16.mxu0 %v1322_v41  ;;  %1248 = vmatprep.subr.bf16.mxu1 %v1322_v41 }
  0x65   : > { %1207 = vmatpush3.bf16.msra.mxu0 %v1322_v41  ;;  %1256 = vmatpush3.bf16.msra.mxu1 %v1322_v41  ;;  %v464_v41 = vld [vmem:[#allocation2 + $0x50] sm:$0xff] }
  0x66   : > { %1208 = vmatprep.subr.bf16.mxu0 %v1323_v42  ;;  %1249 = vmatprep.subr.bf16.mxu1 %v1323_v42 }
  0x69   : > { %1209 = vmatpush3.bf16.msra.mxu0 %v1323_v42  ;;  %1257 = vmatpush3.bf16.msra.mxu1 %v1323_v42  ;;  %v480_v42 = vld [vmem:[#allocation2 + $0xd0] sm:$0xff] }
  0x6c   : > { %1211 = vmatmul.mubr.bf16.vlgmr.msra.gmra.mrb[0].mxu0 %v1326_v43  ;;  %1227 = vmatmul.mubr.bf16.vlgmr.msra.gmra.mrb[0].mxu1 %v1327_v44  ;;  %v462_v43 = vld [vmem:[#allocation2 + $0x40] sm:$0xff] }
  0x6d   : > { %1214 = vmatprep.mubr.bf16.mxu0 %v1328_v45  ;;  %1230 = vmatprep.mubr.bf16.mxu1 %v1329_v46  ;;  %v478_v44 = vld [vmem:[#allocation2 + $0xc0] sm:$0xff] }
  0x74   : > { %1215 = vmatmul.mubr.bf16.gmra.mrb[4].mxu0 %v1330_v47  ;;  %1231 = vmatmul.mubr.bf16.gmra.mrb[4].mxu1 %v1331_v48  ;;  %v465_v47 = vld [vmem:[#allocation2 + $0x58] sm:$0xff] }
  0x75   : > { %1218 = vmatprep.mubr.bf16.mxu0 %v1332_v49  ;;  %1234 = vmatprep.mubr.bf16.mxu1 %v1333_v50  ;;  %v481_v48 = vld [vmem:[#allocation2 + $0xd8] sm:$0xff] }
  0x7c   : > { %1219 = vmatmul.mubr.bf16.gmra.mrb[8].mxu0 %v1334_v51  ;;  %1235 = vmatmul.mubr.bf16.gmra.mrb[8].mxu1 %v1335_v52 }
  0x7d   : > { %1222 = vmatprep.mubr.bf16.mxu0 %v1336_v53  ;;  %1238 = vmatprep.mubr.bf16.mxu1 %v1337_v54  ;;  %v463_v53 = vld [vmem:[#allocation2 + $0x48] sm:$0xff] }
  0x7e   : > { %v479_v54 = vld [vmem:[#allocation2 + $0xc8] sm:$0xff] }
  0x84   : > { %1223 = vmatmul.mubr.bf16.gmra.mrb[12].mxu0 %v1338_v55  ;;  %1239 = vmatmul.mubr.bf16.gmra.mrb[12].mxu1 %v1339_v56 }
 0x13f   : > { %v1212_v61 = vpop.f32.mrb[0].mxu0  ;;  %v1228_v62 = vpop.f32.mrb[0].mxu1 }
 0x140   : > { %v841_v1 = vadd.f32 %v1212_v61, %v456_v57  ;;  %v857_v2 = vadd.f32 %v1228_v62, %v472_v58  ;;  %v712_v3 = vpop.f32.mrb[1].mxu0  ;;  %v776_v4 = vpop.f32.mrb[1].mxu1 }
 0x141   : > { %v839_v7 = vadd.f32 %v712_v3, %v454_v59  ;;  %v855_v8 = vadd.f32 %v776_v4, %v470_v60  ;;  %v1213_v9 = vpop.f32.mrb[2].mxu0  ;;  %v1229_v10 = vpop.f32.mrb[2].mxu1  ;;  %v466_v3 = vld [vmem:[#allocation2 + $0x60] sm:$0xff] }
 0x142   : > { %873 = vst [vmem:[#allocation2 + $0x10] sm:$0xff] %v841_v1  ;;  %889 = vst [vmem:[#allocation2 + $0x90] sm:$0xff] %v857_v2  ;;  %v842_v11 = vadd.f32 %v1213_v9, %v457_v63  ;;  %v858_v12 = vadd.f32 %v1229_v10, %v473_v0  ;;  %v715_v13 = vpop.f32.mrb[3].mxu0  ;;  %v779_v14 = vpop.f32.mrb[3].mxu1  ;;  %v468_v1 = vld [vmem:[#allocation2 + $0x70] sm:$0xff]  ;;  %v482_v4 = vld [vmem:[#allocation2 + $0xe0] sm:$0xff] }
 0x143   : > { %871 = vst [vmem:[#allocation2] sm:$0xff] %v839_v7  ;;  %887 = vst [vmem:[#allocation2 + $0x80] sm:$0xff] %v855_v8  ;;  %v840_v15 = vadd.f32 %v715_v13, %v455_v5  ;;  %v856_v16 = vadd.f32 %v779_v14, %v471_v6  ;;  %v484_v2 = vld [vmem:[#allocation2 + $0xf0] sm:$0xff]  ;;  %v469_v7 = vld [vmem:[#allocation2 + $0x78] sm:$0xff] }
 0x144   : > { %874 = vst [vmem:[#allocation2 + $0x18] sm:$0xff] %v842_v11  ;;  %890 = vst [vmem:[#allocation2 + $0x98] sm:$0xff] %v858_v12  ;;  %v485_v8 = vld [vmem:[#allocation2 + $0xf8] sm:$0xff]  ;;  %v467_v13 = vld [vmem:[#allocation2 + $0x68] sm:$0xff] }
 0x145   : > { %872 = vst [vmem:[#allocation2 + $0x8] sm:$0xff] %v840_v15  ;;  %888 = vst [vmem:[#allocation2 + $0x88] sm:$0xff] %v856_v16  ;;  %v483_v14 = vld [vmem:[#allocation2 + $0xe8] sm:$0xff] }
 0x147   : > { %v1216_v21 = vpop.f32.mrb[4].mxu0  ;;  %v1232_v22 = vpop.f32.mrb[4].mxu1 }
 0x148   : > { %v845_v25 = vadd.f32 %v1216_v21, %v460_v17  ;;  %v861_v26 = vadd.f32 %v1232_v22, %v476_v18  ;;  %v728_v27 = vpop.f32.mrb[5].mxu0  ;;  %v792_v28 = vpop.f32.mrb[5].mxu1 }
 0x149   : > { %v843_v31 = vadd.f32 %v728_v27, %v458_v19  ;;  %v859_v32 = vadd.f32 %v792_v28, %v474_v20  ;;  %v1217_v33 = vpop.f32.mrb[6].mxu0  ;;  %v1233_v34 = vpop.f32.mrb[6].mxu1 }
 0x14a   : > { %877 = vst [vmem:[#allocation2 + $0x30] sm:$0xff] %v845_v25  ;;  %893 = vst [vmem:[#allocation2 + $0xb0] sm:$0xff] %v861_v26  ;;  %v846_v35 = vadd.f32 %v1217_v33, %v461_v23  ;;  %v862_v36 = vadd.f32 %v1233_v34, %v477_v24  ;;  %v731_v37 = vpop.f32.mrb[7].mxu0  ;;  %v795_v38 = vpop.f32.mrb[7].mxu1  ;;  %v907_v25 = vld [vmem:[#allocation2] sm:$0xff] (!%p1166_p13) }
 0x14b   : > { %875 = vst [vmem:[#allocation2 + $0x20] sm:$0xff] %v843_v31  ;;  %891 = vst [vmem:[#allocation2 + $0xa0] sm:$0xff] %v859_v32  ;;  %v844_v39 = vadd.f32 %v731_v37, %v459_v29  ;;  %v860_v40 = vadd.f32 %v795_v38, %v475_v30  ;;  %v1591_v26 = vld [vmem:[%s1680_s2] ss:$0 sm:$0xff] (!%p1166_p13)  ;;  %v909_v30 = vld [vmem:[#allocation2 + $0x10] sm:$0xff] (!%p1166_p13) }
 0x14c   : > { %878 = vst [vmem:[#allocation2 + $0x38] sm:$0xff] %v846_v35  ;;  %894 = vst [vmem:[#allocation2 + $0xb8] sm:$0xff] %v862_v36  ;;  %v908_v27 = vld [vmem:[#allocation2 + $0x8] sm:$0xff] (!%p1166_p13)  ;;  %v946_v28 = vadd.f32 (!%p1166_p13), %v1591_v26, %v907_v25  ;;  %v910_v31 = vld [vmem:[#allocation2 + $0x18] sm:$0xff] (!%p1166_p13)  ;;  %v948_v33 = vadd.f32 (!%p1166_p13), %v1591_v26, %v909_v30 }
 0x14d   : > { %876 = vst [vmem:[#allocation2 + $0x28] sm:$0xff] %v844_v39  ;;  %892 = vst [vmem:[#allocation2 + $0xa8] sm:$0xff] %v860_v40  ;;  %v947_v29 = vadd.f32 (!%p1166_p13), %v1591_v26, %v908_v27  ;;  %v949_v34 = vadd.f32 (!%p1166_p13), %v1591_v26, %v910_v31 }
 0x14e   : > { %978 = vst [vmem:[%s1558_s29] sm:$0xff] (!%p1166_p13), %v946_v28  ;;  %980 = vst [vmem:[%s1558_s29 + $0x10] sm:$0xff] (!%p1166_p13), %v948_v33 }
 0x14f   : > { %v1220_v45 = vpop.f32.mrb[8].mxu0  ;;  %v1236_v46 = vpop.f32.mrb[8].mxu1  ;;  %979 = vst [vmem:[%s1558_s29 + $0x8] sm:$0xff] (!%p1166_p13), %v947_v29  ;;  %981 = vst [vmem:[%s1558_s29 + $0x18] sm:$0xff] (!%p1166_p13), %v949_v34 }
 0x150   : > { %v849_v49 = vadd.f32 %v1220_v45, %v464_v41  ;;  %v865_v50 = vadd.f32 %v1236_v46, %v480_v42  ;;  %v744_v51 = vpop.f32.mrb[9].mxu0  ;;  %v808_v52 = vpop.f32.mrb[9].mxu1 }
 0x151   : > { %v847_v55 = vadd.f32 %v744_v51, %v462_v43  ;;  %v863_v56 = vadd.f32 %v808_v52, %v478_v44  ;;  %v1221_v57 = vpop.f32.mrb[10].mxu0  ;;  %v1237_v58 = vpop.f32.mrb[10].mxu1  ;;  %v913_v37 = vld [vmem:[#allocation2 + $0x30] sm:$0xff] (!%p1166_p13) }
 0x152   : > { %881 = vst [vmem:[#allocation2 + $0x50] sm:$0xff] %v849_v49  ;;  %897 = vst [vmem:[#allocation2 + $0xd0] sm:$0xff] %v865_v50  ;;  %v850_v59 = vadd.f32 %v1221_v57, %v465_v47  ;;  %v866_v60 = vadd.f32 %v1237_v58, %v481_v48  ;;  %v747_v61 = vpop.f32.mrb[11].mxu0  ;;  %v811_v62 = vpop.f32.mrb[11].mxu1  ;;  %v911_v32 = vld [vmem:[#allocation2 + $0x20] sm:$0xff] (!%p1166_p13)  ;;  %v952_v40 = vadd.f32 (!%p1166_p13), %v1591_v26, %v913_v37 }
 0x153   : > { %879 = vst [vmem:[#allocation2 + $0x40] sm:$0xff] %v847_v55  ;;  %895 = vst [vmem:[#allocation2 + $0xc0] sm:$0xff] %v863_v56  ;;  %v848_v63 = vadd.f32 %v747_v61, %v463_v53  ;;  %v864_v0 = vadd.f32 %v811_v62, %v479_v54  ;;  %v950_v35 = vadd.f32 (!%p1166_p13), %v1591_v26, %v911_v32  ;;  %v914_v38 = vld [vmem:[#allocation2 + $0x38] sm:$0xff] (!%p1166_p13)  ;;  %v923_v56 = vld [vmem:[#allocation2 + $0x80] sm:$0xff] (!%p1166_p13) }
 0x154   : > { %882 = vst [vmem:[#allocation2 + $0x58] sm:$0xff] %v850_v59  ;;  %898 = vst [vmem:[#allocation2 + $0xd8] sm:$0xff] %v866_v60  ;;  %v912_v36 = vld [vmem:[#allocation2 + $0x28] sm:$0xff] (!%p1166_p13)  ;;  %v953_v41 = vadd.f32 (!%p1166_p13), %v1591_v26, %v914_v38  ;;  %v962_v59 = vadd.f32 (!%p1166_p13), %v1591_v26, %v923_v56  ;;  %v925_v61 = vld [vmem:[#allocation2 + $0x90] sm:$0xff] (!%p1166_p13) }
 0x155   : > { %880 = vst [vmem:[#allocation2 + $0x48] sm:$0xff] %v848_v63  ;;  %896 = vst [vmem:[#allocation2 + $0xc8] sm:$0xff] %v864_v0  ;;  %v951_v39 = vadd.f32 (!%p1166_p13), %v1591_v26, %v912_v36  ;;  %v924_v60 = vld [vmem:[#allocation2 + $0x88] sm:$0xff] (!%p1166_p13)  ;;  %v926_v62 = vld [vmem:[#allocation2 + $0x98] sm:$0xff] (!%p1166_p13)  ;;  %v964_v0 = vadd.f32 (!%p1166_p13), %v1591_v26, %v925_v61 }
 0x156   : > { %982 = vst [vmem:[%s1558_s29 + $0x20] sm:$0xff] (!%p1166_p13), %v950_v35  ;;  %984 = vst [vmem:[%s1558_s29 + $0x30] sm:$0xff] (!%p1166_p13), %v952_v40  ;;  %v963_v63 = vadd.f32 (!%p1166_p13), %v1591_v26, %v924_v60 }
 0x157   : > { %v1224_v5 = vpop.f32.mrb[12].mxu0  ;;  %v1240_v6 = vpop.f32.mrb[12].mxu1  ;;  %906 = sbr.rel (%p1166_p13) target bundleno = 361 (0x169), region = 81  ;;  %983 = vst [vmem:[%s1558_s29 + $0x28] sm:$0xff] (!%p1166_p13), %v951_v39  ;;  %985 = vst [vmem:[%s1558_s29 + $0x38] sm:$0xff] (!%p1166_p13), %v953_v41 }
 0x158   : > { %v853_v9 = vadd.f32 %v1224_v5, %v468_v1  ;;  %v869_v10 = vadd.f32 %v1240_v6, %v484_v2  ;;  %v760_v11 = vpop.f32.mrb[13].mxu0  ;;  %v824_v12 = vpop.f32.mrb[13].mxu1  ;;  %v965_v1 = vadd.f32 (!%p1166_p13), %v1591_v26, %v926_v62  ;;  %v927_v2 = vld [vmem:[#allocation2 + $0xa0] sm:$0xff] (!%p1166_p13)  ;;  %994 = vst [vmem:[%s1558_s29 + $0x80] sm:$0xff] (!%p1166_p13), %v962_v59  ;;  %995 = vst [vmem:[%s1558_s29 + $0x88] sm:$0xff] (!%p1166_p13), %v963_v63 }
 0x159   : > { %v851_v15 = vadd.f32 %v760_v11, %v466_v3  ;;  %v867_v16 = vadd.f32 %v824_v12, %v482_v4  ;;  %v1225_v17 = vpop.f32.mrb[14].mxu0  ;;  %v1241_v18 = vpop.f32.mrb[14].mxu1  ;;  %v917_v44 = vld [vmem:[#allocation2 + $0x50] sm:$0xff] (!%p1166_p13)  ;;  %v928_v3 = vld [vmem:[#allocation2 + $0xa8] sm:$0xff] (!%p1166_p13)  ;;  %v966_v5 = vadd.f32 (!%p1166_p13), %v1591_v26, %v927_v2  ;;  %996 = vst [vmem:[%s1558_s29 + $0x90] sm:$0xff] (!%p1166_p13), %v964_v0 }
 0x15a   : > { %885 = vst [vmem:[#allocation2 + $0x70] sm:$0xff] %v853_v9  ;;  %901 = vst [vmem:[#allocation2 + $0xf0] sm:$0xff] %v869_v10  ;;  %v854_v19 = vadd.f32 %v1225_v17, %v469_v7  ;;  %v870_v20 = vadd.f32 %v1241_v18, %v485_v8  ;;  %v763_v21 = vpop.f32.mrb[15].mxu0  ;;  %v827_v22 = vpop.f32.mrb[15].mxu1  ;;  %v915_v42 = vld [vmem:[#allocation2 + $0x40] sm:$0xff] (!%p1166_p13)  ;;  %v956_v47 = vadd.f32 (!%p1166_p13), %v1591_v26, %v917_v44  ;;  %v929_v4 = vld [vmem:[#allocation2 + $0xb0] sm:$0xff] (!%p1166_p13) }
 0x15b   : > { %883 = vst [vmem:[#allocation2 + $0x60] sm:$0xff] %v851_v15  ;;  %899 = vst [vmem:[#allocation2 + $0xe0] sm:$0xff] %v867_v16  ;;  %v852_v23 = vadd.f32 %v763_v21, %v467_v13  ;;  %v868_v24 = vadd.f32 %v827_v22, %v483_v14  ;;  %v954_v45 = vadd.f32 (!%p1166_p13), %v1591_v26, %v915_v42  ;;  %v918_v48 = vld [vmem:[#allocation2 + $0x58] sm:$0xff] (!%p1166_p13)  ;;  %v931_v9 = vld [vmem:[#allocation2 + $0xc0] sm:$0xff] (!%p1166_p13) }
 0x15c   : > { %886 = vst [vmem:[#allocation2 + $0x78] sm:$0xff] %v854_v19  ;;  %902 = vst [vmem:[#allocation2 + $0xf8] sm:$0xff] %v870_v20  ;;  %v916_v43 = vld [vmem:[#allocation2 + $0x48] sm:$0xff] (!%p1166_p13)  ;;  %v957_v51 = vadd.f32 (!%p1166_p13), %v1591_v26, %v918_v48  ;;  %v967_v6 = vadd.f32 (!%p1166_p13), %v1591_v26, %v928_v3  ;;  %v968_v7 = vadd.f32 (!%p1166_p13), %v1591_v26, %v929_v4  ;;  %v930_v8 = vld [vmem:[#allocation2 + $0xb8] sm:$0xff] (!%p1166_p13) }
 0x15d   : > { %884 = vst [vmem:[#allocation2 + $0x68] sm:$0xff] %v852_v23  ;;  %900 = vst [vmem:[#allocation2 + $0xe8] sm:$0xff] %v868_v24  ;;  %v955_v46 = vadd.f32 (!%p1166_p13), %v1591_v26, %v916_v43  ;;  %v932_v10 = vld [vmem:[#allocation2 + $0xc8] sm:$0xff] (!%p1166_p13)  ;;  %v969_v11 = vadd.f32 (!%p1166_p13), %v1591_v26, %v930_v8  ;;  %v970_v12 = vadd.f32 (!%p1166_p13), %v1591_v26, %v931_v9  ;;  %v933_v14 = vld [vmem:[#allocation2 + $0xd0] sm:$0xff] (!%p1166_p13) }
 0x15e   : > { %986 = vst [vmem:[%s1558_s29 + $0x40] sm:$0xff] %v954_v45  ;;  %988 = vst [vmem:[%s1558_s29 + $0x50] sm:$0xff] %v956_v47  ;;  %v971_v13 = vadd.f32 %v1591_v26, %v932_v10  ;;  %v934_v15 = vld [vmem:[#allocation2 + $0xd8] sm:$0xff]  ;;  %v972_v17 = vadd.f32 %v1591_v26, %v933_v14 }
 0x15f   : > { %987 = vst [vmem:[%s1558_s29 + $0x48] sm:$0xff] %v955_v46  ;;  %989 = vst [vmem:[%s1558_s29 + $0x58] sm:$0xff] %v957_v51  ;;  %v973_v18 = vadd.f32 %v1591_v26, %v934_v15 }
 0x160   : > { %997 = vst [vmem:[%s1558_s29 + $0x98] sm:$0xff] %v965_v1  ;;  %998 = vst [vmem:[%s1558_s29 + $0xa0] sm:$0xff] %v966_v5 }
 0x161   : > { %v921_v54 = vld [vmem:[#allocation2 + $0x70] sm:$0xff]  ;;  %999 = vst [vmem:[%s1558_s29 + $0xa8] sm:$0xff] %v967_v6  ;;  %1000 = vst [vmem:[%s1558_s29 + $0xb0] sm:$0xff] %v968_v7 }
 0x162   : > { %v919_v49 = vld [vmem:[#allocation2 + $0x60] sm:$0xff]  ;;  %v960_v57 = vadd.f32 %v1591_v26, %v921_v54  ;;  %v937_v21 = vld [vmem:[#allocation2 + $0xf0] sm:$0xff]  ;;  %1001 = vst [vmem:[%s1558_s29 + $0xb8] sm:$0xff] %v969_v11  ;;  %1002 = vst [vmem:[%s1558_s29 + $0xc0] sm:$0xff] %v970_v12 }
 0x163   : > { %v958_v52 = vadd.f32 %v1591_v26, %v919_v49  ;;  %v922_v55 = vld [vmem:[#allocation2 + $0x78] sm:$0xff]  ;;  %v935_v16 = vld [vmem:[#allocation2 + $0xe0] sm:$0xff]  ;;  %1003 = vst [vmem:[%s1558_s29 + $0xc8] sm:$0xff] %v971_v13  ;;  %v976_v24 = vadd.f32 %v1591_v26, %v937_v21  ;;  %1004 = vst [vmem:[%s1558_s29 + $0xd0] sm:$0xff] %v972_v17 }
 0x164   : > { %v920_v50 = vld [vmem:[#allocation2 + $0x68] sm:$0xff]  ;;  %v961_v58 = vadd.f32 %v1591_v26, %v922_v55  ;;  %992 = vst [vmem:[%s1558_s29 + $0x70] sm:$0xff] %v960_v57  ;;  %v974_v19 = vadd.f32 %v1591_v26, %v935_v16  ;;  %v938_v22 = vld [vmem:[#allocation2 + $0xf8] sm:$0xff]  ;;  %1005 = vst [vmem:[%s1558_s29 + $0xd8] sm:$0xff] %v973_v18 }
 0x165   : > { %v959_v53 = vadd.f32 %v1591_v26, %v920_v50  ;;  %990 = vst [vmem:[%s1558_s29 + $0x60] sm:$0xff] %v958_v52  ;;  %v936_v20 = vld [vmem:[#allocation2 + $0xe8] sm:$0xff]  ;;  %v977_v25 = vadd.f32 %v1591_v26, %v938_v22  ;;  %1008 = vst [vmem:[%s1558_s29 + $0xf0] sm:$0xff] %v976_v24 }
 0x166   : > { %993 = vst [vmem:[%s1558_s29 + $0x78] sm:$0xff] %v961_v58  ;;  %v975_v23 = vadd.f32 %v1591_v26, %v936_v20  ;;  %1006 = vst [vmem:[%s1558_s29 + $0xe0] sm:$0xff] %v974_v19 }
 0x167   : > { %991 = vst [vmem:[%s1558_s29 + $0x68] sm:$0xff] %v959_v53  ;;  %1009 = vst [vmem:[%s1558_s29 + $0xf8] sm:$0xff] %v977_v25 }
 0x168   : > { %1007 = vst [vmem:[%s1558_s29 + $0xe8] sm:$0xff] %v975_v23 }
 0x169 PF: > { %s13_s18 = sadd.s32 1, %s1394_s18   ;;  %s1682_s12 = smov %s1374_s13 }
 0x16a   : > { %p10_p0 = scmp.ge.s32.totalorder %s13_s18, 8   ;;  %s1683_s13 = smov %s1468_s25 }
 0x16b   : > { %s1684_s14 = smov %s1386_s16  ;;  %s1685_s15 = smov %s1390_s17 }
 0x16c   : > { %s1686_s16 = smov %s1689_s19  ;;  %s1687_s17 = smov %s1693_s20 }
 0x16d   :  { %12 = sbr.rel (!%p10_p0) target bundleno = 4 (0x4), region = 122 }

// kernel: global_generator_forward.55
= control target key start
LH: loop header
LB: loop body
LE: loop exit
PB: predicated region body
PF: predicated region fallthrough
CT: control target
= control target key end

     0   :  { %s1513_s12 = smov 0   ;;  %s1515_s13 = smov 0   ;;  %s1774_s0 = inlined_call_operand.vmem [shape: bf16[512,896], index: 0, kind: input, shape index: {}]   ;;  %s1775_s1 = inlined_call_operand.vmem [shape: bf16[896,128], index: 1, kind: input, shape index: {}]   ;;  %s1776_s2 = inlined_call_operand.vmem [shape: f32[1,128], index: 2, kind: input, shape index: {}]   ;;  %s1777_s3 = inlined_call_operand.vmem [shape: f32[512,128], index: 3, kind: output, shape index: {}]  }
   0x1   :  { %s1517_s14 = smov 0   ;;  %s1519_s15 = smov 0  }
   0x2   :  { %s1521_s16 = smov 0   ;;  %s1523_s17 = smov 0  }
   0x3   :  { %s1525_s18 = smov 0  }
   0x4 LB: > { %s25_s19 = sadd.s32 1, %s1482_s16  ;;  %s32_s20 = sadd.s32 1, %s1486_s17  ;;  %s1490_s18 = sphi %s1525_s18, %s13_s18   ;;  %s1486_s17 = sphi %s1523_s17, %s1783_s17   ;;  %s1482_s16 = sphi %s1521_s16, %s1782_s16   ;;  %s1478_s15 = sphi %s1519_s15, %s1781_s15   ;;  %s1474_s14 = sphi %s1517_s14, %s1780_s14   ;;  %s1470_s13 = sphi %s1515_s13, %s1779_s13   ;;  %s1466_s12 = sphi %s1513_s12, %s1778_s12  }
   0x5   : > { %p26_p0 = scmp.ge.s32.totalorder %s25_s19, 7  ;;  %p48_p1 = scmp.ne.s32.totalorder %s1470_s13, %s1466_s12 }
   0x6   : > { %p49_p2 = scmp.eq.s32.totalorder %s1490_s18, 0  ;;  %s41_s24 = sadd.s32 1, %s1470_s13 }
   0x7   : > { %s1785_s19 = smov (%p26_p0, %s25_s19), 0  ;;  %s1787_s20 = smov (!%p26_p0, %s32_s20), %s1486_s17 }
   0x8   : > { %p50_p3 = por %p49_p2, %p48_p1  ;;  %p34_p4 = scmp.ge.s32.totalorder %s1787_s20, 2 }
   0x9   : > { %s37_s21 = ssub.s32 %s1482_s16, %s1785_s19  ;;  %p1162_p6 = scmp.ge.s32.totalorder %s1490_s18, 14 }
   0xa   : > { %s1789_s20 = smov (%p34_p4, %s1787_s20), 0 }
   0xb   : > { %s36_s22 = ssub.s32 %s1486_s17, %s1789_s20  ;;  %162 = sbr.rel (%p1162_p6) target bundleno = 46 (0x2e), region = 20 }
   0xc   : > { %s38_s23 = sor.u32 %s37_s21, %s36_s22 }
   0xd   : > { %p39_p5 = scmp.eq.s32.totalorder %s38_s23, 0 }
   0xf   : > { %s1564_s25 = scalar_select %p39_p5, %s1470_s13, %s41_s24  }
  0x12   : > { %165 = sbr.rel (!%p50_p3) target bundleno = 46 (0x2e), region = 24  ;;  %s167_s26 = sand.u32 (%p50_p3), 1, %s1470_s13  }
  0x13   : > { %s1290_s27 = smul.u32 (%p50_p3), 224, %s1486_s17  ;;  %s1163_s28 = sshll.u32 (%p50_p3), %s167_s26, 7 }
  0x14   : > { %s1578_s7 = scalar_lea.vmem (%p50_p3), [#allocation3], %s1163_s28 }
  0x15   : > { %s172_s29 = sadd.s32 (%p50_p3), %s1482_s16, %s1290_s27 }
  0x16   : > { %s1166_s30 = sshll.u32 (%p50_p3), %s172_s29, 2 }
  0x17   : > { %s1573_s6 = scalar_lea.vmem (%p50_p3), %s1774_s0, %s1166_s30 }
  0x18   : > { %v190_v0 = vld [vmem:[%s1573_s6] sm:$0xf] (%p50_p3)  ;;  %v192_v1 = vld [vmem:[%s1573_s6 + $0x1c] sm:$0xf] (%p50_p3)  ;;  %v194_v2 = vld [vmem:[%s1573_s6 + $0x38] sm:$0xf] (%p50_p3) }
  0x19   : > { %191 = vst [vmem:[%s1578_s7] sm:$0xf] %v190_v0  ;;  %193 = vst [vmem:[%s1578_s7 + $0x4] sm:$0xf] %v192_v1  ;;  %v196_v3 = vld [vmem:[%s1573_s6 + $0x54] sm:$0xf] }
  0x1a   : > { %195 = vst [vmem:[%s1578_s7 + $0x8] sm:$0xf] %v194_v2  ;;  %v198_v4 = vld [vmem:[%s1573_s6 + $0x70] sm:$0xf]  ;;  %v200_v5 = vld [vmem:[%s1573_s6 + $0x8c] sm:$0xf] }
  0x1b   : > { %197 = vst [vmem:[%s1578_s7 + $0xc] sm:$0xf] %v196_v3  ;;  %199 = vst [vmem:[%s1578_s7 + $0x10] sm:$0xf] %v198_v4  ;;  %v202_v6 = vld [vmem:[%s1573_s6 + $0xa8] sm:$0xf] }
  0x1c   : > { %201 = vst [vmem:[%s1578_s7 + $0x14] sm:$0xf] %v200_v5  ;;  %v204_v7 = vld [vmem:[%s1573_s6 + $0xc4] sm:$0xf]  ;;  %v206_v8 = vld [vmem:[%s1573_s6 + $0xe0] sm:$0xf] }
  0x1d   : > { %203 = vst [vmem:[%s1578_s7 + $0x18] sm:$0xf] %v202_v6  ;;  %205 = vst [vmem:[%s1578_s7 + $0x1c] sm:$0xf] %v204_v7  ;;  %v208_v9 = vld [vmem:[%s1573_s6 + $0xfc] sm:$0xf] }
  0x1e   : > { %207 = vst [vmem:[%s1578_s7 + $0x20] sm:$0xf] %v206_v8  ;;  %v210_v10 = vld [vmem:[%s1573_s6 + $0x118] sm:$0xf]  ;;  %v212_v11 = vld [vmem:[%s1573_s6 + $0x134] sm:$0xf] }
  0x1f   : > { %209 = vst [vmem:[%s1578_s7 + $0x24] sm:$0xf] %v208_v9  ;;  %211 = vst [vmem:[%s1578_s7 + $0x28] sm:$0xf] %v210_v10  ;;  %v214_v12 = vld [vmem:[%s1573_s6 + $0x150] sm:$0xf] }
  0x20   : > { %213 = vst [vmem:[%s1578_s7 + $0x2c] sm:$0xf] %v212_v11  ;;  %v216_v13 = vld [vmem:[%s1573_s6 + $0x16c] sm:$0xf]  ;;  %v218_v14 = vld [vmem:[%s1573_s6 + $0x188] sm:$0xf] }
  0x21   : > { %215 = vst [vmem:[%s1578_s7 + $0x30] sm:$0xf] %v214_v12  ;;  %217 = vst [vmem:[%s1578_s7 + $0x34] sm:$0xf] %v216_v13  ;;  %v220_v15 = vld [vmem:[%s1573_s6 + $0x1a4] sm:$0xf] }
  0x22   : > { %219 = vst [vmem:[%s1578_s7 + $0x38] sm:$0xf] %v218_v14  ;;  %v222_v16 = vld [vmem:[%s1573_s6 + $0x1c0] sm:$0xf]  ;;  %v224_v17 = vld [vmem:[%s1573_s6 + $0x1dc] sm:$0xf] }
  0x23   : > { %221 = vst [vmem:[%s1578_s7 + $0x3c] sm:$0xf] %v220_v15  ;;  %223 = vst [vmem:[%s1578_s7 + $0x40] sm:$0xf] %v222_v16  ;;  %v226_v18 = vld [vmem:[%s1573_s6 + $0x1f8] sm:$0xf] }
  0x24   : > { %225 = vst [vmem:[%s1578_s7 + $0x44] sm:$0xf] %v224_v17  ;;  %v228_v19 = vld [vmem:[%s1573_s6 + $0x214] sm:$0xf]  ;;  %v230_v20 = vld [vmem:[%s1573_s6 + $0x230] sm:$0xf] }
  0x25   : > { %227 = vst [vmem:[%s1578_s7 + $0x48] sm:$0xf] %v226_v18  ;;  %229 = vst [vmem:[%s1578_s7 + $0x4c] sm:$0xf] %v228_v19  ;;  %v232_v21 = vld [vmem:[%s1573_s6 + $0x24c] sm:$0xf] }
  0x26   : > { %231 = vst [vmem:[%s1578_s7 + $0x50] sm:$0xf] %v230_v20  ;;  %v234_v22 = vld [vmem:[%s1573_s6 + $0x268] sm:$0xf]  ;;  %v236_v23 = vld [vmem:[%s1573_s6 + $0x284] sm:$0xf] }
  0x27   : > { %233 = vst [vmem:[%s1578_s7 + $0x54] sm:$0xf] %v232_v21  ;;  %235 = vst [vmem:[%s1578_s7 + $0x58] sm:$0xf] %v234_v22  ;;  %v238_v24 = vld [vmem:[%s1573_s6 + $0x2a0] sm:$0xf] }
  0x28   : > { %237 = vst [vmem:[%s1578_s7 + $0x5c] sm:$0xf] %v236_v23  ;;  %v240_v25 = vld [vmem:[%s1573_s6 + $0x2bc] sm:$0xf]  ;;  %v242_v26 = vld [vmem:[%s1573_s6 + $0x2d8] sm:$0xf] }
  0x29   : > { %239 = vst [vmem:[%s1578_s7 + $0x60] sm:$0xf] %v238_v24  ;;  %241 = vst [vmem:[%s1578_s7 + $0x64] sm:$0xf] %v240_v25  ;;  %v244_v27 = vld [vmem:[%s1573_s6 + $0x2f4] sm:$0xf] }
  0x2a   : > { %243 = vst [vmem:[%s1578_s7 + $0x68] sm:$0xf] %v242_v26  ;;  %v246_v28 = vld [vmem:[%s1573_s6 + $0x310] sm:$0xf]  ;;  %v248_v29 = vld [vmem:[%s1573_s6 + $0x32c] sm:$0xf] }
  0x2b   : > { %245 = vst [vmem:[%s1578_s7 + $0x6c] sm:$0xf] %v244_v27  ;;  %247 = vst [vmem:[%s1578_s7 + $0x70] sm:$0xf] %v246_v28  ;;  %v250_v30 = vld [vmem:[%s1573_s6 + $0x348] sm:$0xf] }
  0x2c   : > { %249 = vst [vmem:[%s1578_s7 + $0x74] sm:$0xf] %v248_v29  ;;  %v252_v31 = vld [vmem:[%s1573_s6 + $0x364] sm:$0xf]  ;;  %251 = vst [vmem:[%s1578_s7 + $0x78] sm:$0xf] %v250_v30 }
  0x2d   : > { %253 = vst [vmem:[%s1578_s7 + $0x7c] sm:$0xf] %v252_v31 }
  0x2e PF: > { %p1167_p7 = scmp.ge.s32.totalorder %s1490_s18, 1  ;;  %p351_p8 = scmp.lt.s32.totalorder %s1490_s18, 15 }
  0x30   : > { %p352_p9 = pnand %p1167_p7, %p351_p8 }
  0x31   : > { %s358_s8 = sand.u32 (!%p352_p9), 1, %s1466_s12   ;;  %s1169_s9 = sshll.u32 (!%p352_p9), %s1474_s14, 4 }
  0x32   : > { %355 = sbr.rel (%p352_p9) target bundleno = 389 (0x185), region = 69  ;;  %s1168_s10 = sshll.u32 (!%p352_p9), %s358_s8, 7 }
  0x33   : > { %p397_p10 = scmp.lt.s32.totalorder (!%p352_p9), %s1169_s9, 111  ;;  %s1171_s11 = sshll.u32 (!%p352_p9), %s1478_s15, 5 }
  0x34   : > { %p409_p11 = scmp.lt.s32.totalorder (!%p352_p9), %s1171_s11, 63  ;;  %s1656_s12 = scalar_lea.vmem (!%p352_p9), [#allocation3], %s1168_s10 }
  0x35   : > { %p1173_p12 = scmp.ne.s32.totalorder (!%p352_p9), %s1474_s14, 0 }
  0x39   : > { %s1791_s9 = smov (!%p397_p10, %s1169_s9), 111  ;;  %s1793_s11 = smov (!%p409_p11, %s1171_s11), 63 }
  0x3a   : > { %s1170_s21 = sshll.u32 %s1791_s9, 2  ;;  %s1172_s26 = sshll.u32 %s1793_s11, 3  ;;  %v1492_v32 = vmov (!%p1173_p12), 0.0  }
  0x3b   : > { %s1649_s24 = scalar_lea.vmem %s1775_s1, %s1170_s21  ;;  %s1654_s29 = scalar_lea.vmem %s1777_s3, %s1172_s26  ;;  %422 = vst [vmem:[#allocation2] sm:$0xff] (!%p1173_p12), %v1492_v32  ;;  %423 = vst [vmem:[#allocation2 + $0x8] sm:$0xff] (!%p1173_p12), %v1492_v32 }
  0x3c   : > { %421 = sbr.rel (%p1173_p12) target bundleno = 75 (0x4b), region = 77  ;;  %424 = vst [vmem:[#allocation2 + $0x10] sm:$0xff] (!%p1173_p12), %v1492_v32  ;;  %425 = vst [vmem:[#allocation2 + $0x18] sm:$0xff] (!%p1173_p12), %v1492_v32 }
  0x3d   : > { %426 = vst [vmem:[#allocation2 + $0x20] sm:$0xff] (!%p1173_p12), %v1492_v32  ;;  %427 = vst [vmem:[#allocation2 + $0x28] sm:$0xff] (!%p1173_p12), %v1492_v32 }
  0x3e   : > { %428 = vst [vmem:[#allocation2 + $0x30] sm:$0xff] (!%p1173_p12), %v1492_v32  ;;  %429 = vst [vmem:[#allocation2 + $0x38] sm:$0xff] (!%p1173_p12), %v1492_v32 }
  0x3f   : > { %430 = vst [vmem:[#allocation2 + $0x40] sm:$0xff] (!%p1173_p12), %v1492_v32  ;;  %431 = vst [vmem:[#allocation2 + $0x48] sm:$0xff] (!%p1173_p12), %v1492_v32 }
  0x40   : > { %432 = vst [vmem:[#allocation2 + $0x50] sm:$0xff] (!%p1173_p12), %v1492_v32  ;;  %433 = vst [vmem:[#allocation2 + $0x58] sm:$0xff] (!%p1173_p12), %v1492_v32 }
  0x41   : > { %434 = vst [vmem:[#allocation2 + $0x60] sm:$0xff] (!%p1173_p12), %v1492_v32  ;;  %435 = vst [vmem:[#allocation2 + $0x68] sm:$0xff] (!%p1173_p12), %v1492_v32 }
  0x42   : > { %436 = vst [vmem:[#allocation2 + $0x70] sm:$0xff] (!%p1173_p12), %v1492_v32  ;;  %437 = vst [vmem:[#allocation2 + $0x78] sm:$0xff] (!%p1173_p12), %v1492_v32 }
  0x43   : > { %438 = vst [vmem:[#allocation2 + $0x80] sm:$0xff] %v1492_v32  ;;  %439 = vst [vmem:[#allocation2 + $0x88] sm:$0xff] %v1492_v32 }
  0x44   : > { %440 = vst [vmem:[#allocation2 + $0x90] sm:$0xff] %v1492_v32  ;;  %441 = vst [vmem:[#allocation2 + $0x98] sm:$0xff] %v1492_v32 }
  0x45   : > { %442 = vst [vmem:[#allocation2 + $0xa0] sm:$0xff] %v1492_v32  ;;  %443 = vst [vmem:[#allocation2 + $0xa8] sm:$0xff] %v1492_v32 }
  0x46   : > { %444 = vst [vmem:[#allocation2 + $0xb0] sm:$0xff] %v1492_v32  ;;  %445 = vst [vmem:[#allocation2 + $0xb8] sm:$0xff] %v1492_v32 }
  0x47   : > { %446 = vst [vmem:[#allocation2 + $0xc0] sm:$0xff] %v1492_v32  ;;  %447 = vst [vmem:[#allocation2 + $0xc8] sm:$0xff] %v1492_v32 }
  0x48   : > { %448 = vst [vmem:[#allocation2 + $0xd0] sm:$0xff] %v1492_v32  ;;  %449 = vst [vmem:[#allocation2 + $0xd8] sm:$0xff] %v1492_v32 }
  0x49   : > { %450 = vst [vmem:[#allocation2 + $0xe0] sm:$0xff] %v1492_v32  ;;  %451 = vst [vmem:[#allocation2 + $0xe8] sm:$0xff] %v1492_v32 }
  0x4a   : > { %452 = vst [vmem:[#allocation2 + $0xf0] sm:$0xff] %v1492_v32  ;;  %453 = vst [vmem:[#allocation2 + $0xf8] sm:$0xff] %v1492_v32 }
  0x4b PF: > { %v1348_v33 = vld [vmem:[%s1649_s24] sm:$0xff]   ;;  %v1349_v34 = vld [vmem:[%s1649_s24 + $0x8] sm:$0xff]   ;;  %v1350_v35 = vld [vmem:[%s1649_s24 + $0x10] sm:$0xff]   ;;  %p1198_p13 = scmp.ne.s32.totalorder %s1474_s14, 6 }
  0x4c   : > { %1226 = vmatprep.subr.bf16.mxu0 %v1348_v33  ;;  %1274 = vmatprep.subr.bf16.mxu1 %v1348_v33  ;;  %v1351_v36 = vld [vmem:[%s1649_s24 + $0x18] sm:$0xff]   ;;  %v1356_v37 = vld [vmem:[%s1656_s12] sm:$0xff]   ;;  %v1353_v40 = vld [vmem:[%s1649_s24 + $0x28] sm:$0xff]  }
  0x4d   : > { %1227 = vmatpush3.bf16.msra.mxu0 %v1348_v33  ;;  %1282 = vmatpush3.bf16.msra.mxu1 %v1348_v33  ;;  %v1357_v38 = vld [vmem:[%s1656_s12 + $0x40] sm:$0xff]   ;;  %v1354_v41 = vld [vmem:[%s1649_s24 + $0x30] sm:$0xff]   ;;  %v1355_v42 = vld [vmem:[%s1649_s24 + $0x38] sm:$0xff]  }
  0x4e   : > { %1228 = vmatprep.subr.bf16.mxu0 %v1349_v34  ;;  %1275 = vmatprep.subr.bf16.mxu1 %v1349_v34  ;;  %v1352_v39 = vld [vmem:[%s1649_s24 + $0x20] sm:$0xff]   ;;  %v1358_v43 = vld [vmem:[%s1656_s12 + $0x8] sm:$0xff]   ;;  %v1360_v45 = vld [vmem:[%s1656_s12 + $0x10] sm:$0xff]  }
  0x4f   : > { %1242 = vmatprep.mubr.bf16.mxu0 %v1356_v37  ;;  %1258 = vmatprep.mubr.bf16.mxu1 %v1357_v38  ;;  %v1359_v44 = vld [vmem:[%s1656_s12 + $0x48] sm:$0xff]   ;;  %v1361_v46 = vld [vmem:[%s1656_s12 + $0x50] sm:$0xff]   ;;  %v1362_v47 = vld [vmem:[%s1656_s12 + $0x18] sm:$0xff]  }
  0x50   : > { %v1363_v48 = vld [vmem:[%s1656_s12 + $0x58] sm:$0xff]   ;;  %v1364_v49 = vld [vmem:[%s1656_s12 + $0x20] sm:$0xff]   ;;  %v1366_v51 = vld [vmem:[%s1656_s12 + $0x28] sm:$0xff]  }
  0x51   : > { %1229 = vmatpush3.bf16.msra.mxu0 %v1349_v34  ;;  %1283 = vmatpush3.bf16.msra.mxu1 %v1349_v34  ;;  %v1365_v50 = vld [vmem:[%s1656_s12 + $0x60] sm:$0xff]   ;;  %v1367_v52 = vld [vmem:[%s1656_s12 + $0x68] sm:$0xff]   ;;  %v1368_v53 = vld [vmem:[%s1656_s12 + $0x30] sm:$0xff]  }
  0x52   : > { %1230 = vmatprep.subr.bf16.mxu0 %v1350_v35  ;;  %1276 = vmatprep.subr.bf16.mxu1 %v1350_v35  ;;  %v1369_v54 = vld [vmem:[%s1656_s12 + $0x70] sm:$0xff]   ;;  %v1370_v55 = vld [vmem:[%s1656_s12 + $0x38] sm:$0xff]   ;;  %v454_v59 = vld [vmem:[#allocation2] sm:$0xff] }
  0x53   : > { %v1371_v56 = vld [vmem:[%s1656_s12 + $0x78] sm:$0xff]   ;;  %v456_v57 = vld [vmem:[#allocation2 + $0x10] sm:$0xff]  ;;  %v470_v60 = vld [vmem:[#allocation2 + $0x80] sm:$0xff] }
  0x54   : > { %v472_v58 = vld [vmem:[#allocation2 + $0x90] sm:$0xff]  ;;  %v457_v63 = vld [vmem:[#allocation2 + $0x18] sm:$0xff]  ;;  %v455_v5 = vld [vmem:[#allocation2 + $0x8] sm:$0xff] }
  0x55   : > { %1231 = vmatpush3.bf16.msra.mxu0 %v1350_v35  ;;  %1284 = vmatpush3.bf16.msra.mxu1 %v1350_v35  ;;  %v473_v0 = vld [vmem:[#allocation2 + $0x98] sm:$0xff]  ;;  %v471_v6 = vld [vmem:[#allocation2 + $0x88] sm:$0xff]  ;;  %v460_v17 = vld [vmem:[#allocation2 + $0x30] sm:$0xff] }
  0x56   : > { %1232 = vmatprep.subr.bf16.mxu0 %v1351_v36  ;;  %1277 = vmatprep.subr.bf16.mxu1 %v1351_v36  ;;  %v476_v18 = vld [vmem:[#allocation2 + $0xb0] sm:$0xff]  ;;  %v458_v19 = vld [vmem:[#allocation2 + $0x20] sm:$0xff]  ;;  %v461_v23 = vld [vmem:[#allocation2 + $0x38] sm:$0xff] }
  0x57   : > { %v474_v20 = vld [vmem:[#allocation2 + $0xa0] sm:$0xff]  ;;  %v477_v24 = vld [vmem:[#allocation2 + $0xb8] sm:$0xff]  ;;  %v459_v29 = vld [vmem:[#allocation2 + $0x28] sm:$0xff] }
  0x58   : > { %v475_v30 = vld [vmem:[#allocation2 + $0xa8] sm:$0xff] }
  0x59   : > { %1233 = vmatpush3.bf16.msra.mxu0 %v1351_v36  ;;  %1285 = vmatpush3.bf16.msra.mxu1 %v1351_v36 }
  0x5a   : > { %1234 = vmatprep.subr.bf16.mxu0 %v1352_v39  ;;  %1278 = vmatprep.subr.bf16.mxu1 %v1352_v39 }
  0x5d   : > { %1235 = vmatpush3.bf16.msra.mxu0 %v1352_v39  ;;  %1286 = vmatpush3.bf16.msra.mxu1 %v1352_v39 }
  0x5e   : > { %1236 = vmatprep.subr.bf16.mxu0 %v1353_v40  ;;  %1279 = vmatprep.subr.bf16.mxu1 %v1353_v40 }
  0x61   : > { %1237 = vmatpush3.bf16.msra.mxu0 %v1353_v40  ;;  %1287 = vmatpush3.bf16.msra.mxu1 %v1353_v40 }
  0x62   : > { %1238 = vmatprep.subr.bf16.mxu0 %v1354_v41  ;;  %1280 = vmatprep.subr.bf16.mxu1 %v1354_v41 }
  0x65   : > { %1239 = vmatpush3.bf16.msra.mxu0 %v1354_v41  ;;  %1288 = vmatpush3.bf16.msra.mxu1 %v1354_v41  ;;  %v464_v41 = vld [vmem:[#allocation2 + $0x50] sm:$0xff] }
  0x66   : > { %1240 = vmatprep.subr.bf16.mxu0 %v1355_v42  ;;  %1281 = vmatprep.subr.bf16.mxu1 %v1355_v42 }
  0x69   : > { %1241 = vmatpush3.bf16.msra.mxu0 %v1355_v42  ;;  %1289 = vmatpush3.bf16.msra.mxu1 %v1355_v42  ;;  %v480_v42 = vld [vmem:[#allocation2 + $0xd0] sm:$0xff] }
  0x6c   : > { %1243 = vmatmul.mubr.bf16.vlgmr.msra.gmra.mrb[0].mxu0 %v1358_v43  ;;  %1259 = vmatmul.mubr.bf16.vlgmr.msra.gmra.mrb[0].mxu1 %v1359_v44  ;;  %v462_v43 = vld [vmem:[#allocation2 + $0x40] sm:$0xff] }
  0x6d   : > { %1246 = vmatprep.mubr.bf16.mxu0 %v1360_v45  ;;  %1262 = vmatprep.mubr.bf16.mxu1 %v1361_v46  ;;  %v478_v44 = vld [vmem:[#allocation2 + $0xc0] sm:$0xff] }
  0x74   : > { %1247 = vmatmul.mubr.bf16.gmra.mrb[4].mxu0 %v1362_v47  ;;  %1263 = vmatmul.mubr.bf16.gmra.mrb[4].mxu1 %v1363_v48  ;;  %v465_v47 = vld [vmem:[#allocation2 + $0x58] sm:$0xff] }
  0x75   : > { %1250 = vmatprep.mubr.bf16.mxu0 %v1364_v49  ;;  %1266 = vmatprep.mubr.bf16.mxu1 %v1365_v50  ;;  %v481_v48 = vld [vmem:[#allocation2 + $0xd8] sm:$0xff] }
  0x7c   : > { %1251 = vmatmul.mubr.bf16.gmra.mrb[8].mxu0 %v1366_v51  ;;  %1267 = vmatmul.mubr.bf16.gmra.mrb[8].mxu1 %v1367_v52 }
  0x7d   : > { %1254 = vmatprep.mubr.bf16.mxu0 %v1368_v53  ;;  %1270 = vmatprep.mubr.bf16.mxu1 %v1369_v54  ;;  %v463_v53 = vld [vmem:[#allocation2 + $0x48] sm:$0xff] }
  0x7e   : > { %v479_v54 = vld [vmem:[#allocation2 + $0xc8] sm:$0xff] }
  0x84   : > { %1255 = vmatmul.mubr.bf16.gmra.mrb[12].mxu0 %v1370_v55  ;;  %1271 = vmatmul.mubr.bf16.gmra.mrb[12].mxu1 %v1371_v56 }
 0x13f   : > { %v1244_v61 = vpop.f32.mrb[0].mxu0  ;;  %v1260_v62 = vpop.f32.mrb[0].mxu1 }
 0x140   : > { %v841_v1 = vadd.f32 %v1244_v61, %v456_v57  ;;  %v857_v2 = vadd.f32 %v1260_v62, %v472_v58  ;;  %v712_v3 = vpop.f32.mrb[1].mxu0  ;;  %v776_v4 = vpop.f32.mrb[1].mxu1 }
 0x141   : > { %v839_v7 = vadd.f32 %v712_v3, %v454_v59  ;;  %v855_v8 = vadd.f32 %v776_v4, %v470_v60  ;;  %v1245_v9 = vpop.f32.mrb[2].mxu0  ;;  %v1261_v10 = vpop.f32.mrb[2].mxu1  ;;  %v466_v3 = vld [vmem:[#allocation2 + $0x60] sm:$0xff] }
 0x142   : > { %873 = vst [vmem:[#allocation2 + $0x10] sm:$0xff] %v841_v1  ;;  %889 = vst [vmem:[#allocation2 + $0x90] sm:$0xff] %v857_v2  ;;  %v842_v11 = vadd.f32 %v1245_v9, %v457_v63  ;;  %v858_v12 = vadd.f32 %v1261_v10, %v473_v0  ;;  %v715_v13 = vpop.f32.mrb[3].mxu0  ;;  %v779_v14 = vpop.f32.mrb[3].mxu1  ;;  %v468_v1 = vld [vmem:[#allocation2 + $0x70] sm:$0xff]  ;;  %v482_v4 = vld [vmem:[#allocation2 + $0xe0] sm:$0xff] }
 0x143   : > { %871 = vst [vmem:[#allocation2] sm:$0xff] %v839_v7  ;;  %887 = vst [vmem:[#allocation2 + $0x80] sm:$0xff] %v855_v8  ;;  %v840_v15 = vadd.f32 %v715_v13, %v455_v5  ;;  %v856_v16 = vadd.f32 %v779_v14, %v471_v6  ;;  %v484_v2 = vld [vmem:[#allocation2 + $0xf0] sm:$0xff]  ;;  %v469_v7 = vld [vmem:[#allocation2 + $0x78] sm:$0xff] }
 0x144   : > { %874 = vst [vmem:[#allocation2 + $0x18] sm:$0xff] %v842_v11  ;;  %890 = vst [vmem:[#allocation2 + $0x98] sm:$0xff] %v858_v12  ;;  %v485_v8 = vld [vmem:[#allocation2 + $0xf8] sm:$0xff]  ;;  %v467_v13 = vld [vmem:[#allocation2 + $0x68] sm:$0xff] }
 0x145   : > { %872 = vst [vmem:[#allocation2 + $0x8] sm:$0xff] %v840_v15  ;;  %888 = vst [vmem:[#allocation2 + $0x88] sm:$0xff] %v856_v16  ;;  %v483_v14 = vld [vmem:[#allocation2 + $0xe8] sm:$0xff] }
 0x147   : > { %v1248_v21 = vpop.f32.mrb[4].mxu0  ;;  %v1264_v22 = vpop.f32.mrb[4].mxu1 }
 0x148   : > { %v845_v25 = vadd.f32 %v1248_v21, %v460_v17  ;;  %v861_v26 = vadd.f32 %v1264_v22, %v476_v18  ;;  %v728_v27 = vpop.f32.mrb[5].mxu0  ;;  %v792_v28 = vpop.f32.mrb[5].mxu1 }
 0x149   : > { %v843_v31 = vadd.f32 %v728_v27, %v458_v19  ;;  %v859_v32 = vadd.f32 %v792_v28, %v474_v20  ;;  %v1249_v33 = vpop.f32.mrb[6].mxu0  ;;  %v1265_v34 = vpop.f32.mrb[6].mxu1 }
 0x14a   : > { %877 = vst [vmem:[#allocation2 + $0x30] sm:$0xff] %v845_v25  ;;  %893 = vst [vmem:[#allocation2 + $0xb0] sm:$0xff] %v861_v26  ;;  %v846_v35 = vadd.f32 %v1249_v33, %v461_v23  ;;  %v862_v36 = vadd.f32 %v1265_v34, %v477_v24  ;;  %v731_v37 = vpop.f32.mrb[7].mxu0  ;;  %v795_v38 = vpop.f32.mrb[7].mxu1  ;;  %v907_v25 = vld [vmem:[#allocation2] sm:$0xff] (!%p1198_p13) }
 0x14b   : > { %875 = vst [vmem:[#allocation2 + $0x20] sm:$0xff] %v843_v31  ;;  %891 = vst [vmem:[#allocation2 + $0xa0] sm:$0xff] %v859_v32  ;;  %v844_v39 = vadd.f32 %v731_v37, %v459_v29  ;;  %v860_v40 = vadd.f32 %v795_v38, %v475_v30  ;;  %v1687_v26 = vld [vmem:[%s1776_s2] ss:$0 sm:$0xff] (!%p1198_p13)  ;;  %v909_v30 = vld [vmem:[#allocation2 + $0x10] sm:$0xff] (!%p1198_p13) }
 0x14c   : > { %878 = vst [vmem:[#allocation2 + $0x38] sm:$0xff] %v846_v35  ;;  %894 = vst [vmem:[#allocation2 + $0xb8] sm:$0xff] %v862_v36  ;;  %v908_v27 = vld [vmem:[#allocation2 + $0x8] sm:$0xff] (!%p1198_p13)  ;;  %v946_v28 = vadd.f32 (!%p1198_p13), %v1687_v26, %v907_v25  ;;  %v910_v31 = vld [vmem:[#allocation2 + $0x18] sm:$0xff] (!%p1198_p13)  ;;  %v948_v33 = vadd.f32 (!%p1198_p13), %v1687_v26, %v909_v30 }
 0x14d   : > { %876 = vst [vmem:[#allocation2 + $0x28] sm:$0xff] %v844_v39  ;;  %892 = vst [vmem:[#allocation2 + $0xa8] sm:$0xff] %v860_v40  ;;  %v947_v29 = vadd.f32 (!%p1198_p13), %v1687_v26, %v908_v27  ;;  %v949_v34 = vadd.f32 (!%p1198_p13), %v1687_v26, %v910_v31 }
 0x14e   : > { %1372 = vtanh.f32 (!%p1198_p13), %v946_v28 }
 0x14f   : > { %v1252_v45 = vpop.f32.mrb[8].mxu0  ;;  %v1268_v46 = vpop.f32.mrb[8].mxu1  ;;  %1374 = vtanh.f32 (!%p1198_p13), %v947_v29 }
 0x150   : > { %v849_v49 = vadd.f32 %v1252_v45, %v464_v41  ;;  %v865_v50 = vadd.f32 %v1268_v46, %v480_v42  ;;  %v744_v51 = vpop.f32.mrb[9].mxu0  ;;  %v808_v52 = vpop.f32.mrb[9].mxu1  ;;  %1376 = vtanh.f32 (!%p1198_p13), %v948_v33 }
 0x151   : > { %v847_v55 = vadd.f32 %v744_v51, %v462_v43  ;;  %v863_v56 = vadd.f32 %v808_v52, %v478_v44  ;;  %v1253_v57 = vpop.f32.mrb[10].mxu0  ;;  %v1269_v58 = vpop.f32.mrb[10].mxu1  ;;  %v913_v36 = vld [vmem:[#allocation2 + $0x30] sm:$0xff] (!%p1198_p13)  ;;  %1378 = vtanh.f32 (!%p1198_p13), %v949_v34 }
 0x152   : > { %881 = vst [vmem:[#allocation2 + $0x50] sm:$0xff] %v849_v49  ;;  %897 = vst [vmem:[#allocation2 + $0xd0] sm:$0xff] %v865_v50  ;;  %v850_v59 = vadd.f32 %v1253_v57, %v465_v47  ;;  %v866_v60 = vadd.f32 %v1269_v58, %v481_v48  ;;  %v747_v61 = vpop.f32.mrb[11].mxu0  ;;  %v811_v62 = vpop.f32.mrb[11].mxu1  ;;  %v911_v32 = vld [vmem:[#allocation2 + $0x20] sm:$0xff] (!%p1198_p13)  ;;  %v952_v41 = vadd.f32 (!%p1198_p13), %v1687_v26, %v913_v36 }
 0x153   : > { %879 = vst [vmem:[#allocation2 + $0x40] sm:$0xff] %v847_v55  ;;  %895 = vst [vmem:[#allocation2 + $0xc0] sm:$0xff] %v863_v56  ;;  %v848_v63 = vadd.f32 %v747_v61, %v463_v53  ;;  %v864_v0 = vadd.f32 %v811_v62, %v479_v54  ;;  %v950_v37 = vadd.f32 (!%p1198_p13), %v1687_v26, %v911_v32  ;;  %v914_v38 = vld [vmem:[#allocation2 + $0x38] sm:$0xff] (!%p1198_p13)  ;;  %v923_v56 = vld [vmem:[#allocation2 + $0x80] sm:$0xff] (!%p1198_p13) }
 0x154   : > { %882 = vst [vmem:[#allocation2 + $0x58] sm:$0xff] %v850_v59  ;;  %898 = vst [vmem:[#allocation2 + $0xd8] sm:$0xff] %v866_v60  ;;  %v912_v35 = vld [vmem:[#allocation2 + $0x28] sm:$0xff] (!%p1198_p13)  ;;  %v953_v43 = vadd.f32 (!%p1198_p13), %v1687_v26, %v914_v38  ;;  %v925_v62 = vld [vmem:[#allocation2 + $0x90] sm:$0xff] (!%p1198_p13) }
 0x155   : > { %880 = vst [vmem:[#allocation2 + $0x48] sm:$0xff] %v848_v63  ;;  %896 = vst [vmem:[#allocation2 + $0xc8] sm:$0xff] %v864_v0  ;;  %v951_v39 = vadd.f32 (!%p1198_p13), %v1687_v26, %v912_v35  ;;  %1380 = vtanh.f32 (!%p1198_p13), %v950_v37  ;;  %v924_v59 = vld [vmem:[#allocation2 + $0x88] sm:$0xff] (!%p1198_p13)  ;;  %v962_v0 = vadd.f32 (!%p1198_p13), %v1687_v26, %v923_v56 }
 0x157   : > { %v1256_v5 = vpop.f32.mrb[12].mxu0  ;;  %v1272_v6 = vpop.f32.mrb[12].mxu1  ;;  %906 = sbr.rel (%p1198_p13) target bundleno = 389 (0x185), region = 81  ;;  %1382 = vtanh.f32 (!%p1198_p13), %v951_v39 }
 0x158   : > { %v853_v9 = vadd.f32 %v1256_v5, %v468_v1  ;;  %v869_v10 = vadd.f32 %v1272_v6, %v484_v2  ;;  %v760_v11 = vpop.f32.mrb[13].mxu0  ;;  %v824_v12 = vpop.f32.mrb[13].mxu1  ;;  %1384 = vtanh.f32 (!%p1198_p13), %v952_v41  ;;  %v926_v1 = vld [vmem:[#allocation2 + $0x98] sm:$0xff] (!%p1198_p13)  ;;  %v964_v6 = vadd.f32 (!%p1198_p13), %v1687_v26, %v925_v62 }
 0x159   : > { %v851_v15 = vadd.f32 %v760_v11, %v466_v3  ;;  %v867_v16 = vadd.f32 %v824_v12, %v482_v4  ;;  %v1257_v17 = vpop.f32.mrb[14].mxu0  ;;  %v1273_v18 = vpop.f32.mrb[14].mxu1  ;;  %v917_v44 = vld [vmem:[#allocation2 + $0x50] sm:$0xff] (!%p1198_p13)  ;;  %1386 = vtanh.f32 (!%p1198_p13), %v953_v43  ;;  %v963_v3 = vadd.f32 (!%p1198_p13), %v1687_v26, %v924_v59  ;;  %v927_v4 = vld [vmem:[#allocation2 + $0xa0] sm:$0xff] (!%p1198_p13) }
 0x15a   : > { %885 = vst [vmem:[#allocation2 + $0x70] sm:$0xff] %v853_v9  ;;  %901 = vst [vmem:[#allocation2 + $0xf0] sm:$0xff] %v869_v10  ;;  %v854_v19 = vadd.f32 %v1257_v17, %v469_v7  ;;  %v870_v20 = vadd.f32 %v1273_v18, %v485_v8  ;;  %v763_v21 = vpop.f32.mrb[15].mxu0  ;;  %v827_v22 = vpop.f32.mrb[15].mxu1  ;;  %v915_v40 = vld [vmem:[#allocation2 + $0x40] sm:$0xff] (!%p1198_p13)  ;;  %v956_v49 = vadd.f32 (!%p1198_p13), %v1687_v26, %v917_v44  ;;  %v928_v7 = vld [vmem:[#allocation2 + $0xa8] sm:$0xff] (!%p1198_p13) }
 0x15b   : > { %883 = vst [vmem:[#allocation2 + $0x60] sm:$0xff] %v851_v15  ;;  %899 = vst [vmem:[#allocation2 + $0xe0] sm:$0xff] %v867_v16  ;;  %v852_v23 = vadd.f32 %v763_v21, %v467_v13  ;;  %v868_v24 = vadd.f32 %v827_v22, %v483_v14  ;;  %v954_v45 = vadd.f32 (!%p1198_p13), %v1687_v26, %v915_v40  ;;  %v918_v46 = vld [vmem:[#allocation2 + $0x58] sm:$0xff] (!%p1198_p13)  ;;  %v1373_v57 = vpop.eup (!%p1198_p13), %1372  ;;  %v929_v10 = vld [vmem:[#allocation2 + $0xb0] sm:$0xff] (!%p1198_p13) }
 0x15c   : > { %886 = vst [vmem:[#allocation2 + $0x78] sm:$0xff] %v854_v19  ;;  %902 = vst [vmem:[#allocation2 + $0xf8] sm:$0xff] %v870_v20  ;;  %v916_v42 = vld [vmem:[#allocation2 + $0x48] sm:$0xff] (!%p1198_p13)  ;;  %v957_v51 = vadd.f32 (!%p1198_p13), %v1687_v26, %v918_v46  ;;  %v1375_v60 = vpop.eup (!%p1198_p13), %1374  ;;  %v965_v9 = vadd.f32 (!%p1198_p13), %v1687_v26, %v926_v1  ;;  %v966_v12 = vadd.f32 (!%p1198_p13), %v1687_v26, %v927_v4  ;;  %v930_v13 = vld [vmem:[#allocation2 + $0xb8] sm:$0xff] (!%p1198_p13) }
 0x15d   : > { %884 = vst [vmem:[#allocation2 + $0x68] sm:$0xff] %v852_v23  ;;  %900 = vst [vmem:[#allocation2 + $0xe8] sm:$0xff] %v868_v24  ;;  %v955_v47 = vadd.f32 (!%p1198_p13), %v1687_v26, %v916_v42  ;;  %1388 = vtanh.f32 (!%p1198_p13), %v954_v45  ;;  %v1377_v63 = vpop.eup (!%p1198_p13), %1376  ;;  %v967_v15 = vadd.f32 (!%p1198_p13), %v1687_v26, %v928_v7  ;;  %v931_v16 = vld [vmem:[#allocation2 + $0xc0] sm:$0xff] (!%p1198_p13)  ;;  %v968_v18 = vadd.f32 (!%p1198_p13), %v1687_v26, %v929_v10  ;;  %v932_v19 = vld [vmem:[#allocation2 + $0xc8] sm:$0xff] (!%p1198_p13) }
 0x15e   : > { %1010 = vst [vmem:[%s1654_s29] sm:$0xff] %v1373_v57  ;;  %1011 = vst [vmem:[%s1654_s29 + $0x8] sm:$0xff] %v1375_v60  ;;  %v1379_v2 = vpop.eup %1378  ;;  %v969_v21 = vadd.f32 %v1687_v26, %v930_v13  ;;  %v933_v22 = vld [vmem:[#allocation2 + $0xd0] sm:$0xff]  ;;  %v970_v24 = vadd.f32 %v1687_v26, %v931_v16  ;;  %v934_v25 = vld [vmem:[#allocation2 + $0xd8] sm:$0xff]  ;;  %v971_v28 = vadd.f32 %v1687_v26, %v932_v19 }
 0x15f   : > { %1390 = vtanh.f32 %v955_v47  ;;  %1012 = vst [vmem:[%s1654_s29 + $0x10] sm:$0xff] %v1377_v63  ;;  %v1381_v5 = vpop.eup %1380  ;;  %1013 = vst [vmem:[%s1654_s29 + $0x18] sm:$0xff] %v1379_v2  ;;  %v972_v31 = vadd.f32 %v1687_v26, %v933_v22  ;;  %v973_v34 = vadd.f32 %v1687_v26, %v934_v25 }
 0x160   : > { %1392 = vtanh.f32 %v956_v49  ;;  %1014 = vst [vmem:[%s1654_s29 + $0x20] sm:$0xff] %v1381_v5 }
 0x161   : > { %v921_v52 = vld [vmem:[#allocation2 + $0x70] sm:$0xff]  ;;  %1394 = vtanh.f32 %v957_v51  ;;  %v1383_v8 = vpop.eup %1382 }
 0x162   : > { %v919_v48 = vld [vmem:[#allocation2 + $0x60] sm:$0xff]  ;;  %v960_v58 = vadd.f32 %v1687_v26, %v921_v52  ;;  %v1385_v11 = vpop.eup %1384  ;;  %1015 = vst [vmem:[%s1654_s29 + $0x28] sm:$0xff] %v1383_v8  ;;  %v937_v35 = vld [vmem:[#allocation2 + $0xf0] sm:$0xff] }
 0x163   : > { %v958_v53 = vadd.f32 %v1687_v26, %v919_v48  ;;  %v922_v54 = vld [vmem:[#allocation2 + $0x78] sm:$0xff]  ;;  %v1387_v14 = vpop.eup %1386  ;;  %1016 = vst [vmem:[%s1654_s29 + $0x30] sm:$0xff] %v1385_v11  ;;  %v935_v29 = vld [vmem:[#allocation2 + $0xe0] sm:$0xff]  ;;  %v976_v42 = vadd.f32 %v1687_v26, %v937_v35 }
 0x164   : > { %v920_v50 = vld [vmem:[#allocation2 + $0x68] sm:$0xff]  ;;  %v961_v61 = vadd.f32 %v1687_v26, %v922_v54  ;;  %1017 = vst [vmem:[%s1654_s29 + $0x38] sm:$0xff] %v1387_v14  ;;  %v974_v37 = vadd.f32 %v1687_v26, %v935_v29  ;;  %v938_v38 = vld [vmem:[#allocation2 + $0xf8] sm:$0xff] }
 0x165   : > { %v959_v55 = vadd.f32 %v1687_v26, %v920_v50  ;;  %1396 = vtanh.f32 %v958_v53  ;;  %v936_v32 = vld [vmem:[#allocation2 + $0xe8] sm:$0xff]  ;;  %v977_v44 = vadd.f32 %v1687_v26, %v938_v38 }
 0x166   : > { %v975_v40 = vadd.f32 %v1687_v26, %v936_v32 }
 0x167   : > { %1398 = vtanh.f32 %v959_v55  ;;  %v1389_v17 = vpop.eup %1388 }
 0x168   : > { %1400 = vtanh.f32 %v960_v58  ;;  %1018 = vst [vmem:[%s1654_s29 + $0x40] sm:$0xff] %v1389_v17 }
 0x169   : > { %1402 = vtanh.f32 %v961_v61  ;;  %v1391_v20 = vpop.eup %1390 }
 0x16a   : > { %1404 = vtanh.f32 %v962_v0  ;;  %v1393_v23 = vpop.eup %1392  ;;  %1019 = vst [vmem:[%s1654_s29 + $0x48] sm:$0xff] %v1391_v20 }
 0x16b   : > { %1406 = vtanh.f32 %v963_v3  ;;  %v1395_v27 = vpop.eup %1394  ;;  %1020 = vst [vmem:[%s1654_s29 + $0x50] sm:$0xff] %v1393_v23 }
 0x16c   : > { %1408 = vtanh.f32 %v964_v6  ;;  %1021 = vst [vmem:[%s1654_s29 + $0x58] sm:$0xff] %v1395_v27 }
 0x16d   : > { %1410 = vtanh.f32 %v965_v9 }
 0x16e   : > { %1412 = vtanh.f32 %v966_v12 }
 0x16f   : > { %1414 = vtanh.f32 %v967_v15  ;;  %v1397_v30 = vpop.eup %1396 }
 0x170   : > { %1416 = vtanh.f32 %v968_v18  ;;  %1022 = vst [vmem:[%s1654_s29 + $0x60] sm:$0xff] %v1397_v30 }
 0x171   : > { %v1399_v33 = vpop.eup %1398  ;;  %1418 = vtanh.f32 %v969_v21 }
 0x172   : > { %v1401_v36 = vpop.eup %1400  ;;  %1023 = vst [vmem:[%s1654_s29 + $0x68] sm:$0xff] %v1399_v33  ;;  %1420 = vtanh.f32 %v970_v24 }
 0x173   : > { %v1403_v39 = vpop.eup %1402  ;;  %1024 = vst [vmem:[%s1654_s29 + $0x70] sm:$0xff] %v1401_v36  ;;  %1422 = vtanh.f32 %v971_v28 }
 0x174   : > { %v1405_v41 = vpop.eup %1404  ;;  %1025 = vst [vmem:[%s1654_s29 + $0x78] sm:$0xff] %v1403_v39  ;;  %1424 = vtanh.f32 %v972_v31 }
 0x175   : > { %v1407_v43 = vpop.eup %1406  ;;  %1026 = vst [vmem:[%s1654_s29 + $0x80] sm:$0xff] %v1405_v41  ;;  %1426 = vtanh.f32 %v973_v34 }
 0x176   : > { %v1409_v45 = vpop.eup %1408  ;;  %1027 = vst [vmem:[%s1654_s29 + $0x88] sm:$0xff] %v1407_v43  ;;  %1428 = vtanh.f32 %v974_v37 }
 0x177   : > { %v1411_v46 = vpop.eup %1410  ;;  %1028 = vst [vmem:[%s1654_s29 + $0x90] sm:$0xff] %v1409_v45  ;;  %1430 = vtanh.f32 %v975_v40 }
 0x178   : > { %v1413_v47 = vpop.eup %1412  ;;  %1029 = vst [vmem:[%s1654_s29 + $0x98] sm:$0xff] %v1411_v46  ;;  %1432 = vtanh.f32 %v976_v42 }
 0x179   : > { %v1415_v48 = vpop.eup %1414  ;;  %1030 = vst [vmem:[%s1654_s29 + $0xa0] sm:$0xff] %v1413_v47  ;;  %1434 = vtanh.f32 %v977_v44 }
 0x17a   : > { %v1417_v26 = vpop.eup %1416  ;;  %1031 = vst [vmem:[%s1654_s29 + $0xa8] sm:$0xff] %v1415_v48 }
 0x17b   : > { %v1419_v49 = vpop.eup %1418  ;;  %1032 = vst [vmem:[%s1654_s29 + $0xb0] sm:$0xff] %v1417_v26 }
 0x17c   : > { %v1421_v50 = vpop.eup %1420  ;;  %1033 = vst [vmem:[%s1654_s29 + $0xb8] sm:$0xff] %v1419_v49 }
 0x17d   : > { %v1423_v51 = vpop.eup %1422  ;;  %1034 = vst [vmem:[%s1654_s29 + $0xc0] sm:$0xff] %v1421_v50 }
 0x17e   : > { %v1425_v52 = vpop.eup %1424  ;;  %1035 = vst [vmem:[%s1654_s29 + $0xc8] sm:$0xff] %v1423_v51 }
 0x17f   : > { %v1427_v53 = vpop.eup %1426  ;;  %1036 = vst [vmem:[%s1654_s29 + $0xd0] sm:$0xff] %v1425_v52 }
 0x180   : > { %v1429_v54 = vpop.eup %1428  ;;  %1037 = vst [vmem:[%s1654_s29 + $0xd8] sm:$0xff] %v1427_v53 }
 0x181   : > { %v1431_v55 = vpop.eup %1430  ;;  %1038 = vst [vmem:[%s1654_s29 + $0xe0] sm:$0xff] %v1429_v54 }
 0x182   : > { %v1433_v56 = vpop.eup %1432  ;;  %1039 = vst [vmem:[%s1654_s29 + $0xe8] sm:$0xff] %v1431_v55 }
 0x183   : > { %v1435_v57 = vpop.eup %1434  ;;  %1040 = vst [vmem:[%s1654_s29 + $0xf0] sm:$0xff] %v1433_v56 }
 0x184   : > { %1041 = vst [vmem:[%s1654_s29 + $0xf8] sm:$0xff] %v1435_v57 }
 0x185 PF: > { %s13_s18 = sadd.s32 1, %s1490_s18   ;;  %s1778_s12 = smov %s1470_s13 }
 0x186   : > { %p10_p0 = scmp.ge.s32.totalorder %s13_s18, 16   ;;  %s1779_s13 = smov %s1564_s25 }
 0x187   : > { %s1780_s14 = smov %s1482_s16  ;;  %s1781_s15 = smov %s1486_s17 }
 0x188   : > { %s1782_s16 = smov %s1785_s19  ;;  %s1783_s17 = smov %s1789_s20 }
 0x189   :  { %12 = sbr.rel (!%p10_p0) target bundleno = 4 (0x4), region = 122 }

</bundles_post_ra>
